<compile_context>
chip_gen: v6e
topology: v6e:2x2x1
jax: 0.10.0
libtpu: 0.0.40
codegen_flags: <defaults>
</compile_context>

<pallas_src>
import math
import numpy as np

import jax
import jax.numpy as jnp
from jax.experimental import pallas as pl
from jax.experimental.pallas import tpu as pltpu


def _gaussian_1d(window_size: int, sigma: float) -> np.ndarray:
    g = np.array(
        [math.exp(-((x - window_size // 2) ** 2) / float(2 * sigma ** 2))
         for x in range(window_size)],
        dtype=np.float64,
    )
    g = g / g.sum()
    return g.astype(np.float32)


def make_ssim_fn(N, C, H, W, window_size=11, size_average=True, sigma=1.5,
                 channel_block=None):
    pad = window_size // 2
    g1d = _gaussian_1d(window_size, sigma)
    C1 = 0.01 ** 2
    C2 = 0.03 ** 2

    # Banded Toeplitz blur matrices with "same" zero padding folded in.
    #   row blur:    out = Ah @ x      Ah[i, r] = g[r - i + pad]
    #   column blur: out = x  @ Bw     Bw[c, j] = g[c - j + pad]
    ah_np = np.zeros((H, H), np.float32)
    for i in range(H):
        for di in range(window_size):
            r = i + di - pad
            if 0 <= r < H:
                ah_np[i, r] = g1d[di]
    bw_np = np.zeros((W, W), np.float32)
    for j in range(W):
        for dj in range(window_size):
            c = j + dj - pad
            if 0 <= c < W:
                bw_np[c, j] = g1d[dj]
    ah = jnp.asarray(ah_np)
    bw = jnp.asarray(bw_np)

    # Channel blocking: amortize per-grid-step overhead over several planes,
    # sized conservatively so double-buffered inputs + the 5x stacked
    # intermediates stay well inside v7x's smaller scoped-VMEM budget.
    if channel_block is None:
        budget = 8 * 1024 * 1024
        per_plane = H * W * 4
        channel_block = 1
        for d in range(C, 0, -1):
            if C % d == 0 and per_plane * d * 24 <= budget:
                channel_block = d
                break
    Cb = channel_block
    assert C % Cb == 0, "channel_block must divide C"
    n_cblk = C // Cb
    P = 5 * Cb  # number of stacked planes fed through the blur

    def kernel(ah_ref, bw_ref, x1_ref, x2_ref, out_ref):
        x1 = x1_ref[...].reshape(Cb * H, W)          # (Cb*H, W) f32
        x2 = x2_ref[...].reshape(Cb * H, W)

        # Stack the five conv operands along the sublane axis: (5*Cb*H, W).
        st = jnp.concatenate([x1, x2, x1 * x1, x2 * x2, x1 * x2], axis=0)

        # Column blur: one 2D MXU matmul over the whole stack.
        y = jnp.dot(st, bw_ref[...],
                    precision=jax.lax.Precision.HIGHEST,
                    preferred_element_type=jnp.float32)

        # Row blur: one batched MXU matmul over the P stacked planes.
        y3 = y.reshape(P, H, W)
        ah_b = jnp.broadcast_to(ah_ref[...], (P, H, H))
        z3 = jnp.einsum('phr,prw->phw', ah_b, y3,
                        precision=jax.lax.Precision.HIGHEST,
                        preferred_element_type=jnp.float32)
        z = z3.reshape(P * H, W)

        mu1 = z[0 * Cb * H:1 * Cb * H]
        mu2 = z[1 * Cb * H:2 * Cb * H]
        s11 = z[2 * Cb * H:3 * Cb * H]
        s22 = z[3 * Cb * H:4 * Cb * H]
        s12 = z[4 * Cb * H:5 * Cb * H]

        mu1_sq = mu1 * mu1
        mu2_sq = mu2 * mu2
        mu1_mu2 = mu1 * mu2
        sigma1_sq = s11 - mu1_sq
        sigma2_sq = s22 - mu2_sq
        sigma12 = s12 - mu1_mu2

        num = (2.0 * mu1_mu2 + C1) * (2.0 * sigma12 + C2)
        den = (mu1_sq + mu2_sq + C1) * (sigma1_sq + sigma2_sq + C2)
        ssim_map = num / den

        block_sum = jnp.sum(ssim_map)
        # Lane-dense (8, 128) output tile; unmasked full-tile store.
        out_ref[...] = jnp.broadcast_to(block_sum, (8, 128))

    vmem_bytes = int(min(64 * 1024 * 1024,
                         max(4 * 1024 * 1024, 32 * Cb * H * W * 4)))

    sum_fn = pl.pallas_call(
        kernel,
        out_shape=jax.ShapeDtypeStruct((N, n_cblk, 8, 128), jnp.float32),
        grid_spec=pltpu.PrefetchScalarGridSpec(
            num_scalar_prefetch=0,
            grid=(N, n_cblk),
            in_specs=[
                pl.BlockSpec((H, H), lambda b, cb: (0, 0)),        # Ah (resident)
                pl.BlockSpec((W, W), lambda b, cb: (0, 0)),        # Bw (resident)
                pl.BlockSpec((None, Cb, H, W), lambda b, cb: (b, cb, 0, 0)),
                pl.BlockSpec((None, Cb, H, W), lambda b, cb: (b, cb, 0, 0)),
            ],
            out_specs=pl.BlockSpec((None, None, 8, 128),
                                   lambda b, cb: (b, cb, 0, 0)),
        ),
        compiler_params=pltpu.CompilerParams(
            dimension_semantics=("parallel", "parallel"),
            vmem_limit_bytes=vmem_bytes),
    )

    def ssim(img1, img2):
        assert img1.shape == (N, C, H, W) and img2.shape == (N, C, H, W)
        x1 = img1.astype(jnp.float32)
        x2 = img2.astype(jnp.float32)
        res = sum_fn(ah, bw, x1, x2)             # (N, n_cblk, 8, 128)
        per_block = res[:, :, 0, 0]              # (N, n_cblk) partial sums
        per_batch = jnp.sum(per_block, axis=1)   # (N,)
        if size_average:
            return jnp.sum(per_batch) / float(N * C * H * W)
        else:
            return per_batch / float(C * H * W)  # == mean(1).mean(1).mean(1)

    return ssim


def _ssim_reference(img1, img2, window_size=11, sigma=1.5, size_average=True):
    # Pure-JAX reference (mirrors the PyTorch _ssim with F.conv2d, groups=C).
    N, C, H, W = img1.shape
    g = jnp.asarray(_gaussian_1d(window_size, sigma))
    w2d = jnp.outer(g, g)                               # (ws, ws)
    window = jnp.tile(w2d[None, None], (C, 1, 1, 1))    # (C, 1, ws, ws)
    pad = window_size // 2

    def conv(x):
        return jax.lax.conv_general_dilated(
            x, window, window_strides=(1, 1),
            padding=[(pad, pad), (pad, pad)],
            feature_group_count=C,
            dimension_numbers=("NCHW", "OIHW", "NCHW"),
            precision=jax.lax.Precision.HIGHEST)

    mu1, mu2 = conv(img1), conv(img2)
    mu1_sq, mu2_sq, mu1_mu2 = mu1 ** 2, mu2 ** 2, mu1 * mu2
    sigma1_sq = conv(img1 * img1) - mu1_sq
    sigma2_sq = conv(img2 * img2) - mu2_sq
    sigma12 = conv(img1 * img2) - mu1_mu2
    C1, C2 = 0.01 ** 2, 0.03 ** 2
    ssim_map = ((2 * mu1_mu2 + C1) * (2 * sigma12 + C2)
                / ((mu1_sq + mu2_sq + C1) * (sigma1_sq + sigma2_sq + C2)))
    if size_average:
        return ssim_map.mean()
    return ssim_map.mean(axis=(1, 2, 3))


if __name__ == "__main__":
    N, C, H, W = 2, 4, 16, 16
    key = jax.random.PRNGKey(0)
    k1, k2 = jax.random.split(key)
    img1 = jax.random.uniform(k1, (N, C, H, W), dtype=jnp.float32)
    img2 = jax.random.uniform(k2, (N, C, H, W), dtype=jnp.float32)

    # size_average=True path
    ssim_avg = make_ssim_fn(N, C, H, W, window_size=11, size_average=True)
    out_avg = jax.block_until_ready(ssim_avg(img1, img2))
    ref_avg = _ssim_reference(img1, img2, window_size=11, size_average=True)
    assert np.allclose(np.asarray(out_avg), np.asarray(ref_avg),
                       atol=1e-5, rtol=1e-5), (np.asarray(out_avg),
                                               np.asarray(ref_avg))

    # size_average=False path (per-batch means)
    ssim_nb = make_ssim_fn(N, C, H, W, window_size=11, size_average=False)
    out_nb = jax.block_until_ready(ssim_nb(img1, img2))
    ref_nb = _ssim_reference(img1, img2, window_size=11, size_average=False)
    assert np.allclose(np.asarray(out_nb), np.asarray(ref_nb),
                       atol=1e-5, rtol=1e-5), (np.asarray(out_nb),
                                               np.asarray(ref_nb))

    print("KERNEL_OK")
</pallas_src>

<mosaic_0001>
module attributes {stable_mosaic.version = 11 : i64} {
  func.func @kernel(%arg0: i32, %arg1: i32, %arg2: memref<16x16xf32, #tpu.memory_space<vmem>>, %arg3: memref<16x16xf32, #tpu.memory_space<vmem>>, %arg4: memref<1x4x16x16xf32, #tpu.memory_space<vmem>>, %arg5: memref<1x4x16x16xf32, #tpu.memory_space<vmem>>, %arg6: memref<1x1x8x128xf32, #tpu.memory_space<vmem>>) attributes {dimension_semantics = [#tpu.dimension_semantics<parallel>, #tpu.dimension_semantics<parallel>], iteration_bounds = array<i64: 2, 1>, scalar_prefetch = 0 : i64, scratch_operands = 0 : i64, tpu.core_type = #tpu.core_type<tc>, window_params = [{pipeline_mode = #tpu.pipeline_mode<synchronous>, transform_indices = @transform_0, window_bounds = array<i64: 16, 16>}, {pipeline_mode = #tpu.pipeline_mode<synchronous>, transform_indices = @transform_1, window_bounds = array<i64: 16, 16>}, {transform_indices = @transform_2, window_bounds = array<i64: 1, 4, 16, 16>}, {transform_indices = @transform_3, window_bounds = array<i64: 1, 4, 16, 16>}, {transform_indices = @transform_4, window_bounds = array<i64: 1, 1, 8, 128>}]} {
    %c0 = arith.constant 0 : index
    %c0_0 = arith.constant 0 : index
    %c0_1 = arith.constant 0 : index
    %c0_2 = arith.constant 0 : index
    %0 = vector.load %arg4[%c0, %c0_0, %c0_1, %c0_2] : memref<1x4x16x16xf32, #tpu.memory_space<vmem>>, vector<1x4x16x16xf32>
    %1 = vector.shape_cast %0 : vector<1x4x16x16xf32> to vector<4x16x16xf32>
    %2 = vector.shape_cast %1 : vector<4x16x16xf32> to vector<64x16xf32>
    %c0_3 = arith.constant 0 : index
    %c0_4 = arith.constant 0 : index
    %c0_5 = arith.constant 0 : index
    %c0_6 = arith.constant 0 : index
    %3 = vector.load %arg5[%c0_3, %c0_4, %c0_5, %c0_6] : memref<1x4x16x16xf32, #tpu.memory_space<vmem>>, vector<1x4x16x16xf32>
    %4 = vector.shape_cast %3 : vector<1x4x16x16xf32> to vector<4x16x16xf32>
    %5 = vector.shape_cast %4 : vector<4x16x16xf32> to vector<64x16xf32>
    %6 = arith.mulf %2, %2 : vector<64x16xf32>
    %7 = arith.mulf %5, %5 : vector<64x16xf32>
    %8 = arith.mulf %2, %5 : vector<64x16xf32>
    %9 = tpu.concatenate %2, %5, %6, %7, %8 in 0 : vector<64x16xf32>, vector<64x16xf32>, vector<64x16xf32>, vector<64x16xf32>, vector<64x16xf32> -> vector<320x16xf32>
    %c0_7 = arith.constant 0 : index
    %c0_8 = arith.constant 0 : index
    %10 = vector.load %arg3[%c0_7, %c0_8] : memref<16x16xf32, #tpu.memory_space<vmem>>, vector<16x16xf32>
    %cst = arith.constant dense<0.000000e+00> : vector<320x16xf32>
    %11 = tpu.matmul %9, %10, %cst {dimension_numbers = #tpu.dot_dimension_numbers<[1], [0], [0], [1], [0, 0, 1, 1], [], []>, precision = #tpu.contract_precision<fp32>} : vector<320x16xf32>, vector<16x16xf32>, vector<320x16xf32> -> vector<320x16xf32>
    %12 = vector.shape_cast %11 : vector<320x16xf32> to vector<20x16x16xf32>
    %c0_9 = arith.constant 0 : index
    %c0_10 = arith.constant 0 : index
    %13 = vector.load %arg2[%c0_9, %c0_10] : memref<16x16xf32, #tpu.memory_space<vmem>>, vector<16x16xf32>
    %14 = vector.shape_cast %13 : vector<16x16xf32> to vector<1x16x16xf32>
    %15 = vector.broadcast %14 : vector<1x16x16xf32> to vector<20x16x16xf32>
    "tpu.trace_start"() <{level = 10 : i32, message = "phr,prw->phw"}> : () -> ()
    %cst_11 = arith.constant dense<0.000000e+00> : vector<20x16x16xf32>
    %16 = tpu.matmul %15, %12, %cst_11 {dimension_numbers = #tpu.dot_dimension_numbers<[2], [1], [1], [2], [0, 0, 0, 1, 1, 2], [0], [0]>, precision = #tpu.contract_precision<fp32>} : vector<20x16x16xf32>, vector<20x16x16xf32>, vector<20x16x16xf32> -> vector<20x16x16xf32>
    "tpu.trace_stop"() : () -> ()
    %17 = vector.shape_cast %16 : vector<20x16x16xf32> to vector<320x16xf32>
    %18 = vector.extract_strided_slice %17 {offsets = [0, 0], sizes = [64, 16], strides = [1, 1]} : vector<320x16xf32> to vector<64x16xf32>
    %19 = vector.extract_strided_slice %17 {offsets = [64, 0], sizes = [64, 16], strides = [1, 1]} : vector<320x16xf32> to vector<64x16xf32>
    %20 = vector.extract_strided_slice %17 {offsets = [128, 0], sizes = [64, 16], strides = [1, 1]} : vector<320x16xf32> to vector<64x16xf32>
    %21 = vector.extract_strided_slice %17 {offsets = [192, 0], sizes = [64, 16], strides = [1, 1]} : vector<320x16xf32> to vector<64x16xf32>
    %22 = vector.extract_strided_slice %17 {offsets = [256, 0], sizes = [64, 16], strides = [1, 1]} : vector<320x16xf32> to vector<64x16xf32>
    %23 = arith.mulf %18, %18 : vector<64x16xf32>
    %24 = arith.mulf %19, %19 : vector<64x16xf32>
    %25 = arith.mulf %18, %19 : vector<64x16xf32>
    %26 = arith.subf %20, %23 : vector<64x16xf32>
    %27 = arith.subf %21, %24 : vector<64x16xf32>
    %28 = arith.subf %22, %25 : vector<64x16xf32>
    %cst_12 = arith.constant 2.000000e+00 : f32
    %29 = vector.broadcast %cst_12 : f32 to vector<64x16xf32>
    %30 = arith.mulf %29, %25 : vector<64x16xf32>
    %cst_13 = arith.constant 9.99999974E-5 : f32
    %31 = vector.broadcast %cst_13 : f32 to vector<64x16xf32>
    %32 = arith.addf %30, %31 : vector<64x16xf32>
    %cst_14 = arith.constant 2.000000e+00 : f32
    %33 = vector.broadcast %cst_14 : f32 to vector<64x16xf32>
    %34 = arith.mulf %33, %28 : vector<64x16xf32>
    %cst_15 = arith.constant 8.99999984E-4 : f32
    %35 = vector.broadcast %cst_15 : f32 to vector<64x16xf32>
    %36 = arith.addf %34, %35 : vector<64x16xf32>
    %37 = arith.mulf %32, %36 : vector<64x16xf32>
    %38 = arith.addf %23, %24 : vector<64x16xf32>
    %cst_16 = arith.constant 9.99999974E-5 : f32
    %39 = vector.broadcast %cst_16 : f32 to vector<64x16xf32>
    %40 = arith.addf %38, %39 : vector<64x16xf32>
    %41 = arith.addf %26, %27 : vector<64x16xf32>
    %cst_17 = arith.constant 8.99999984E-4 : f32
    %42 = vector.broadcast %cst_17 : f32 to vector<64x16xf32>
    %43 = arith.addf %41, %42 : vector<64x16xf32>
    %44 = arith.mulf %40, %43 : vector<64x16xf32>
    %45 = arith.divf %37, %44 : vector<64x16xf32>
    %46 = vector.shape_cast %45 : vector<64x16xf32> to vector<1x64x16xf32>
    %cst_18 = arith.constant dense<0.000000e+00> : vector<1xf32>
    %47 = vector.multi_reduction <add>, %46, %cst_18 [1, 2] : vector<1x64x16xf32> to vector<1xf32>
    %48 = vector.shape_cast %47 : vector<1xf32> to vector<1x1x1xf32>
    %49 = vector.extract %48[0, 0, 0] : f32 from vector<1x1x1xf32>
    %50 = vector.broadcast %49 : f32 to vector<8x128xf32>
    %c0_19 = arith.constant 0 : index
    %c0_20 = arith.constant 0 : index
    %c0_21 = arith.constant 0 : index
    %c0_22 = arith.constant 0 : index
    %51 = vector.load %arg6[%c0_19, %c0_20, %c0_21, %c0_22] : memref<1x1x8x128xf32, #tpu.memory_space<vmem>>, vector<1x1x8x128xf32>
    %52 = vector.shape_cast %51 : vector<1x1x8x128xf32> to vector<8x128xf32>
    %53 = vector.shape_cast %50 : vector<8x128xf32> to vector<1x1x8x128xf32>
    tpu.vector_store %arg6[%c0_19, %c0_20, %c0_21, %c0_22], %53 {strides = array<i32>} : memref<1x1x8x128xf32, #tpu.memory_space<vmem>>, vector<1x1x8x128xf32>,
    return
  }
  func.func @transform_0(%arg0: i32, %arg1: i32) -> (i32, i32) {
    %c0_i32 = arith.constant 0 : i32
    %c0_i32_0 = arith.constant 0 : i32
    %c0_i32_1 = arith.constant 0 : i32
    return %c0_i32, %c0_i32_0 : i32, i32
  }
  func.func @transform_1(%arg0: i32, %arg1: i32) -> (i32, i32) {
    %c0_i32 = arith.constant 0 : i32
    %c0_i32_0 = arith.constant 0 : i32
    %c0_i32_1 = arith.constant 0 : i32
    return %c0_i32, %c0_i32_0 : i32, i32
  }
  func.func @transform_2(%arg0: i32, %arg1: i32) -> (i32, i32, i32, i32) {
    %c0_i32 = arith.constant 0 : i32
    %c0_i32_0 = arith.constant 0 : i32
    %c0_i32_1 = arith.constant 0 : i32
    return %arg0, %arg1, %c0_i32, %c0_i32_0 : i32, i32, i32, i32
  }
  func.func @transform_3(%arg0: i32, %arg1: i32) -> (i32, i32, i32, i32) {
    %c0_i32 = arith.constant 0 : i32
    %c0_i32_0 = arith.constant 0 : i32
    %c0_i32_1 = arith.constant 0 : i32
    return %arg0, %arg1, %c0_i32, %c0_i32_0 : i32, i32, i32, i32
  }
  func.func @transform_4(%arg0: i32, %arg1: i32) -> (i32, i32, i32, i32) {
    %c0_i32 = arith.constant 0 : i32
    %c0_i32_0 = arith.constant 0 : i32
    %c0_i32_1 = arith.constant 0 : i32
    return %arg0, %arg1, %c0_i32, %c0_i32_0 : i32, i32, i32, i32
  }
}

</mosaic_0001>

<bundles_post_ra>
// kernel: tpu_custom_call.1
= control target key start
LH: loop header
LB: loop body
LE: loop exit
PB: predicated region body
PF: predicated region fallthrough
CT: control target
= control target key end

     0   :  { %s17671_s0 = inlined_call_operand.hbm [shape: f32[16,16], index: 0, kind: input, shape index: {}]   ;;  %s17672_s1 = inlined_call_operand.hbm [shape: f32[16,16], index: 1, kind: input, shape index: {}]   ;;  %s17673_s2 = inlined_call_operand.hbm [shape: f32[2,4,16,16], index: 2, kind: input, shape index: {}]   ;;  %s17674_s3 = inlined_call_operand.hbm [shape: f32[2,4,16,16], index: 3, kind: input, shape index: {}]   ;;  %s17675_s4 = inlined_call_operand.hbm [shape: f32[2,1,8,128], index: 4, kind: output, shape index: {}]  }
   0x1   :  { %17772 = sst [smem:[#allocation68_spill]] %s17671_s0 }
   0x2   :  { %17773 = sst [smem:[#allocation69_spill]] %s17675_s4 }
   0x3   :  { %9 = vsyncpa [#allocation3], 0 }
   0x4   :  { %10 = vsyncpa [#allocation6], 0 }
   0x5   :  { %11 = vsyncpa [#allocation4], 0 }
   0x6   :  { %13 = vsyncpa [#allocation4 + $0x1], 0  ;;  %s15280_s15 = smov 0   ;;  %s15282_s16 = smov 0  }
   0x7   :  { %s15284_s17 = smov 0   ;;  %s15286_s18 = smov 0  }
   0x8   :  { %s15288_s19 = smov 0   ;;  %s15290_s20 = smov 0  }
   0x9 LB: > { %17774 = sst [smem:[#allocation14_spill]] %s15226_s15  ;;  %s15311_s21 = sadd.s32 4294967295, %s15246_s20   ;;  %s15246_s20 = sphi %s15290_s20, %s19_s20   ;;  %s15242_s19 = sphi %s15288_s19, %s18032_s19   ;;  %s15238_s18 = sphi %s15286_s18, %s18031_s18   ;;  %s15234_s17 = sphi %s15284_s17, %s18030_s17   ;;  %s15230_s16 = sphi %s15282_s16, %s18029_s16   ;;  %s15226_s15 = sphi %s15280_s15, %s18028_s15  }
   0xa   : > { %s12963_s22 = sadd.s32 4294967294, %s15246_s20   ;;  %p89_p0 = scmp.ne.s32.totalorder %s15234_s17, %s15230_s16 }
   0xb   : > { %p90_p1 = scmp.eq.s32.totalorder %s15246_s20, 0  ;;  %p95_p2 = scmp.ne.s32.totalorder %s15230_s16, %s15226_s15 }
   0xc   : > { %p17676_p3 = scmp.eq.s32.totalorder %s15311_s21, 0  ;;  %p149_p4 = scmp.eq.s32.totalorder %s15311_s21, 1 }
   0xd   : > { %p15322_p5 = por %p90_p1, %p89_p0  ;;  %p155_p6 = scmp.eq.s32.totalorder %s12963_s22, 1 }
   0xe   : > { %p15328_p7 = por %p17676_p3, %p95_p2  ;;  %p15332_p8 = por %p149_p4, %p89_p0 }
   0xf   : > { %p15336_p9 = por %p155_p6, %p95_p2  ;;  %p12964_p10 = scmp.ge.s32.totalorder %s15246_s20, 1 }
  0x10   : > { %s17777_s26 = scalar_select %p15332_p8, 1, 0 }
  0x11   : > { %s17778_s27 = scalar_select %p15336_p9, 1, 0 }
  0x12   : > { %p162_p11 = scmp.lt.s32.totalorder %s15246_s20, 3  ;;  %s15248_s29 = smov [#allocation2]  }
  0x13   : > { %17779 = sst [smem:[#allocation15_spill]] %s17778_s27  ;;  %s174_s30 = sshll.u32 %s15248_s29, 4  ;;  %s175_s30 = int_to_ptr.vmem [resolvable:$true] %s174_s30 }
  0x14   : > { %p15342_p12 = pnand %p12964_p10, %p162_p11  ;;  %p14978_p1 = scmp.lt.s32.totalorder %s15246_s20, 2 }
  0x15   : > { %s31_s7 = sadd.s32 1, %s15242_s19  ;;  %s15061_s9 = scalar_lea.vmem %s175_s30, 256 }
  0x16   : > { %p14958_p13 = pneg %p15342_p12  ;;  %p15358_p2 = pnand %p14978_p1, %p15322_p5 }
  0x17   : > { %p15363_p6 = scmp.ge.s32.totalorder %s31_s7, 2  ;;  %p15062_p11 = scmp.ne.s32.totalorder %s175_s30, %s15061_s9 }
  0x18   : > { %p15352_p4 = pnand %p14958_p13, %p17676_p3  ;;  %p15069_p3 = scmp.lt.s32.totalorder %s175_s30, %s175_s30 }
  0x19   : > { %p15070_p9 = scmp.lt.s32.totalorder %s15061_s9, %s15061_s9 }
  0x1a   : > { %p15052_p10 = pneg %p15352_p4 }
  0x1b   : > { %p15071_p8 = por %p15070_p9, %p15069_p3 }
  0x1c   : > { %p15064_p13 = pnand %p15062_p11, %p15052_p10 }
  0x1e   : > { %p15065_p0 = pneg %p15064_p13 }
  0x20   : > { %p15072_p5 = pnand %p15071_p8, %p15065_p0 }
  0x22   : > { %15075 = shalt.err (!%p15072_p5)
}
  0x23   : > { %s17681_s10 = smov 128   ;;  %s15250_s11 = smov 8  }
  0x24   : > { %s17784_s0 = sld [smem:[#allocation68_spill]]  ;;  %s201_s14 = sand.u32 1, %s15246_s20  }
  0x25   : > { %s18034_s7 = smov (%p15363_p6, %s31_s7), 0  ;;  %s203_s22 = sand.u32 1, %s15234_s17  }
  0x26   : > { %s77_s24 = ssub.s32 %s15242_s19, %s18034_s7  ;;  %s15388_s29 = sshll.u32 %s203_s22, 6 }
  0x27   : > { %p80_p3 = scmp.eq.s32.totalorder %s77_s24, 0  ;;  %s12984_s9 = sshll.u32 %s15242_s19, 10 }
  0x28   : > { %s205_s23 = scalar_lea.vmem [#allocation7], %s15388_s29  ;;  %s17785_s15 = sadd.s32 1, %s15234_s17 }
  0x29   : > { %s215_s27 = sshll.u32 %s205_s23, 4  ;;  %s214_s8 = scalar_lea.hbm %s17673_s2, %s12984_s9  ;;  %s216_s27 = int_to_ptr.vmem [resolvable:$true] %s215_s27 }
  0x2a   : > { %14961 = dma.hbm_to_vmem [thread:$0]  (!%p15352_p4), %s17784_s0, 256, %s175_s30, [#allocation3], %s17681_s10, %s17681_s10, %s15250_s11  }
  0x2b   : > { %s15395_s4 = scalar_select %p80_p3, %s15234_s17, %s17785_s15  }
  0x2c   : > { %s15400_s13 = scalar_lea.sflag [#allocation3], %s201_s14  ;;  %p15078_p8 = pneg %p15358_p2 }
  0x2d   : > { %s15089_s10 = scalar_lea.vmem %s216_s27, 1024  ;;  %s15251_s22 = smov [#allocation7]  }
  0x2e   : > { %p15090_p9 = scmp.ne.s32.totalorder %s216_s27, %s15089_s10  ;;  %s15094_s23 = sshll.u32 %s15251_s22, 4  ;;  %s15095_s23 = int_to_ptr.vmem [resolvable:$false] %s15094_s23 }
  0x2f   : > { %s15096_s15 = scalar_lea.vmem %s15095_s23, 2048  ;;  %p15097_p6 = scmp.lt.s32.totalorder %s216_s27, %s15095_s23 }
  0x30   : > { %p15092_p0 = pnand %p15090_p9, %p15078_p8  ;;  %p15098_p11 = scmp.lt.s32.totalorder %s15096_s15, %s15089_s10 }
  0x32   : > { %p15093_p1 = pneg %p15092_p0  ;;  %p15099_p13 = por %p15098_p11, %p15097_p6 }
  0x34   : > { %p15100_p5 = pnand %p15099_p13, %p15093_p1 }
  0x36   : > { %15103 = shalt.err (!%p15100_p5)
}
  0x37   : > { %s17786_s14 = smov 128   ;;  %s15252_s24 = smov [#allocation5]  }
  0x38   : > { %14968 = dma.hbm_to_vmem [thread:$0]  (!%p15358_p2), %s214_s8, 1024, %s216_s27, %s15400_s13, %s17786_s14, %s17786_s14, %s15250_s11  }
  0x39   : > { %s187_s12 = sshll.u32 %s15252_s24, 4  ;;  %s15416_s0 = scalar_lea.hbm %s17674_s3, %s12984_s9  ;;  %s188_s12 = int_to_ptr.vmem [resolvable:$true] %s187_s12 }
  0x3a   : > { %s229_s10 = scalar_lea.vmem [#allocation8], %s15388_s29  ;;  %s15115_s15 = scalar_lea.vmem %s188_s12, 256 }
  0x3b   : > { %s239_s23 = sshll.u32 %s229_s10, 4  ;;  %p15116_p3 = scmp.ne.s32.totalorder %s188_s12, %s15115_s15  ;;  %s240_s23 = int_to_ptr.vmem [resolvable:$true] %s239_s23 }
  0x3c   : > { %p15123_p1 = scmp.lt.s32.totalorder %s188_s12, %s188_s12  ;;  %p15124_p6 = scmp.lt.s32.totalorder %s15115_s15, %s15115_s15 }
  0x3d   : > { %p15118_p9 = pnand %p15116_p3, %p15052_p10 }
  0x3e   : > { %p15125_p11 = por %p15124_p6, %p15123_p1 }
  0x3f   : > { %p15119_p0 = pneg %p15118_p9 }
  0x41   : > { %p15126_p13 = pnand %p15125_p11, %p15119_p0 }
  0x43   : > { %15129 = shalt.err (!%p15126_p13)
}
  0x44   : > { %14964 = dma.hbm_to_vmem [thread:$0]  (!%p15352_p4), %s17672_s1, 256, %s188_s12, [#allocation6], %s17786_s14, %s17786_s14, %s15250_s11  }
  0x45   : > { %s15143_s29 = scalar_lea.vmem %s240_s23, 1024  ;;  %s15253_s8 = smov [#allocation8]  }
  0x46   : > { %p15144_p5 = scmp.ne.s32.totalorder %s240_s23, %s15143_s29  ;;  %s15148_s24 = sshll.u32 %s15253_s8, 4  ;;  %s15149_s24 = int_to_ptr.vmem [resolvable:$false] %s15148_s24 }
  0x47   : > { %s15150_s30 = scalar_lea.vmem %s15149_s24, 2048  ;;  %p15151_p9 = scmp.lt.s32.totalorder %s240_s23, %s15149_s24 }
  0x48   : > { %p15146_p10 = pnand %p15144_p5, %p15078_p8  ;;  %p15152_p0 = scmp.lt.s32.totalorder %s15150_s30, %s15143_s29 }
  0x4a   : > { %p15147_p3 = pneg %p15146_p10  ;;  %p15153_p1 = por %p15152_p0, %p15151_p9 }
  0x4c   : > { %p15154_p6 = pnand %p15153_p1, %p15147_p3 }
  0x4e   : > { %15157 = shalt.err (!%p15154_p6)
}
  0x4f   : > { %14971 = dma.hbm_to_vmem [thread:$0]  (!%p15358_p2), %s15416_s0, 1024, %s240_s23, %s15400_s13, %s17786_s14, %s17786_s14, %s15250_s11  }
  0x50   : > { %251 = sbr.rel (%p15342_p12) target bundleno = 1258 (0x4ea), region = 36 }
  0x55   : > { %p17787_p4 = scmp.eq.s32.totalorder %s15311_s21, 0 }
  0x57   : > { %15209 = dma.done.wait (%p17787_p4), [#allocation3], 256   ;;  %p17788_p8 = pmov %p17787_p4 }
  0x58   : > { %p17789_p11 = pmov %p17787_p4 }
  0x59   : > { %15211 = vsyncadd (%p17788_p8), [#allocation3], 4294967040 }
  0x5a   : > { %15213 = dma.done.wait (%p17789_p11), [#allocation6], 256   ;;  %p17790_p13 = pmov %p17787_p4 }
  0x5b   : > { %s261_s5 = sand.u32 1, %s15311_s21   ;;  %s15452_s0 = sand.u32 1, %s15230_s16  }
  0x5c   : > { %15215 = vsyncadd (%p17790_p13), [#allocation6], 4294967040  ;;  %s12977_s28 = sshll.u32 %s15452_s0, 6  ;;  %s262_s6 = scalar_lea.sflag [#allocation3], %s261_s5 }
  0x5d   : > { %s15457_s11 = scalar_lea.vmem [#allocation7], %s12977_s28 }
  0x5e   : > { %15217 = dma.done.wait (%p15328_p7), %s262_s6, 2048  }
  0x5f   : > { %15219 = vsyncadd (%p15328_p7), %s262_s6, 4294965248  ;;  %vm348_vm0 = vcmask 130048   ;;  %v347_v0 = vld [vmem:[#allocation5 + $0x8] sm:$0xff]  ;;  %v346_v1 = vld [vmem:[#allocation5] sm:$0xff]  ;;  %s15567_s21 = scalar_lea.vmem [#allocation8], %s12977_s28  ;;  %s12979_s25 = sshll.u32 %s15452_s0, 3 }
  0x60   : > { %v15464_v2 = vld [vmem:[%s15457_s11] sm:$0xff]  ;;  %v15466_v3 = vand.u32 4294901760, %v347_v0  ;;  %v15468_v4 = vand.u32 4294901760, %v346_v1  ;;  %v15473_v6 = vld [vmem:[%s15457_s11 + $0x8] sm:$0xff]  ;;  %v15476_v7 = vld [vmem:[%s15457_s11 + $0x10] sm:$0xff]  ;;  %s303_s13 = scalar_lea.vmem [#allocation9], %s12979_s25 }
  0x61   : > { %v350_v5 = vsel %vm348_vm0, %v15464_v2, 0  ;;  %v15480_v8 = vmul.f32 %v15464_v2, %v15464_v2  ;;  %v353_v10 = vsel %vm348_vm0, %v15473_v6, 0  ;;  %v356_v11 = vsel %vm348_vm0, %v15476_v7, 0  ;;  %v15489_v12 = vld [vmem:[%s15457_s11 + $0x18] sm:$0xff]  ;;  %v15492_v13 = vld [vmem:[%s15457_s11 + $0x20] sm:$0xff]  ;;  %v15495_v14 = vld [vmem:[%s15457_s11 + $0x28] sm:$0xff] }
  0x62   : > { %v15482_v9 = vand.u32 4294901760, %v350_v5  ;;  %13718 = vmatprep.subr.mxu0 %v15466_v3  ;;  %v15499_v15 = vsub.f32 %v347_v0, %v15466_v3  ;;  %v15501_v16 = vand.u32 4294901760, %v353_v10  ;;  %v15504_v17 = vsub.f32 %v346_v1, %v15468_v4  ;;  %v15560_v39 = vld [vmem:[%s15457_s11 + $0x30] sm:$0xff]  ;;  %v15563_v40 = vld [vmem:[%s15457_s11 + $0x38] sm:$0xff]  ;;  %v15570_v42 = vld [vmem:[%s15567_s21] sm:$0xff]  ;;  %s12838_s14 = sshll.u32 %s303_s13, 4  ;;  %s17626_s14 = int_to_ptr.vmem [resolvable:$true] %s12838_s14 }
  0x63   : > { %v15506_v18 = vand.u32 4294901760, %v356_v11  ;;  %13719 = vmatpush3.msra.mxu0 %v15466_v3  ;;  %v359_v20 = vsel %vm348_vm0, %v15489_v12, 0  ;;  %v362_v21 = vsel %vm348_vm0, %v15492_v13, 0  ;;  %v365_v22 = vsel %vm348_vm0, %v15495_v14, 0  ;;  %v15582_v50 = vld [vmem:[%s15567_s21 + $0x8] sm:$0xff]  ;;  %v15585_v51 = vld [vmem:[%s15567_s21 + $0x10] sm:$0xff] }
  0x64   : > { %17791 = vst [vmem:[#allocation16_spill] sm:$0xff] %v15482_v9  ;;  %17792 = vst [vmem:[#allocation17_spill] sm:$0xff] %v15501_v16  ;;  %v15510_v19 = vsub.f32 %v350_v5, %v15482_v9  ;;  %13786 = vmatprep.mubr.f32.mxu1 %v15482_v9  ;;  %13720 = vmatprep.subr.mxu0 %v15468_v4  ;;  %v15521_v23 = vand.u32 4294901760, %v15499_v15  ;;  %v15524_v24 = vsub.f32 %v353_v10, %v15501_v16  ;;  %v15603_v60 = vld [vmem:[%s15567_s21 + $0x18] sm:$0xff]  ;;  %v15614_v1 = vld [vmem:[%s15567_s21 + $0x20] sm:$0xff]  ;;  %s12981_s12 = sshll.u32 %s15238_s18, 7 }
  0x65   : > { %17793 = vst [vmem:[#allocation18_spill] sm:$0xff] %v15506_v18  ;;  %v15527_v25 = vand.u32 4294901760, %v15504_v17  ;;  %v15530_v26 = vsub.f32 %v356_v11, %v15506_v18  ;;  %13721 = vmatpush3.msra.mxu0 %v15468_v4  ;;  %v15534_v28 = vand.u32 4294901760, %v359_v20  ;;  %v15536_v29 = vand.u32 4294901760, %v362_v21  ;;  %v15617_v5 = vld [vmem:[%s15567_s21 + $0x28] sm:$0xff]  ;;  %s18021_s15 = sld [smem:[#allocation69_spill]] }
  0x66   : > { %v17693_v27 = vand.u32 4294901760, %v15510_v19  ;;  %v15538_v30 = vand.u32 4294901760, %v365_v22  ;;  %v968_v31 = vsub.f32 %v15499_v15, %v15521_v23  ;;  %v17692_v32 = vand.u32 4294901760, %v15524_v24  ;;  %13846 = vmatprep.subr.mxu0 %v15499_v15  ;;  %s12824_s29 = scalar_lea.sflag [#allocation4], %s15452_s0  ;;  %s15158_s8 = scalar_lea.vmem %s17626_s14, 128 }
  0x67   : > { %17794 = vst [vmem:[#allocation19_spill] sm:$0xff] %v15534_v28  ;;  %17795 = vst [vmem:[#allocation20_spill] sm:$0xff] %v15536_v29  ;;  %v975_v33 = vsub.f32 %v15504_v17, %v15527_v25  ;;  %v17691_v34 = vand.u32 4294901760, %v15530_v26  ;;  %v15551_v36 = vsub.f32 %v359_v20, %v15534_v28  ;;  %v15554_v37 = vsub.f32 %v362_v21, %v15536_v29  ;;  %p15159_p7 = scmp.ne.s32.totalorder %s17626_s14, %s15158_s8  ;;  %p18023_p12 = scmp.ne.s32.totalorder %s17777_s26, 0 }
  0x68   : > { %17796 = vst [vmem:[#allocation21_spill] sm:$0xff] %v15538_v30  ;;  %v539_v35 = vsub.f32 %v15510_v19, %v17693_v27  ;;  %v15557_v38 = vsub.f32 %v365_v22, %v15538_v30  ;;  %v969_v41 = vand.u32 4294901760, %v968_v31  ;;  %v549_v43 = vsub.f32 %v15524_v24, %v17692_v32  ;;  %s15254_s24 = smov [#allocation9]  }
  0x69   : > { %v976_v44 = vand.u32 4294901760, %v975_v33  ;;  %v559_v45 = vsub.f32 %v15530_v26, %v17691_v34  ;;  %v17690_v47 = vand.u32 4294901760, %v15551_v36  ;;  %v17686_v48 = vand.u32 4294901760, %v15554_v37  ;;  %p15160_p2 = pnand %p15159_p7, %p18023_p12  ;;  %s15162_s18 = sshll.u32 %s15254_s24, 4  ;;  %s15163_s18 = int_to_ptr.vmem [resolvable:$false] %s15162_s18 }
  0x6a   : > { %v540_v46 = vand.u32 4294901760, %v539_v35  ;;  %v17685_v49 = vand.u32 4294901760, %v15557_v38  ;;  %13782 = vmatprep.subr.mxu1 %v969_v41  ;;  %v550_v52 = vand.u32 4294901760, %v549_v43  ;;  %v368_v54 = vsel %vm348_vm0, %v15560_v39, 0  ;;  %s15164_s30 = scalar_lea.vmem %s15163_s18, 256  ;;  %p15165_p10 = scmp.lt.s32.totalorder %s17626_s14, %s15163_s18 }
  0x6b   : > { %v560_v53 = vand.u32 4294901760, %v559_v45  ;;  %v371_v55 = vsel %vm348_vm0, %v15563_v40, 0  ;;  %13783 = vmatpush3.msra.mxu1 %v969_v41  ;;  %v569_v56 = vsub.f32 %v15551_v36, %v17690_v47  ;;  %v579_v57 = vsub.f32 %v15554_v37, %v17686_v48  ;;  %s18022_s27 = smov %s18021_s15  ;;  %s12836_s9 = scalar_lea.hbm %s18021_s15, %s12981_s12 }
  0x6c   : > { %13722 = vmatprep.mubr.f32.mxu0 %v540_v46  ;;  %v589_v58 = vsub.f32 %v15557_v38, %v17685_v49  ;;  %v15600_v59 = vand.u32 4294901760, %v368_v54  ;;  %13784 = vmatprep.subr.mxu1 %v976_v44  ;;  %v15605_v61 = vand.u32 4294901760, %v371_v55  ;;  %v374_v62 = vsel %vm348_vm0, %v15570_v42, 0  ;;  %p15161_p5 = pneg %p15160_p2  ;;  %p15166_p3 = scmp.lt.s32.totalorder %s15164_s30, %s15158_s8 }
  0x6d   : > { %13723 = vmatmul.mubr.f32.vlgmr.msra.gmra.mxu0 %v550_v52  ;;  %v377_v63 = vsel %vm348_vm0, %v15582_v50, 0  ;;  %v380_v0 = vsel %vm348_vm0, %v15585_v51, 0  ;;  %13785 = vmatpush3.msra.mxu1 %v976_v44  ;;  %v570_v10 = vand.u32 4294901760, %v569_v56  ;;  %v580_v11 = vand.u32 4294901760, %v579_v57 }
  0x6e   : > { %17797 = vst [vmem:[#allocation22_spill] sm:$0xff] %v15600_v59  ;;  %17798 = vst [vmem:[#allocation23_spill] sm:$0xff] %v15605_v61  ;;  %13725 = vmatprep.mubr.f32.mxu0 %v560_v53  ;;  %v590_v20 = vand.u32 4294901760, %v589_v58  ;;  %v15620_v21 = vsub.f32 %v368_v54, %v15600_v59  ;;  %13787 = vmatmul.mubr.f32.vlgmr.msra.gmra.mxu1 %v15501_v16  ;;  %v15624_v22 = vsub.f32 %v371_v55, %v15605_v61  ;;  %p15167_p9 = por %p15166_p3, %p15165_p10 }
  0x6f   : > { %v15626_v31 = vand.u32 4294901760, %v374_v62  ;;  %v15628_v33 = vand.u32 4294901760, %v377_v63  ;;  %v15630_v35 = vand.u32 4294901760, %v380_v0  ;;  %13847 = vmatpush3.msra.mxu0 %v15499_v15  ;;  %13789 = vmatprep.mubr.f32.mxu1 %v15506_v18  ;;  %v383_v43 = vsel %vm348_vm0, %v15603_v60, 0 }
  0x70   : > { %v17683_v41 = vand.u32 4294901760, %v15620_v21  ;;  %v386_v44 = vsel %vm348_vm0, %v15614_v1, 0  ;;  %v389_v45 = vsel %vm348_vm0, %v15617_v5, 0  ;;  %13848 = vmatprep.subr.mxu0 %v15504_v17  ;;  %v17684_v46 = vand.u32 4294901760, %v15624_v22  ;;  %13910 = vmatprep.subr.mxu1 %v15466_v3  ;;  %p15168_p0 = pnand %p15167_p9, %p15161_p5 }
  0x71   : > { %17799 = vst [vmem:[#allocation24_spill] sm:$0xff] %v15626_v31  ;;  %17800 = vst [vmem:[#allocation25_spill] sm:$0xff] %v15628_v33  ;;  %13726 = vmatmul.mubr.f32.gmra.mxu0 %v570_v10  ;;  %v15644_v15 = vsub.f32 %v374_v62, %v15626_v31  ;;  %v15647_v52 = vsub.f32 %v377_v63, %v15628_v33  ;;  %v15650_v53 = vsub.f32 %v380_v0, %v15630_v35  ;;  %v15671_v10 = vld [vmem:[%s15567_s21 + $0x30] sm:$0xff] }
  0x72   : > { %17801 = vst [vmem:[#allocation26_spill] sm:$0xff] %v15630_v35  ;;  %13728 = vmatprep.mubr.f32.mxu0 %v580_v11  ;;  %v599_v54 = vsub.f32 %v15620_v21, %v17683_v41  ;;  %v15656_v55 = vand.u32 4294901760, %v383_v43  ;;  %v15658_v56 = vand.u32 4294901760, %v386_v44  ;;  %v15660_v57 = vand.u32 4294901760, %v389_v45  ;;  %13849 = vmatpush3.msra.mxu0 %v15504_v17 }
  0x73   : > { %13790 = vmatmul.mubr.f32.gmra.mxu1 %v15534_v28  ;;  %v609_v58 = vsub.f32 %v15624_v22, %v17684_v46  ;;  %v17687_v62 = vand.u32 4294901760, %v15644_v15  ;;  %v17688_v63 = vand.u32 4294901760, %v15647_v52  ;;  %v17689_v0 = vand.u32 4294901760, %v15650_v53  ;;  %13974 = vmatprep.subr.mxu0 %v15521_v23 }
  0x74   : > { %17802 = vst [vmem:[#allocation27_spill] sm:$0xff] %v15656_v55  ;;  %17803 = vst [vmem:[#allocation28_spill] sm:$0xff] %v15658_v56  ;;  %13792 = vmatprep.mubr.f32.mxu1 %v15536_v29  ;;  %v600_v17 = vand.u32 4294901760, %v599_v54  ;;  %v15676_v11 = vsub.f32 %v383_v43, %v15656_v55  ;;  %v15679_v41 = vsub.f32 %v386_v44, %v15658_v56  ;;  %13911 = vmatpush3.msra.mxu1 %v15466_v3  ;;  %v15695_v44 = vld [vmem:[%s15567_s21 + $0x38] sm:$0xff] }
  0x75   : > { %17804 = vst [vmem:[#allocation29_spill] sm:$0xff] %v15660_v57  ;;  %v15682_v46 = vsub.f32 %v389_v45, %v15660_v57  ;;  %13729 = vmatmul.mubr.f32.gmra.mxu0 %v590_v20  ;;  %v610_v49 = vand.u32 4294901760, %v609_v58  ;;  %v619_v48 = vsub.f32 %v15644_v15, %v17687_v62  ;;  %v629_v54 = vsub.f32 %v15647_v52, %v17688_v63 }
  0x76   : > { %v639_v43 = vsub.f32 %v15650_v53, %v17689_v0  ;;  %13912 = vmatprep.subr.mxu1 %v15468_v4  ;;  %13731 = vmatprep.mubr.f32.mxu0 %v600_v17  ;;  %v17694_v20 = vand.u32 4294901760, %v15676_v11  ;;  %v17697_v45 = vand.u32 4294901760, %v15679_v41  ;;  %v392_v62 = vsel %vm348_vm0, %v15671_v10, 0 }
  0x77   : > { %17805 = vst [vmem:[#allocation30_spill] sm:$0xff] %v15682_v46  ;;  %13913 = vmatpush3.msra.mxu1 %v15468_v4  ;;  %v620_v63 = vand.u32 4294901760, %v619_v48  ;;  %v630_v0 = vand.u32 4294901760, %v629_v54  ;;  %v15705_v47 = vand.u32 4294901760, %v392_v62  ;;  %v395_v27 = vsel %vm348_vm0, %v15695_v44, 0 }
  0x78   : > { %13793 = vmatmul.mubr.f32.gmra.mxu1 %v15538_v30  ;;  %14038 = vmatprep.subr.mxu1 %v15466_v3  ;;  %v640_v17 = vand.u32 4294901760, %v639_v43  ;;  %v649_v34 = vsub.f32 %v15676_v11, %v17694_v20  ;;  %v659_v32 = vsub.f32 %v15679_v41, %v17697_v45  ;;  %v15720_v54 = vand.u32 4294901760, %v395_v27 }
  0x79   : > { %17806 = vst [vmem:[#allocation31_spill] sm:$0xff] %v15705_v47  ;;  %13795 = vmatprep.mubr.f32.mxu1 %v15600_v59  ;;  %13732 = vmatmul.mubr.f32.gmra.mxu0 %v610_v49  ;;  %v15718_v48 = vsub.f32 %v392_v62, %v15705_v47  ;;  %v398_v43 = vsel %vm348_vm0, %v15480_v8, 0  ;;  %v323_v58 = vmul.f32 %v15473_v6, %v15473_v6  ;;  %v17809_v45 = vand.u32 4294901760, %v15682_v46 }
  0x7a   : > { %17808 = vst [vmem:[#allocation33_spill] sm:$0xff] %v15720_v54  ;;  %13734 = vmatprep.mubr.f32.mxu0 %v620_v63  ;;  %v650_v20 = vand.u32 4294901760, %v649_v34  ;;  %v660_v59 = vand.u32 4294901760, %v659_v32  ;;  %v15729_v29 = vand.u32 4294901760, %v398_v43  ;;  %v15734_v62 = vsub.f32 %v395_v27, %v15720_v54 }
  0x7b   : > { %17807 = vst [vmem:[#allocation32_spill] sm:$0xff] %v15718_v48  ;;  %v669_v30 = vsub.f32 %v15682_v46, %v17809_v45  ;;  %v401_v8 = vsel %vm348_vm0, %v323_v58, 0  ;;  %v324_v63 = vmul.f32 %v15476_v7, %v15476_v7  ;;  %v325_v45 = vmul.f32 %v15489_v12, %v15489_v12 }
  0x7c   : > { %17810 = vst [vmem:[#allocation34_spill] sm:$0xff] %v15729_v29  ;;  %13796 = vmatmul.mubr.f32.gmra.mxu1 %v15605_v61  ;;  %17811 = vst [vmem:[#allocation35_spill] sm:$0xff] %v15734_v62  ;;  %v15741_v32 = vsub.f32 %v398_v43, %v15729_v29  ;;  %v15743_v34 = vand.u32 4294901760, %v401_v8  ;;  %v326_v49 = vmul.f32 %v15492_v13, %v15492_v13  ;;  %v17814_v27 = vand.u32 4294901760, %v15718_v48 }
  0x7d   : > { %13798 = vmatprep.mubr.f32.mxu1 %v15626_v31  ;;  %13735 = vmatmul.mubr.f32.gmra.mxu0 %v630_v0  ;;  %v17718_v61 = vand.u32 4294901760, %v15734_v62  ;;  %v404_v31 = vsel %vm348_vm0, %v324_v63, 0  ;;  %v327_v43 = vmul.f32 %v15495_v14, %v15495_v14  ;;  %v407_v0 = vsel %vm348_vm0, %v325_v45, 0 }
  0x7e   : > { %17812 = vst [vmem:[#allocation36_spill] sm:$0xff] %v15741_v32  ;;  %17813 = vst [vmem:[#allocation37_spill] sm:$0xff] %v15743_v34  ;;  %v679_v58 = vsub.f32 %v15718_v48, %v17814_v27  ;;  %13737 = vmatprep.mubr.f32.mxu0 %v640_v17  ;;  %v17721_v28 = vand.u32 4294901760, %v15741_v32  ;;  %v15758_v18 = vsub.f32 %v401_v8, %v15743_v34  ;;  %v15760_v16 = vand.u32 4294901760, %v404_v31 }
  0x7f   : > { %v670_v27 = vand.u32 4294901760, %v669_v30  ;;  %v15764_v9 = vand.u32 4294901760, %v407_v0  ;;  %v410_v63 = vsel %vm348_vm0, %v326_v49, 0  ;;  %v689_v17 = vsub.f32 %v15734_v62, %v17718_v61 }
  0x80   : > { %17815 = vst [vmem:[#allocation38_spill] sm:$0xff] %v15758_v18  ;;  %17816 = vst [vmem:[#allocation39_spill] sm:$0xff] %v15760_v16  ;;  %13799 = vmatmul.mubr.f32.gmra.mxu1 %v15628_v33  ;;  %v699_v8 = vsub.f32 %v15741_v32, %v17721_v28  ;;  %v15775_v48 = vsub.f32 %v404_v31, %v15760_v16  ;;  %v15777_v45 = vand.u32 4294901760, %v410_v63  ;;  %v680_v33 = vand.u32 4294901760, %v679_v58 }
  0x81   : > { %17817 = vst [vmem:[#allocation40_spill] sm:$0xff] %v15764_v9  ;;  %13801 = vmatprep.mubr.f32.mxu1 %v15630_v35  ;;  %13738 = vmatmul.mubr.f32.gmra.mxu0 %v650_v20  ;;  %v15781_v49 = vsub.f32 %v407_v0, %v15764_v9  ;;  %v413_v35 = vsel %vm348_vm0, %v327_v43, 0  ;;  %v328_v61 = vmul.f32 %v15560_v39, %v15560_v39 }
  0x82   : > { %17818 = vst [vmem:[#allocation41_spill] sm:$0xff] %v15775_v48  ;;  %17819 = vst [vmem:[#allocation42_spill] sm:$0xff] %v15777_v45  ;;  %13740 = vmatprep.mubr.f32.mxu0 %v660_v59  ;;  %v15788_v31 = vsub.f32 %v410_v63, %v15777_v45  ;;  %v15792_v30 = vand.u32 4294901760, %v413_v35  ;;  %v329_v43 = vmul.f32 %v15563_v40, %v15563_v40  ;;  %v690_v59 = vand.u32 4294901760, %v689_v17 }
  0x83   : > { %17820 = vst [vmem:[#allocation43_spill] sm:$0xff] %v15781_v49  ;;  %v416_v0 = vsel %vm348_vm0, %v328_v61, 0  ;;  %v700_v58 = vand.u32 4294901760, %v699_v8  ;;  %v17822_v63 = vand.u32 4294901760, %v15758_v18  ;;  %v330_v61 = vmul.f32 %v15570_v42, %v15570_v42 }
  0x84   : > { %17821 = vst [vmem:[#allocation44_spill] sm:$0xff] %v15788_v31  ;;  %13802 = vmatmul.mubr.f32.gmra.mxu1 %v15656_v55  ;;  %v15798_v32 = vand.u32 4294901760, %v416_v0  ;;  %v15804_v20 = vsub.f32 %v413_v35, %v15792_v30  ;;  %v419_v55 = vsel %vm348_vm0, %v329_v43, 0  ;;  %v17826_v35 = vand.u32 4294901760, %v15781_v49 }
  0x85   : > { %13804 = vmatprep.mubr.f32.mxu1 %v15658_v56  ;;  %13741 = vmatmul.mubr.f32.gmra.mxu0 %v670_v27  ;;  %v709_v28 = vsub.f32 %v15758_v18, %v17822_v63  ;;  %v17824_v56 = vand.u32 4294901760, %v15775_v48  ;;  %v15816_v62 = vand.u32 4294901760, %v419_v55  ;;  %v422_v63 = vsel %vm348_vm0, %v330_v61, 0 }
  0x86   : > { %17823 = vst [vmem:[#allocation45_spill] sm:$0xff] %v15804_v20  ;;  %13743 = vmatprep.mubr.f32.mxu0 %v680_v33  ;;  %v15814_v27 = vsub.f32 %v416_v0, %v15798_v32  ;;  %v729_v43 = vsub.f32 %v15781_v49, %v17826_v35  ;;  %v331_v33 = vmul.f32 %v15582_v50, %v15582_v50 }
  0x87   : > { %v719_v17 = vsub.f32 %v15775_v48, %v17824_v56  ;;  %v15829_v8 = vsub.f32 %v419_v55, %v15816_v62  ;;  %v15831_v48 = vand.u32 4294901760, %v422_v63  ;;  %v332_v61 = vmul.f32 %v15585_v51, %v15585_v51 }
  0x88   : > { %17825 = vst [vmem:[#allocation46_spill] sm:$0xff] %v15814_v27  ;;  %13805 = vmatmul.mubr.f32.gmra.mxu1 %v15660_v57  ;;  %v710_v57 = vand.u32 4294901760, %v709_v28  ;;  %v425_v35 = vsel %vm348_vm0, %v331_v33, 0  ;;  %v333_v49 = vmul.f32 %v15603_v60, %v15603_v60  ;;  %v17828_v56 = vand.u32 4294901760, %v15788_v31 }
  0x89   : > { %13807 = vmatprep.mubr.f32.mxu1 %v15705_v47  ;;  %17827 = vst [vmem:[#allocation47_spill] sm:$0xff] %v15829_v8  ;;  %13744 = vmatmul.mubr.f32.gmra.mxu0 %v690_v59  ;;  %v720_v47 = vand.u32 4294901760, %v719_v17  ;;  %v15842_v55 = vsub.f32 %v422_v63, %v15831_v48  ;;  %v15844_v18 = vand.u32 4294901760, %v425_v35  ;;  %v730_v28 = vand.u32 4294901760, %v729_v43 }
  0x8a   : > { %13746 = vmatprep.mubr.f32.mxu0 %v700_v58  ;;  %v739_v0 = vsub.f32 %v15788_v31, %v17828_v56  ;;  %v428_v59 = vsel %vm348_vm0, %v332_v61, 0  ;;  %v431_v33 = vsel %vm348_vm0, %v333_v49, 0  ;;  %v334_v58 = vmul.f32 %v15614_v1, %v15614_v1 }
  0x8b   : > { %17829 = vst [vmem:[#allocation48_spill] sm:$0xff] %v15842_v55  ;;  %v17830_v17 = vand.u32 4294901760, %v15804_v20  ;;  %v17831_v63 = vand.u32 4294901760, %v15814_v27  ;;  %v15860_v43 = vsub.f32 %v425_v35, %v15844_v18  ;;  %v15862_v49 = vand.u32 4294901760, %v428_v59 }
  0x8c   : > { %13808 = vmatmul.mubr.f32.gmra.mxu1 %v15720_v54  ;;  %v15864_v61 = vand.u32 4294901760, %v431_v33  ;;  %v335_v46 = vmul.f32 %v15617_v5, %v15617_v5 }
  0x8d   : > { %13810 = vmatprep.mubr.f32.mxu1 %v15729_v29  ;;  %v749_v56 = vsub.f32 %v15804_v20, %v17830_v17  ;;  %v759_v31 = vsub.f32 %v15814_v27, %v17831_v63  ;;  %13747 = vmatmul.mubr.f32.gmra.mxu0 %v710_v57  ;;  %v434_v29 = vsel %vm348_vm0, %v334_v58, 0  ;;  %v338_v17 = vmul.f32 %v15570_v42, %v15464_v2 }
  0x8e   : > { %13749 = vmatprep.mubr.f32.mxu0 %v720_v47  ;;  %v740_v63 = vand.u32 4294901760, %v739_v0  ;;  %v15872_v27 = vand.u32 4294901760, %v434_v29  ;;  %v15877_v35 = vsub.f32 %v428_v59, %v15862_v49  ;;  %v437_v58 = vsel %vm348_vm0, %v335_v46, 0 }
  0x8f   : > { %v336_v20 = vmul.f32 %v15671_v10, %v15671_v10  ;;  %v750_v2 = vand.u32 4294901760, %v749_v56  ;;  %v15884_v42 = vsub.f32 %v431_v33, %v15864_v61  ;;  %v15886_v47 = vand.u32 4294901760, %v437_v58 }
  0x90   : > { %13811 = vmatmul.mubr.f32.gmra.mxu1 %v15743_v34  ;;  %v760_v0 = vand.u32 4294901760, %v759_v31  ;;  %v17832_v57 = vand.u32 4294901760, %v15829_v8  ;;  %v337_v46 = vmul.f32 %v15695_v44, %v15695_v44  ;;  %v15899_v34 = vsub.f32 %v434_v29, %v15872_v27 }
  0x91   : > { %13813 = vmatprep.mubr.f32.mxu1 %v15760_v16  ;;  %13750 = vmatmul.mubr.f32.gmra.mxu0 %v730_v28  ;;  %v440_v54 = vsel %vm348_vm0, %v336_v20, 0  ;;  %v17833_v16 = vand.u32 4294901760, %v15842_v55  ;;  %v17834_v28 = vand.u32 4294901760, %v15860_v43  ;;  %v15912_v33 = vsub.f32 %v437_v58, %v15886_v47 }
  0x92   : > { %v769_v59 = vsub.f32 %v15829_v8, %v17832_v57  ;;  %13752 = vmatprep.mubr.f32.mxu0 %v740_v63  ;;  %v15901_v31 = vand.u32 4294901760, %v440_v54  ;;  %v443_v57 = vsel %vm348_vm0, %v337_v46, 0  ;;  %v446_v63 = vsel %vm348_vm0, %v338_v17, 0 }
  0x93   : > { %v779_v56 = vsub.f32 %v15842_v55, %v17833_v16  ;;  %v789_v20 = vsub.f32 %v15860_v43, %v17834_v28  ;;  %v15917_v55 = vand.u32 4294901760, %v443_v57  ;;  %v15919_v8 = vand.u32 4294901760, %v446_v63 }
  0x94   : > { %13814 = vmatmul.mubr.f32.gmra.mxu1 %v15764_v9  ;;  %v15915_v29 = vsub.f32 %v440_v54, %v15901_v31  ;;  %v770_v9 = vand.u32 4294901760, %v769_v59  ;;  %v339_v46 = vmul.f32 %v15582_v50, %v15473_v6  ;;  %v17835_v28 = vand.u32 4294901760, %v15877_v35 }
  0x95   : > { %13816 = vmatprep.mubr.f32.mxu1 %v15777_v45  ;;  %13753 = vmatmul.mubr.f32.gmra.mxu0 %v750_v2  ;;  %v780_v17 = vand.u32 4294901760, %v779_v56  ;;  %v17766_v58 = vand.u32 4294901760, %v15899_v34  ;;  %v790_v54 = vand.u32 4294901760, %v789_v20  ;;  %v340_v2 = vmul.f32 %v15585_v51, %v15476_v7 }
  0x96   : > { %13755 = vmatprep.mubr.f32.mxu0 %v760_v0  ;;  %v799_v16 = vsub.f32 %v15877_v35, %v17835_v28  ;;  %v449_v45 = vsel %vm348_vm0, %v339_v46, 0  ;;  %v341_v59 = vmul.f32 %v15603_v60, %v15489_v12  ;;  %v17836_v6 = vand.u32 4294901760, %v15884_v42 }
  0x97   : > { %v17764_v0 = vand.u32 4294901760, %v15912_v33  ;;  %v17765_v56 = vand.u32 4294901760, %v15915_v29  ;;  %v15940_v20 = vsub.f32 %v443_v57, %v15917_v55  ;;  %v15943_v46 = vsub.f32 %v446_v63, %v15919_v8 }
  0x98   : > { %13817 = vmatmul.mubr.f32.gmra.mxu1 %v15792_v30  ;;  %v809_v50 = vsub.f32 %v15884_v42, %v17836_v6  ;;  %v15945_v7 = vand.u32 4294901760, %v449_v45  ;;  %v452_v12 = vsel %vm348_vm0, %v340_v2, 0  ;;  %v342_v51 = vmul.f32 %v15614_v1, %v15492_v13 }
  0x99   : > { %13819 = vmatprep.mubr.f32.mxu1 %v15798_v32  ;;  %13756 = vmatmul.mubr.f32.gmra.mxu0 %v770_v9  ;;  %v800_v60 = vand.u32 4294901760, %v799_v16  ;;  %v819_v28 = vsub.f32 %v15899_v34, %v17766_v58  ;;  %v15953_v6 = vand.u32 4294901760, %v452_v12  ;;  %v455_v9 = vsel %vm348_vm0, %v341_v59, 0 }
  0x9a   : > { %13758 = vmatprep.mubr.f32.mxu0 %v780_v17  ;;  %v458_v57 = vsel %vm348_vm0, %v342_v51, 0  ;;  %v343_v63 = vmul.f32 %v15617_v5, %v15495_v14  ;;  %v810_v13 = vand.u32 4294901760, %v809_v50  ;;  %v829_v1 = vsub.f32 %v15912_v33, %v17764_v0 }
  0x9b   : > { %v839_v16 = vsub.f32 %v15915_v29, %v17765_v56  ;;  %v17770_v17 = vand.u32 4294901760, %v15940_v20  ;;  %v17767_v2 = vand.u32 4294901760, %v15943_v46  ;;  %v15970_v59 = vsub.f32 %v449_v45, %v15945_v7 }
  0x9c   : > { %13820 = vmatmul.mubr.f32.gmra.mxu1 %v15816_v62  ;;  %v15972_v14 = vand.u32 4294901760, %v455_v9  ;;  %v344_v5 = vmul.f32 %v15671_v10, %v15560_v39  ;;  %v820_v50 = vand.u32 4294901760, %v819_v28  ;;  %v15977_v51 = vsub.f32 %v452_v12, %v15953_v6 }
  0x9d   : > { %13822 = vmatprep.mubr.f32.mxu1 %v15831_v48  ;;  %13759 = vmatmul.mubr.f32.gmra.mxu0 %v790_v54  ;;  %v15979_v0 = vand.u32 4294901760, %v458_v57  ;;  %v461_v56 = vsel %vm348_vm0, %v343_v63, 0  ;;  %v345_v45 = vmul.f32 %v15695_v44, %v15563_v40  ;;  %v830_v58 = vand.u32 4294901760, %v829_v1 }
  0x9e   : > { %13761 = vmatprep.mubr.f32.mxu0 %v800_v60  ;;  %v464_v54 = vsel %vm348_vm0, %v344_v5, 0  ;;  %v840_v39 = vand.u32 4294901760, %v839_v16  ;;  %v849_v10 = vsub.f32 %v15940_v20, %v17770_v17  ;;  %v859_v12 = vsub.f32 %v15943_v46, %v17767_v2 }
  0x9f   : > { %v17768_v60 = vand.u32 4294901760, %v15970_v59  ;;  %v15995_v28 = vsub.f32 %v455_v9, %v15972_v14  ;;  %v15997_v63 = vand.u32 4294901760, %v461_v56  ;;  %v17769_v40 = vand.u32 4294901760, %v15977_v51 }
  0xa0   : > { %13823 = vmatmul.mubr.f32.gmra.mxu1 %v15844_v18  ;;  %v16001_v44 = vsub.f32 %v458_v57, %v15979_v0  ;;  %v16003_v1 = vand.u32 4294901760, %v464_v54  ;;  %v850_v16 = vand.u32 4294901760, %v849_v10  ;;  %v860_v2 = vand.u32 4294901760, %v859_v12 }
  0xa1   : > { %13825 = vmatprep.mubr.f32.mxu1 %v15862_v49  ;;  %13762 = vmatmul.mubr.f32.gmra.mxu0 %v810_v13  ;;  %v467_v13 = vsel %vm348_vm0, %v345_v45, 0  ;;  %v869_v9 = vsub.f32 %v15970_v59, %v17768_v60  ;;  %v888_v5 = vand.u32 4294901760, %v15995_v28  ;;  %v879_v45 = vsub.f32 %v15977_v51, %v17769_v40 }
  0xa2   : > { %13764 = vmatprep.mubr.f32.mxu0 %v820_v50  ;;  %v16013_v50 = vsub.f32 %v461_v56, %v15997_v63  ;;  %v16015_v57 = vand.u32 4294901760, %v467_v13  ;;  %v17771_v10 = vand.u32 4294901760, %v16001_v44 }
  0xa3   : > { %v870_v56 = vand.u32 4294901760, %v869_v9  ;;  %v880_v40 = vand.u32 4294901760, %v879_v45 }
  0xa4   : > { %13826 = vmatmul.mubr.f32.gmra.mxu1 %v15864_v61  ;;  %v908_v12 = vand.u32 4294901760, %v16013_v50  ;;  %v16031_v60 = vsub.f32 %v467_v13, %v16015_v57 }
  0xa5   : > { %13828 = vmatprep.mubr.f32.mxu1 %v15872_v27  ;;  %13765 = vmatmul.mubr.f32.gmra.mxu0 %v830_v58  ;;  %v16022_v58 = vsub.f32 %v464_v54, %v16003_v1  ;;  %v899_v54 = vsub.f32 %v16001_v44, %v17771_v10 }
  0xa6   : > { %13767 = vmatprep.mubr.f32.mxu0 %v840_v39  ;;  %v889_v39 = vsub.f32 %v15995_v28, %v888_v5  ;;  %v909_v9 = vsub.f32 %v16013_v50, %v908_v12  ;;  %v928_v13 = vand.u32 4294901760, %v16031_v60 }
  0xa7   : > { %v918_v17 = vand.u32 4294901760, %v16022_v58 }
  0xa8   : > { %13829 = vmatmul.mubr.f32.gmra.mxu1 %v15886_v47  ;;  %v910_v10 = vand.u32 4294901760, %v909_v9  ;;  %v17855_v9 = vld [vmem:[#allocation36_spill] sm:$0xff] }
  0xa9   : > { %13831 = vmatprep.mubr.f32.mxu1 %v15901_v31  ;;  %13768 = vmatmul.mubr.f32.gmra.mxu0 %v850_v16  ;;  %v890_v16 = vand.u32 4294901760, %v889_v39  ;;  %v919_v45 = vsub.f32 %v16022_v58, %v918_v17 }
  0xaa   : > { %13770 = vmatprep.mubr.f32.mxu0 %v860_v2  ;;  %v900_v2 = vand.u32 4294901760, %v899_v54  ;;  %v17837_v54 = vand.u32 4294901760, %v15510_v19 }
  0xab   : > { %v920_v39 = vand.u32 4294901760, %v919_v45  ;;  %v17859_v45 = vld [vmem:[#allocation41_spill] sm:$0xff] }
  0xac   : > { %13832 = vmatmul.mubr.f32.gmra.mxu1 %v15917_v55 }
  0xad   : > { %13834 = vmatprep.mubr.f32.mxu1 %v15919_v8  ;;  %13771 = vmatmul.mubr.f32.gmra.mxu0 %v870_v56  ;;  %v929_v56 = vsub.f32 %v16031_v60, %v928_v13 }
  0xae   : > { %13773 = vmatprep.mubr.f32.mxu0 %v880_v40 }
  0xaf   : > { %v930_v40 = vand.u32 4294901760, %v929_v56 }
  0xb0   : > { %13835 = vmatmul.mubr.f32.gmra.mxu1 %v15945_v7 }
  0xb1   : > { %13837 = vmatprep.mubr.f32.mxu1 %v15953_v6  ;;  %13774 = vmatmul.mubr.f32.gmra.mxu0 %v890_v16  ;;  %v17839_v16 = vand.u32 4294901760, %v15530_v26 }
  0xb2   : > { %13776 = vmatprep.mubr.f32.mxu0 %v900_v2  ;;  %v17858_v2 = vld [vmem:[#allocation38_spill] sm:$0xff] }
  0xb3   : > { %v17860_v56 = vand.u32 4294901760, %v17858_v2 }
  0xb4   : > { %13838 = vmatmul.mubr.f32.gmra.mxu1 %v15972_v14 }
  0xb5   : > { %13840 = vmatprep.mubr.f32.mxu1 %v15979_v0  ;;  %13777 = vmatmul.mubr.f32.gmra.mxu0 %v910_v10  ;;  %v17838_v10 = vand.u32 4294901760, %v15524_v24 }
  0xb6   : > { %13779 = vmatprep.mubr.f32.mxu0 %v920_v39  ;;  %v17861_v39 = vand.u32 4294901760, %v17859_v45 }
  0xb8   : > { %13841 = vmatmul.mubr.f32.gmra.mxu1 %v15997_v63 }
  0xb9   : > { %13843 = vmatprep.mubr.f32.mxu1 %v16003_v1  ;;  %13780 = vmatmul.mubr.f32.gmra.mxu0 %v930_v40  ;;  %v17862_v40 = vld [vmem:[#allocation43_spill] sm:$0xff] }
  0xba   : > { %13850 = vmatprep.mubr.f32.mxu0 %v15510_v19  ;;  %v17840_v19 = vand.u32 4294901760, %v15551_v36 }
  0xbc   : > { %13844 = vmatmul.mubr.f32.gmra.mxu1 %v16015_v57 }
  0xbd   : > { %13914 = vmatprep.mubr.f32.mxu1 %v17837_v54  ;;  %13851 = vmatmul.mubr.f32.vlgmr.msra.gmra.mxu0 %v15524_v24  ;;  %v17842_v24 = vand.u32 4294901760, %v15557_v38  ;;  %v17863_v54 = vld [vmem:[#allocation44_spill] sm:$0xff] }
  0xbe   : > { %13853 = vmatprep.mubr.f32.mxu0 %v15530_v26  ;;  %13975 = vmatpush3.msra.mxu0 %v15521_v23  ;;  %v17841_v23 = vand.u32 4294901760, %v15554_v37  ;;  %v17845_v26 = vand.u32 4294901760, %v15644_v15 }
  0xbf   : > { %13976 = vmatprep.subr.mxu0 %v15527_v25 }
  0xc0   : > { %13915 = vmatmul.mubr.f32.vlgmr.msra.gmra.mxu1 %v17838_v10  ;;  %13977 = vmatpush3.msra.mxu0 %v15527_v25  ;;  %v17844_v25 = vand.u32 4294901760, %v15624_v22  ;;  %v17864_v10 = vand.u32 4294901760, %v17862_v40 }
  0xc1   : > { %13917 = vmatprep.mubr.f32.mxu1 %v17839_v16  ;;  %13854 = vmatmul.mubr.f32.gmra.mxu0 %v15551_v36  ;;  %v17847_v36 = vand.u32 4294901760, %v15650_v53  ;;  %v17865_v16 = vand.u32 4294901760, %v17863_v54 }
  0xc2   : > { %14039 = vmatpush3.msra.mxu1 %v15466_v3  ;;  %13856 = vmatprep.mubr.f32.mxu0 %v15554_v37  ;;  %v17843_v3 = vand.u32 4294901760, %v15620_v21  ;;  %v17848_v37 = vand.u32 4294901760, %v15676_v11 }
  0xc3   : > { %14040 = vmatprep.subr.mxu1 %v15468_v4 }
  0xc4   : > { %13918 = vmatmul.mubr.f32.gmra.mxu1 %v17840_v19  ;;  %v17866_v19 = vld [vmem:[#allocation45_spill] sm:$0xff] }
  0xc5   : > { %13920 = vmatprep.mubr.f32.mxu1 %v17841_v23  ;;  %14041 = vmatpush3.msra.mxu1 %v15468_v4  ;;  %v17846_v4 = vand.u32 4294901760, %v15647_v52  ;;  %v17867_v23 = vld [vmem:[#allocation46_spill] sm:$0xff] }
  0xc6   : > { %13857 = vmatmul.mubr.f32.gmra.mxu0 %v15557_v38  ;;  %v17849_v38 = vand.u32 4294901760, %v15679_v41 }
  0xc7   : > { %13859 = vmatprep.mubr.f32.mxu0 %v15620_v21  ;;  %v17850_v21 = vld [vmem:[#allocation30_spill] sm:$0xff] }
  0xc8   : > { %13921 = vmatmul.mubr.f32.gmra.mxu1 %v17842_v24  ;;  %v17868_v24 = vand.u32 4294901760, %v17866_v19 }
  0xc9   : > { %13923 = vmatprep.mubr.f32.mxu1 %v17843_v3  ;;  %v17869_v3 = vand.u32 4294901760, %v17867_v23 }
  0xca   : > { %13860 = vmatmul.mubr.f32.gmra.mxu0 %v15624_v22  ;;  %v17851_v22 = vld [vmem:[#allocation32_spill] sm:$0xff] }
  0xcb   : > { %13862 = vmatprep.mubr.f32.mxu0 %v15644_v15  ;;  %v17852_v15 = vand.u32 4294901760, %v17850_v21 }
  0xcc   : > { %13924 = vmatmul.mubr.f32.gmra.mxu1 %v17844_v25  ;;  %v17870_v25 = vld [vmem:[#allocation47_spill] sm:$0xff] }
  0xcd   : > { %13926 = vmatprep.mubr.f32.mxu1 %v17845_v26  ;;  %v17871_v26 = vld [vmem:[#allocation48_spill] sm:$0xff] }
  0xce   : > { %13863 = vmatmul.mubr.f32.gmra.mxu0 %v15647_v52  ;;  %v17853_v52 = vand.u32 4294901760, %v17851_v22 }
  0xcf   : > { %13865 = vmatprep.mubr.f32.mxu0 %v15650_v53  ;;  %v17854_v53 = vld [vmem:[#allocation35_spill] sm:$0xff] }
  0xd0   : > { %13927 = vmatmul.mubr.f32.gmra.mxu1 %v17846_v4  ;;  %v17872_v4 = vand.u32 4294901760, %v17870_v25 }
  0xd1   : > { %13929 = vmatprep.mubr.f32.mxu1 %v17847_v36  ;;  %v17873_v36 = vand.u32 4294901760, %v17871_v26 }
  0xd2   : > { %13866 = vmatmul.mubr.f32.gmra.mxu0 %v15676_v11  ;;  %v17856_v11 = vand.u32 4294901760, %v17854_v53 }
  0xd3   : > { %13868 = vmatprep.mubr.f32.mxu0 %v15679_v41  ;;  %v17857_v41 = vand.u32 4294901760, %v17855_v9 }
  0xd4   : > { %13930 = vmatmul.mubr.f32.gmra.mxu1 %v17848_v37  ;;  %v17874_v37 = vand.u32 4294901760, %v15860_v43 }
  0xd5   : > { %13932 = vmatprep.mubr.f32.mxu1 %v17849_v38  ;;  %v17875_v38 = vand.u32 4294901760, %v15877_v35 }
  0xd6   : > { %13869 = vmatmul.mubr.f32.gmra.mxu0 %v17850_v21  ;;  %v17876_v21 = vand.u32 4294901760, %v15884_v42 }
  0xd7   : > { %13871 = vmatprep.mubr.f32.mxu0 %v17851_v22  ;;  %v17877_v22 = vand.u32 4294901760, %v15899_v34 }
  0xd8   : > { %13933 = vmatmul.mubr.f32.gmra.mxu1 %v17852_v15  ;;  %v17897_v15 = vld [vmem:[#allocation28_spill] sm:$0xff] }
  0xd9   : > { %13935 = vmatprep.mubr.f32.mxu1 %v17853_v52  ;;  %v17898_v52 = vld [vmem:[#allocation29_spill] sm:$0xff] }
  0xda   : > { %13872 = vmatmul.mubr.f32.gmra.mxu0 %v17854_v53  ;;  %v17899_v53 = vld [vmem:[#allocation31_spill] sm:$0xff] }
  0xdb   : > { %13874 = vmatprep.mubr.f32.mxu0 %v17855_v9  ;;  %v17900_v9 = vld [vmem:[#allocation33_spill] sm:$0xff] }
  0xdc   : > { %13936 = vmatmul.mubr.f32.gmra.mxu1 %v17856_v11  ;;  %v17901_v11 = vld [vmem:[#allocation34_spill] sm:$0xff] }
  0xdd   : > { %13938 = vmatprep.mubr.f32.mxu1 %v17857_v41 }
  0xde   : > { %13875 = vmatmul.mubr.f32.gmra.mxu0 %v17858_v2  ;;  %v17902_v2 = vld [vmem:[#allocation37_spill] sm:$0xff] }
  0xdf   : > { %13877 = vmatprep.mubr.f32.mxu0 %v17859_v45  ;;  %v17903_v45 = vld [vmem:[#allocation39_spill] sm:$0xff] }
  0xe0   : > { %13939 = vmatmul.mubr.f32.gmra.mxu1 %v17860_v56 }
  0xe1   : > { %13941 = vmatprep.mubr.f32.mxu1 %v17861_v39 }
  0xe2   : > { %13878 = vmatmul.mubr.f32.gmra.mxu0 %v17862_v40 }
  0xe3   : > { %13880 = vmatprep.mubr.f32.mxu0 %v17863_v54 }
  0xe4   : > { %13942 = vmatmul.mubr.f32.gmra.mxu1 %v17864_v10 }
  0xe5   : > { %13944 = vmatprep.mubr.f32.mxu1 %v17865_v16  ;;  %v17904_v16 = vld [vmem:[#allocation40_spill] sm:$0xff] }
  0xe6   : > { %13881 = vmatmul.mubr.f32.gmra.mxu0 %v17866_v19 }
  0xe7   : > { %13883 = vmatprep.mubr.f32.mxu0 %v17867_v23  ;;  %v17905_v23 = vld [vmem:[#allocation42_spill] sm:$0xff] }
  0xe8   : > { %13945 = vmatmul.mubr.f32.gmra.mxu1 %v17868_v24 }
  0xe9   : > { %13947 = vmatprep.mubr.f32.mxu1 %v17869_v3 }
  0xea   : > { %13884 = vmatmul.mubr.f32.gmra.mxu0 %v17870_v25 }
  0xeb   : > { %13886 = vmatprep.mubr.f32.mxu0 %v17871_v26 }
  0xec   : > { %13948 = vmatmul.mubr.f32.gmra.mxu1 %v17872_v4 }
  0xed   : > { %13950 = vmatprep.mubr.f32.mxu1 %v17873_v36 }
  0xee   : > { %13887 = vmatmul.mubr.f32.gmra.mxu0 %v15860_v43  ;;  %v17878_v43 = vand.u32 4294901760, %v15912_v33 }
  0xef   : > { %13889 = vmatprep.mubr.f32.mxu0 %v15877_v35  ;;  %v17879_v35 = vand.u32 4294901760, %v15915_v29 }
  0xf0   : > { %13951 = vmatmul.mubr.f32.gmra.mxu1 %v17874_v37 }
  0xf1   : > { %13953 = vmatprep.mubr.f32.mxu1 %v17875_v38 }
  0xf2   : > { %13890 = vmatmul.mubr.f32.gmra.mxu0 %v15884_v42  ;;  %v17880_v42 = vand.u32 4294901760, %v15940_v20 }
  0xf3   : > { %13892 = vmatprep.mubr.f32.mxu0 %v15899_v34  ;;  %v17881_v34 = vand.u32 4294901760, %v15943_v46 }
  0xf4   : > { %13954 = vmatmul.mubr.f32.gmra.mxu1 %v17876_v21 }
  0xf5   : > { %13956 = vmatprep.mubr.f32.mxu1 %v17877_v22 }
  0xf6   : > { %13893 = vmatmul.mubr.f32.gmra.mxu0 %v15912_v33  ;;  %v17882_v33 = vand.u32 4294901760, %v15970_v59 }
  0xf7   : > { %13895 = vmatprep.mubr.f32.mxu0 %v15915_v29  ;;  %v17883_v29 = vand.u32 4294901760, %v15977_v51 }
  0xf8   : > { %13957 = vmatmul.mubr.f32.gmra.mxu1 %v17878_v43 }
  0xf9   : > { %13959 = vmatprep.mubr.f32.mxu1 %v17879_v35 }
  0xfa   : > { %13896 = vmatmul.mubr.f32.gmra.mxu0 %v15940_v20  ;;  %v17884_v20 = vand.u32 4294901760, %v16001_v44 }
  0xfb   : > { %13898 = vmatprep.mubr.f32.mxu0 %v15943_v46  ;;  %v17885_v46 = vld [vmem:[#allocation16_spill] sm:$0xff] }
  0xfc   : > { %13960 = vmatmul.mubr.f32.gmra.mxu1 %v17880_v42 }
  0xfd   : > { %13962 = vmatprep.mubr.f32.mxu1 %v17881_v34 }
  0xfe   : > { %13899 = vmatmul.mubr.f32.gmra.mxu0 %v15970_v59  ;;  %v17886_v59 = vld [vmem:[#allocation17_spill] sm:$0xff] }
  0xff   : > { %13901 = vmatprep.mubr.f32.mxu0 %v15977_v51  ;;  %v17887_v51 = vld [vmem:[#allocation18_spill] sm:$0xff] }
 0x100   : > { %13963 = vmatmul.mubr.f32.gmra.mxu1 %v17882_v33 }
 0x101   : > { %13965 = vmatprep.mubr.f32.mxu1 %v17883_v29 }
 0x102   : > { %13902 = vmatmul.mubr.f32.gmra.mxu0 %v15995_v28  ;;  %v17888_v28 = vld [vmem:[#allocation19_spill] sm:$0xff] }
 0x103   : > { %13904 = vmatprep.mubr.f32.mxu0 %v16001_v44  ;;  %v17891_v44 = vld [vmem:[#allocation22_spill] sm:$0xff] }
 0x104   : > { %13966 = vmatmul.mubr.f32.gmra.mxu1 %v888_v5  ;;  %v17892_v5 = vld [vmem:[#allocation23_spill] sm:$0xff] }
 0x105   : > { %13968 = vmatprep.mubr.f32.mxu1 %v17884_v20 }
 0x106   : > { %13905 = vmatmul.mubr.f32.gmra.mxu0 %v16013_v50  ;;  %v17893_v50 = vld [vmem:[#allocation24_spill] sm:$0xff] }
 0x107   : > { %13907 = vmatprep.mubr.f32.mxu0 %v16022_v58  ;;  %v17894_v58 = vld [vmem:[#allocation25_spill] sm:$0xff] }
 0x108   : > { %13969 = vmatmul.mubr.f32.gmra.mxu1 %v908_v12  ;;  %v17895_v12 = vld [vmem:[#allocation26_spill] sm:$0xff] }
 0x109   : > { %13971 = vmatprep.mubr.f32.mxu1 %v918_v17  ;;  %v17889_v17 = vld [vmem:[#allocation20_spill] sm:$0xff] }
 0x10a   : > { %13908 = vmatmul.mubr.f32.gmra.mxu0 %v16031_v60  ;;  %v17890_v60 = vld [vmem:[#allocation21_spill] sm:$0xff] }
 0x10b   : > { %13978 = vmatprep.mubr.f32.mxu0 %v17885_v46 }
 0x10c   : > { %13972 = vmatmul.mubr.f32.gmra.mxu1 %v928_v13  ;;  %v17896_v13 = vld [vmem:[#allocation27_spill] sm:$0xff] }
 0x10d   : > { %14042 = vmatprep.mubr.f32.mxu1 %v17885_v46 }
 0x10e   : > { %13979 = vmatmul.mubr.f32.vlgmr.msra.gmra.mxu0 %v17886_v59 }
 0x10f   : > { %13981 = vmatprep.mubr.f32.mxu0 %v17887_v51 }
 0x110   : > { %14043 = vmatmul.mubr.f32.vlgmr.msra.gmra.mxu1 %v17886_v59 }
 0x111   : > { %14045 = vmatprep.mubr.f32.mxu1 %v17887_v51 }
 0x112   : > { %13982 = vmatmul.mubr.f32.gmra.mxu0 %v17888_v28 }
 0x113   : > { %13984 = vmatprep.mubr.f32.mxu0 %v17889_v17 }
 0x114   : > { %14046 = vmatmul.mubr.f32.gmra.mxu1 %v17888_v28 }
 0x115   : > { %14048 = vmatprep.mubr.f32.mxu1 %v17889_v17 }
 0x116   : > { %13985 = vmatmul.mubr.f32.gmra.mxu0 %v17890_v60 }
 0x117   : > { %13987 = vmatprep.mubr.f32.mxu0 %v17891_v44 }
 0x118   : > { %14049 = vmatmul.mubr.f32.gmra.mxu1 %v17890_v60 }
 0x119   : > { %14051 = vmatprep.mubr.f32.mxu1 %v17891_v44 }
 0x11a   : > { %13988 = vmatmul.mubr.f32.gmra.mxu0 %v17892_v5 }
 0x11b   : > { %13990 = vmatprep.mubr.f32.mxu0 %v17893_v50 }
 0x11c   : > { %14052 = vmatmul.mubr.f32.gmra.mxu1 %v17892_v5 }
 0x11d   : > { %14054 = vmatprep.mubr.f32.mxu1 %v17893_v50 }
 0x11e   : > { %13991 = vmatmul.mubr.f32.gmra.mxu0 %v17894_v58 }
 0x11f   : > { %13993 = vmatprep.mubr.f32.mxu0 %v17895_v12 }
 0x120   : > { %14055 = vmatmul.mubr.f32.gmra.mxu1 %v17894_v58 }
 0x121   : > { %14057 = vmatprep.mubr.f32.mxu1 %v17895_v12 }
 0x122   : > { %13994 = vmatmul.mubr.f32.gmra.mxu0 %v17896_v13 }
 0x123   : > { %13996 = vmatprep.mubr.f32.mxu0 %v17897_v15 }
 0x124   : > { %14058 = vmatmul.mubr.f32.gmra.mxu1 %v17896_v13 }
 0x125   : > { %14060 = vmatprep.mubr.f32.mxu1 %v17897_v15 }
 0x126   : > { %13997 = vmatmul.mubr.f32.gmra.mxu0 %v17898_v52 }
 0x127   : > { %13999 = vmatprep.mubr.f32.mxu0 %v17899_v53 }
 0x128   : > { %14061 = vmatmul.mubr.f32.gmra.mxu1 %v17898_v52 }
 0x129   : > { %14063 = vmatprep.mubr.f32.mxu1 %v17899_v53 }
 0x12a   : > { %14000 = vmatmul.mubr.f32.gmra.mxu0 %v17900_v9 }
 0x12b   : > { %14002 = vmatprep.mubr.f32.mxu0 %v17901_v11 }
 0x12c   : > { %14064 = vmatmul.mubr.f32.gmra.mxu1 %v17900_v9 }
 0x12d   : > { %14066 = vmatprep.mubr.f32.mxu1 %v17901_v11  ;;  %v13724_v41 = vpop.f32.mrf.mxu0 }
 0x12e   : > { %14003 = vmatmul.mubr.f32.gmra.mxu0 %v17902_v2  ;;  %v13788_v39 = vpop.f32.mrf.mxu1 }
 0x12f   : > { %14005 = vmatprep.mubr.f32.mxu0 %v17903_v45  ;;  %v542_v56 = vpop.f32.mrf.mxu0  ;;  %v16219_v40 = vadd.f32 %v13788_v39, %v13724_v41 }
 0x130   : > { %14067 = vmatmul.mubr.f32.gmra.mxu1 %v17902_v2  ;;  %v1013_v10 = vpop.f32.mrf.mxu1 }
 0x131   : > { %14069 = vmatprep.mubr.f32.mxu1 %v17903_v45  ;;  %v13727_v54 = vpop.f32.mrf.mxu0  ;;  %v16223_v19 = vadd.f32 %v1013_v10, %v542_v56 }
 0x132   : > { %14006 = vmatmul.mubr.f32.gmra.mxu0 %v17904_v16 }
 0x133   : > { %14008 = vmatprep.mubr.f32.mxu0 %v17905_v23  ;;  %v562_v24 = vpop.f32.mrf.mxu0  ;;  %v13791_v3 = vpop.f32.mrf.mxu1 }
 0x134   : > { %14070 = vmatmul.mubr.f32.gmra.mxu1 %v17904_v16  ;;  %v16227_v25 = vadd.f32 %v13791_v3, %v13727_v54 }
 0x135   : > { %14072 = vmatprep.mubr.f32.mxu1 %v17905_v23  ;;  %v13730_v26 = vpop.f32.mrf.mxu0  ;;  %v1025_v4 = vpop.f32.mrf.mxu1 }
 0x136   : > { %14009 = vmatmul.mubr.f32.gmra.mxu0 %v15792_v30  ;;  %v16231_v36 = vadd.f32 %v1025_v4, %v562_v24 }
 0x137   : > { %14011 = vmatprep.mubr.f32.mxu0 %v15798_v32  ;;  %v582_v37 = vpop.f32.mrf.mxu0 }
 0x138   : > { %v13794_v38 = vpop.f32.mrf.mxu1  ;;  %14073 = vmatmul.mubr.f32.gmra.mxu1 %v15792_v30 }
 0x139   : > { %v16235_v21 = vadd.f32 %v13794_v38, %v13730_v26  ;;  %14075 = vmatprep.mubr.f32.mxu1 %v15798_v32  ;;  %v13733_v22 = vpop.f32.mrf.mxu0 }
 0x13a   : > { %v1037_v43 = vpop.f32.mrf.mxu1  ;;  %14012 = vmatmul.mubr.f32.gmra.mxu0 %v15816_v62 }
 0x13b   : > { %v16239_v35 = vadd.f32 %v1037_v43, %v582_v37  ;;  %14014 = vmatprep.mubr.f32.mxu0 %v15831_v48  ;;  %v602_v42 = vpop.f32.mrf.mxu0 }
 0x13c   : > { %v13797_v34 = vpop.f32.mrf.mxu1  ;;  %14076 = vmatmul.mubr.f32.gmra.mxu1 %v15816_v62 }
 0x13d   : > { %v16243_v33 = vadd.f32 %v13797_v34, %v13733_v22  ;;  %14078 = vmatprep.mubr.f32.mxu1 %v15831_v48  ;;  %v13736_v30 = vpop.f32.mrf.mxu0 }
 0x13e   : > { %v1049_v29 = vpop.f32.mrf.mxu1  ;;  %14015 = vmatmul.mubr.f32.gmra.mxu0 %v15844_v18 }
 0x13f   : > { %v16247_v32 = vadd.f32 %v1049_v29, %v602_v42  ;;  %14017 = vmatprep.mubr.f32.mxu0 %v15862_v49  ;;  %v16250_v20 = vpop.f32.mrf.mxu0 }
 0x140   : > { %v13800_v46 = vpop.f32.mrf.mxu1  ;;  %14079 = vmatmul.mubr.f32.gmra.mxu1 %v15844_v18 }
 0x141   : > { %v16253_v59 = vadd.f32 %v13800_v46, %v13736_v30  ;;  %14081 = vmatprep.mubr.f32.mxu1 %v15862_v49  ;;  %v13739_v62 = vpop.f32.mrf.mxu0 }
 0x142   : > { %v16256_v51 = vpop.f32.mrf.mxu1  ;;  %14018 = vmatmul.mubr.f32.gmra.mxu0 %v15864_v61 }
 0x143   : > { %14020 = vmatprep.mubr.f32.mxu0 %v15872_v27  ;;  %v16260_v48 = vpop.f32.mrf.mxu0 }
 0x144   : > { %v13803_v28 = vpop.f32.mrf.mxu1  ;;  %14082 = vmatmul.mubr.f32.gmra.mxu1 %v15864_v61 }
 0x145   : > { %v16263_v17 = vadd.f32 %v13803_v28, %v13739_v62  ;;  %14084 = vmatprep.mubr.f32.mxu1 %v15872_v27  ;;  %v13742_v18 = vpop.f32.mrf.mxu0 }
 0x146   : > { %v16266_v60 = vpop.f32.mrf.mxu1  ;;  %14021 = vmatmul.mubr.f32.gmra.mxu0 %v15886_v47 }
 0x147   : > { %14023 = vmatprep.mubr.f32.mxu0 %v15901_v31  ;;  %v16270_v49 = vpop.f32.mrf.mxu0 }
 0x148   : > { %v13806_v44 = vpop.f32.mrf.mxu1  ;;  %14085 = vmatmul.mubr.f32.gmra.mxu1 %v15886_v47  ;;  %v2605_v47 = vld [vmem:[#allocation2] sm:$0xff] }
 0x149   : > { %v16273_v5 = vadd.f32 %v13806_v44, %v13742_v18  ;;  %14087 = vmatprep.mubr.f32.mxu1 %v15901_v31  ;;  %v13745_v61 = vpop.f32.mrf.mxu0  ;;  %v2608_v31 = vsel %vm348_vm0, %v2605_v47, 0 }
 0x14a   : > { %v16276_v50 = vpop.f32.mrf.mxu1  ;;  %14024 = vmatmul.mubr.f32.gmra.mxu0 %v15917_v55  ;;  %v16291_v52 = vand.u32 4294901760, %v2608_v31 }
 0x14b   : > { %14026 = vmatprep.mubr.f32.mxu0 %v15919_v8  ;;  %v16280_v27 = vpop.f32.mrf.mxu0 }
 0x14c   : > { %v13809_v58 = vpop.f32.mrf.mxu1  ;;  %14088 = vmatmul.mubr.f32.gmra.mxu1 %v15917_v55 }
 0x14d   : > { %v16283_v12 = vadd.f32 %v13809_v58, %v13745_v61  ;;  %14090 = vmatprep.mubr.f32.mxu1 %v15919_v8  ;;  %v13748_v13 = vpop.f32.mrf.mxu0  ;;  %v16300_v8 = vsub.f32 %v2608_v31, %v16291_v52 }
 0x14e   : > { %v16286_v15 = vpop.f32.mrf.mxu1  ;;  %14027 = vmatmul.mubr.f32.gmra.mxu0 %v15945_v7 }
 0x14f   : > { %14029 = vmatprep.mubr.f32.mxu0 %v15953_v6  ;;  %v16293_v53 = vpop.f32.mrf.mxu0  ;;  %v16307_v2 = vand.u32 4294901760, %v16300_v8 }
 0x150   : > { %17906 = vst [vmem:[#allocation30_spill] sm:$0xff] %v16293_v53  ;;  %v13812_v9 = vpop.f32.mrf.mxu1  ;;  %14091 = vmatmul.mubr.f32.gmra.mxu1 %v15945_v7 }
 0x151   : > { %v16296_v55 = vadd.f32 %v13812_v9, %v13748_v13  ;;  %14093 = vmatprep.mubr.f32.mxu1 %v15953_v6  ;;  %v13751_v11 = vpop.f32.mrf.mxu0  ;;  %v2683_v6 = vsub.f32 %v16300_v8, %v16307_v2 }
 0x152   : > { %v16302_v41 = vpop.f32.mrf.mxu1  ;;  %14030 = vmatmul.mubr.f32.gmra.mxu0 %v15972_v14 }
 0x153   : > { %17907 = vst [vmem:[#allocation32_spill] sm:$0xff] %v16302_v41  ;;  %14032 = vmatprep.mubr.f32.mxu0 %v15979_v0  ;;  %v16309_v45 = vpop.f32.mrf.mxu0  ;;  %v16321_v10 = vand.u32 4294901760, %v2683_v6 }
 0x154   : > { %17908 = vst [vmem:[#allocation35_spill] sm:$0xff] %v16309_v45  ;;  %v13815_v7 = vpop.f32.mrf.mxu1  ;;  %14094 = vmatmul.mubr.f32.gmra.mxu1 %v15972_v14 }
 0x155   : > { %v16312_v56 = vadd.f32 %v13815_v7, %v13751_v11  ;;  %14096 = vmatprep.mubr.f32.mxu1 %v15979_v0  ;;  %v13754_v39 = vpop.f32.mrf.mxu0 }
 0x156   : > { %v16317_v54 = vpop.f32.mrf.mxu1  ;;  %14033 = vmatmul.mubr.f32.gmra.mxu0 %v15997_v63 }
 0x157   : > { %17909 = vst [vmem:[#allocation36_spill] sm:$0xff] %v16317_v54  ;;  %14035 = vmatprep.mubr.f32.mxu0 %v16003_v1  ;;  %v16323_v16 = vpop.f32.mrf.mxu0 }
 0x158   : > { %17910 = vst [vmem:[#allocation38_spill] sm:$0xff] %v16323_v16  ;;  %v13818_v23 = vpop.f32.mrf.mxu1  ;;  %14097 = vmatmul.mubr.f32.gmra.mxu1 %v15997_v63 }
 0x159   : > { %v16326_v14 = vadd.f32 %v13818_v23, %v13754_v39  ;;  %14099 = vmatprep.mubr.f32.mxu1 %v16003_v1  ;;  %v13757_v0 = vpop.f32.mrf.mxu0 }
 0x15a   : > { %v16329_v24 = vpop.f32.mrf.mxu1  ;;  %14036 = vmatmul.mubr.f32.gmra.mxu0 %v16015_v57 }
 0x15b   : > { %17911 = vst [vmem:[#allocation41_spill] sm:$0xff] %v16329_v24  ;;  %14106 = vmatprep.mubr.f32.mxu0 %v16321_v10  ;;  %v16333_v3 = vpop.f32.mrf.mxu0 }
 0x15c   : > { %17912 = vst [vmem:[#allocation43_spill] sm:$0xff] %v16333_v3  ;;  %v13821_v26 = vpop.f32.mrf.mxu1  ;;  %14100 = vmatmul.mubr.f32.gmra.mxu1 %v16015_v57 }
 0x15d   : > { %v16336_v4 = vadd.f32 %v13821_v26, %v13757_v0  ;;  %14113 = vmatprep.mubr.f32.mxu1 %v16291_v52  ;;  %v13760_v63 = vpop.f32.mrf.mxu0 }
 0x15e   : > { %v16339_v37 = vpop.f32.mrf.mxu1 }
 0x15f   : > { %17913 = vst [vmem:[#allocation44_spill] sm:$0xff] %v16339_v37  ;;  %v16341_v1 = vpop.f32.mrf.mxu0 }
 0x160   : > { %17914 = vst [vmem:[#allocation45_spill] sm:$0xff] %v16341_v1  ;;  %v13824_v38 = vpop.f32.mrf.mxu1 }
 0x161   : > { %v16343_v22 = vadd.f32 %v13824_v38, %v13760_v63  ;;  %v13763_v43 = vpop.f32.mrf.mxu0 }
 0x162   : > { %v16345_v42 = vpop.f32.mrf.mxu1 }
 0x163   : > { %17915 = vst [vmem:[#allocation46_spill] sm:$0xff] %v16345_v42  ;;  %v16347_v34 = vpop.f32.mrf.mxu0 }
 0x164   : > { %17916 = vst [vmem:[#allocation47_spill] sm:$0xff] %v16347_v34  ;;  %v13827_v30 = vpop.f32.mrf.mxu1 }
 0x165   : > { %v16349_v29 = vadd.f32 %v13827_v30, %v13763_v43  ;;  %v13766_v57 = vpop.f32.mrf.mxu0 }
 0x166   : > { %v16351_v46 = vpop.f32.mrf.mxu1 }
 0x167   : > { %17917 = vst [vmem:[#allocation48_spill] sm:$0xff] %v16351_v46  ;;  %v16353_v62 = vpop.f32.mrf.mxu0 }
 0x168   : > { %17918 = vst [vmem:[#allocation16_spill] sm:$0xff] %v16353_v62  ;;  %v13830_v28 = vpop.f32.mrf.mxu1 }
 0x169   : > { %v16355_v18 = vadd.f32 %v13830_v28, %v13766_v57  ;;  %v13769_v44 = vpop.f32.mrf.mxu0 }
 0x16a   : > { %v16357_v61 = vpop.f32.mrf.mxu1 }
 0x16b   : > { %17919 = vst [vmem:[#allocation17_spill] sm:$0xff] %v16357_v61  ;;  %v16359_v58 = vpop.f32.mrf.mxu0 }
 0x16c   : > { %17920 = vst [vmem:[#allocation18_spill] sm:$0xff] %v16359_v58  ;;  %v13833_v47 = vpop.f32.mrf.mxu1 }
 0x16d   : > { %v16361_v13 = vadd.f32 %v13833_v47, %v13769_v44  ;;  %v13772_v31 = vpop.f32.mrf.mxu0 }
 0x16e   : > { %v16363_v9 = vpop.f32.mrf.mxu1 }
 0x16f   : > { %17921 = vst [vmem:[#allocation19_spill] sm:$0xff] %v16363_v9  ;;  %v16365_v11 = vpop.f32.mrf.mxu0 }
 0x170   : > { %17922 = vst [vmem:[#allocation20_spill] sm:$0xff] %v16365_v11  ;;  %v13836_v7 = vpop.f32.mrf.mxu1 }
 0x171   : > { %v16367_v6 = vadd.f32 %v13836_v7, %v13772_v31  ;;  %v13775_v39 = vpop.f32.mrf.mxu0 }
 0x172   : > { %v16369_v23 = vpop.f32.mrf.mxu1 }
 0x173   : > { %17923 = vst [vmem:[#allocation21_spill] sm:$0xff] %v16369_v23  ;;  %v16371_v0 = vpop.f32.mrf.mxu0 }
 0x174   : > { %17924 = vst [vmem:[#allocation22_spill] sm:$0xff] %v16371_v0  ;;  %v13839_v26 = vpop.f32.mrf.mxu1 }
 0x175   : > { %v16373_v63 = vadd.f32 %v13839_v26, %v13775_v39  ;;  %v13778_v38 = vpop.f32.mrf.mxu0 }
 0x176   : > { %v16375_v43 = vpop.f32.mrf.mxu1 }
 0x177   : > { %17925 = vst [vmem:[#allocation23_spill] sm:$0xff] %v16375_v43  ;;  %v16377_v30 = vpop.f32.mrf.mxu0 }
 0x178   : > { %17926 = vst [vmem:[#allocation24_spill] sm:$0xff] %v16377_v30  ;;  %v13842_v57 = vpop.f32.mrf.mxu1 }
 0x179   : > { %v16379_v28 = vadd.f32 %v13842_v57, %v13778_v38  ;;  %v13781_v44 = vpop.f32.mrf.mxu0 }
 0x17a   : > { %v16381_v47 = vpop.f32.mrf.mxu1 }
 0x17b   : > { %17927 = vst [vmem:[#allocation25_spill] sm:$0xff] %v16381_v47  ;;  %v16383_v31 = vpop.f32.mrf.mxu0 }
 0x17c   : > { %17928 = vst [vmem:[#allocation26_spill] sm:$0xff] %v16383_v31  ;;  %v13845_v7 = vpop.f32.mrf.mxu1 }
 0x17d   : > { %v16385_v23 = vadd.f32 %v13845_v7, %v13781_v44  ;;  %v13852_v39 = vpop.f32.mrf.mxu0 }
 0x17e   : > { %v16387_v0 = vpop.f32.mrf.mxu1  ;;  %v1331_v26 = vadd.f32 %v13852_v39, %v16219_v40 }
 0x17f   : > { %17929 = vst [vmem:[#allocation27_spill] sm:$0xff] %v16387_v0  ;;  %v16390_v11 = vpop.f32.mrf.mxu0 }
 0x180   : > { %v13916_v43 = vpop.f32.mrf.mxu1 }
 0x181   : > { %v16392_v30 = vadd.f32 %v13916_v43, %v1331_v26  ;;  %v13855_v38 = vpop.f32.mrf.mxu0 }
 0x182   : > { %v16394_v57 = vpop.f32.mrf.mxu1  ;;  %v1345_v47 = vadd.f32 %v13855_v38, %v16227_v25 }
 0x183   : > { %v16397_v9 = vpop.f32.mrf.mxu0 }
 0x184   : > { %v13919_v31 = vpop.f32.mrf.mxu1 }
 0x185   : > { %v16399_v44 = vadd.f32 %v13919_v31, %v1345_v47 }
 0x186   : > { %v13858_v7 = vpop.f32.mrf.mxu0  ;;  %v16401_v0 = vpop.f32.mrf.mxu1 }
 0x187   : > { %v1359_v40 = vadd.f32 %v13858_v7, %v16235_v21 }
 0x188   : > { %v16404_v39 = vpop.f32.mrf.mxu0  ;;  %v13922_v58 = vpop.f32.mrf.mxu1 }
 0x189   : > { %v16406_v43 = vadd.f32 %v13922_v58, %v1359_v40 }
 0x18a   : > { %v13861_v26 = vpop.f32.mrf.mxu0  ;;  %v16408_v61 = vpop.f32.mrf.mxu1 }
 0x18b   : > { %v1373_v25 = vadd.f32 %v13861_v26, %v16243_v33 }
 0x18c   : > { %v16411_v38 = vpop.f32.mrf.mxu0  ;;  %v13925_v62 = vpop.f32.mrf.mxu1 }
 0x18d   : > { %v16413_v47 = vadd.f32 %v13925_v62, %v1373_v25 }
 0x18e   : > { %v13864_v31 = vpop.f32.mrf.mxu0  ;;  %v16415_v46 = vpop.f32.mrf.mxu1 }
 0x18f   : > { %v1387_v21 = vadd.f32 %v13864_v31, %v16253_v59 }
 0x190   : > { %v16418_v7 = vpop.f32.mrf.mxu0  ;;  %v13928_v34 = vpop.f32.mrf.mxu1 }
 0x191   : > { %v16420_v58 = vadd.f32 %v13928_v34, %v1387_v21 }
 0x192   : > { %v13867_v40 = vpop.f32.mrf.mxu0  ;;  %v16422_v42 = vpop.f32.mrf.mxu1 }
 0x193   : > { %v1401_v33 = vadd.f32 %v13867_v40, %v16263_v17 }
 0x194   : > { %v16425_v26 = vpop.f32.mrf.mxu0  ;;  %v13931_v1 = vpop.f32.mrf.mxu1 }
 0x195   : > { %v16427_v62 = vadd.f32 %v13931_v1, %v1401_v33 }
 0x196   : > { %v13870_v25 = vpop.f32.mrf.mxu0  ;;  %v16429_v37 = vpop.f32.mrf.mxu1 }
 0x197   : > { %v1415_v59 = vadd.f32 %v13870_v25, %v16273_v5 }
 0x198   : > { %v16432_v31 = vpop.f32.mrf.mxu0  ;;  %v13934_v3 = vpop.f32.mrf.mxu1 }
 0x199   : > { %v16434_v34 = vadd.f32 %v13934_v3, %v1415_v59 }
 0x19a   : > { %v13873_v21 = vpop.f32.mrf.mxu0  ;;  %v16436_v24 = vpop.f32.mrf.mxu1 }
 0x19b   : > { %v1429_v17 = vadd.f32 %v13873_v21, %v16283_v12 }
 0x19c   : > { %v16439_v40 = vpop.f32.mrf.mxu0  ;;  %v13937_v16 = vpop.f32.mrf.mxu1 }
 0x19d   : > { %v16441_v1 = vadd.f32 %v13937_v16, %v1429_v17 }
 0x19e   : > { %v13876_v33 = vpop.f32.mrf.mxu0  ;;  %v16443_v54 = vpop.f32.mrf.mxu1 }
 0x19f   : > { %17930 = vst [vmem:[#allocation28_spill] sm:$0xff] %v16441_v1  ;;  %v1443_v5 = vadd.f32 %v13876_v33, %v16296_v55 }
 0x1a0   : > { %v16446_v25 = vpop.f32.mrf.mxu0  ;;  %v13940_v45 = vpop.f32.mrf.mxu1 }
 0x1a1   : > { %17931 = vst [vmem:[#allocation29_spill] sm:$0xff] %v16446_v25  ;;  %v16448_v3 = vadd.f32 %v13940_v45, %v1443_v5 }
 0x1a2   : > { %v13879_v59 = vpop.f32.mrf.mxu0  ;;  %v16450_v41 = vpop.f32.mrf.mxu1 }
 0x1a3   : > { %17932 = vst [vmem:[#allocation31_spill] sm:$0xff] %v16448_v3  ;;  %v1457_v12 = vadd.f32 %v13879_v59, %v16312_v56 }
 0x1a4   : > { %v16453_v21 = vpop.f32.mrf.mxu0  ;;  %v13943_v53 = vpop.f32.mrf.mxu1 }
 0x1a5   : > { %17933 = vst [vmem:[#allocation33_spill] sm:$0xff] %v16453_v21  ;;  %v16455_v16 = vadd.f32 %v13943_v53, %v1457_v12 }
 0x1a6   : > { %v13882_v17 = vpop.f32.mrf.mxu0  ;;  %v16457_v1 = vpop.f32.mrf.mxu1 }
 0x1a7   : > { %17934 = vst [vmem:[#allocation34_spill] sm:$0xff] %v16455_v16  ;;  %v1471_v55 = vadd.f32 %v13882_v17, %v16326_v14 }
 0x1a8   : > { %v16460_v33 = vpop.f32.mrf.mxu0  ;;  %v13946_v25 = vpop.f32.mrf.mxu1 }
 0x1a9   : > { %17935 = vst [vmem:[#allocation37_spill] sm:$0xff] %v16460_v33  ;;  %v16462_v45 = vadd.f32 %v13946_v25, %v1471_v55 }
 0x1aa   : > { %v13885_v5 = vpop.f32.mrf.mxu0  ;;  %v16464_v3 = vpop.f32.mrf.mxu1 }
 0x1ab   : > { %17936 = vst [vmem:[#allocation39_spill] sm:$0xff] %v16462_v45  ;;  %v1485_v56 = vadd.f32 %v13885_v5, %v16336_v4 }
 0x1ac   : > { %v16467_v59 = vpop.f32.mrf.mxu0  ;;  %v13949_v21 = vpop.f32.mrf.mxu1 }
 0x1ad   : > { %17937 = vst [vmem:[#allocation40_spill] sm:$0xff] %v16467_v59  ;;  %v16469_v53 = vadd.f32 %v13949_v21, %v1485_v56 }
 0x1ae   : > { %v13888_v12 = vpop.f32.mrf.mxu0  ;;  %v16471_v16 = vpop.f32.mrf.mxu1 }
 0x1af   : > { %17938 = vst [vmem:[#allocation42_spill] sm:$0xff] %v16469_v53  ;;  %v1499_v14 = vadd.f32 %v13888_v12, %v16343_v22 }
 0x1b0   : > { %v16474_v17 = vpop.f32.mrf.mxu0  ;;  %v13952_v33 = vpop.f32.mrf.mxu1 }
 0x1b1   : > { %17939 = vst [vmem:[#allocation49_spill] sm:$0xff] %v16474_v17  ;;  %v16476_v25 = vadd.f32 %v13952_v33, %v1499_v14 }
 0x1b2   : > { %v13891_v55 = vpop.f32.mrf.mxu0  ;;  %v16478_v45 = vpop.f32.mrf.mxu1 }
 0x1b3   : > { %17940 = vst [vmem:[#allocation50_spill] sm:$0xff] %v16476_v25  ;;  %v1513_v4 = vadd.f32 %v13891_v55, %v16349_v29 }
 0x1b4   : > { %v16481_v5 = vpop.f32.mrf.mxu0  ;;  %v13955_v59 = vpop.f32.mrf.mxu1 }
 0x1b5   : > { %17941 = vst [vmem:[#allocation51_spill] sm:$0xff] %v16481_v5  ;;  %v16483_v21 = vadd.f32 %v13955_v59, %v1513_v4 }
 0x1b6   : > { %v13894_v56 = vpop.f32.mrf.mxu0  ;;  %v16485_v53 = vpop.f32.mrf.mxu1 }
 0x1b7   : > { %17942 = vst [vmem:[#allocation52_spill] sm:$0xff] %v16483_v21  ;;  %v1527_v22 = vadd.f32 %v13894_v56, %v16355_v18  ;;  %v2606_v56 = vld [vmem:[#allocation2 + $0x8] sm:$0xff] }
 0x1b8   : > { %v16488_v12 = vpop.f32.mrf.mxu0  ;;  %v13958_v17 = vpop.f32.mrf.mxu1 }
 0x1b9   : > { %17943 = vst [vmem:[#allocation53_spill] sm:$0xff] %v16488_v12  ;;  %v16490_v33 = vadd.f32 %v13958_v17, %v1527_v22 }
 0x1ba   : > { %v13897_v14 = vpop.f32.mrf.mxu0  ;;  %v16492_v25 = vpop.f32.mrf.mxu1 }
 0x1bb   : > { %17944 = vst [vmem:[#allocation54_spill] sm:$0xff] %v16490_v33  ;;  %17945 = vst [vmem:[#allocation55_spill] sm:$0xff] %v16492_v25  ;;  %v1541_v29 = vadd.f32 %v13897_v14, %v16361_v13  ;;  %v2611_v13 = vsel %vm348_vm0, %v2606_v56, 0 }
 0x1bc   : > { %v16495_v55 = vpop.f32.mrf.mxu0  ;;  %v13961_v5 = vpop.f32.mrf.mxu1 }
 0x1bd   : > { %v16497_v59 = vadd.f32 %v13961_v5, %v1541_v29 }
 0x1be   : > { %v13900_v4 = vpop.f32.mrf.mxu0  ;;  %v16499_v21 = vpop.f32.mrf.mxu1 }
 0x1bf   : > { %17946 = vst [vmem:[#allocation56_spill] sm:$0xff] %v16497_v59  ;;  %17947 = vst [vmem:[#allocation57_spill] sm:$0xff] %v16499_v21  ;;  %v1555_v18 = vadd.f32 %v13900_v4, %v16367_v6  ;;  %v16514_v21 = vand.u32 4294901760, %v2611_v13 }
 0x1c0   : > { %v16502_v12 = vpop.f32.mrf.mxu0  ;;  %v13964_v17 = vpop.f32.mrf.mxu1 }
 0x1c1   : > { %v16504_v22 = vadd.f32 %v13964_v17, %v1555_v18  ;;  %v16524_v56 = vsub.f32 %v2611_v13, %v16514_v21 }
 0x1c2   : > { %v13903_v33 = vpop.f32.mrf.mxu0  ;;  %v16506_v25 = vpop.f32.mrf.mxu1 }
 0x1c3   : > { %17948 = vst [vmem:[#allocation58_spill] sm:$0xff] %v16504_v22  ;;  %17949 = vst [vmem:[#allocation59_spill] sm:$0xff] %v16506_v25  ;;  %v1569_v14 = vadd.f32 %v13903_v33, %v16373_v63 }
 0x1c4   : > { %v16510_v5 = vpop.f32.mrf.mxu0  ;;  %v13967_v29 = vpop.f32.mrf.mxu1 }
 0x1c5   : > { %v16512_v59 = vadd.f32 %v13967_v29, %v1569_v14  ;;  %v1324_v14 = vadd.f32 %v16390_v11, %v16223_v19  ;;  %v1338_v19 = vadd.f32 %v16397_v9, %v16231_v36 }
 0x1c6   : > { %v13906_v6 = vpop.f32.mrf.mxu0  ;;  %v16516_v4 = vpop.f32.mrf.mxu1 }
 0x1c7   : > { %17950 = vst [vmem:[#allocation60_spill] sm:$0xff] %v16512_v59  ;;  %17951 = vst [vmem:[#allocation61_spill] sm:$0xff] %v16516_v4  ;;  %v1583_v18 = vadd.f32 %v13906_v6, %v16379_v28  ;;  %v16536_v6 = vand.u32 4294901760, %v16524_v56 }
 0x1c8   : > { %v16519_v17 = vpop.f32.mrf.mxu0  ;;  %v13970_v22 = vpop.f32.mrf.mxu1 }
 0x1c9   : > { %17952 = vst [vmem:[#allocation62_spill] sm:$0xff] %v16519_v17  ;;  %v16521_v25 = vadd.f32 %v13970_v22, %v1583_v18  ;;  %v1672_v18 = vadd.f32 %v16394_v57, %v1324_v14  ;;  %v1688_v17 = vadd.f32 %v16401_v0, %v1338_v19 }
 0x1ca   : > { %v13909_v63 = vpop.f32.mrf.mxu0  ;;  %v16526_v33 = vpop.f32.mrf.mxu1 }
 0x1cb   : > { %17953 = vst [vmem:[#allocation63_spill] sm:$0xff] %v16521_v25  ;;  %17954 = vst [vmem:[#allocation64_spill] sm:$0xff] %v16526_v33  ;;  %v1597_v29 = vadd.f32 %v13909_v63, %v16385_v23 }
 0x1cc   : > { %v16531_v59 = vpop.f32.mrf.mxu0  ;;  %v13973_v4 = vpop.f32.mrf.mxu1 }
 0x1cd   : > { %17955 = vst [vmem:[#allocation65_spill] sm:$0xff] %v16531_v59  ;;  %v16533_v28 = vadd.f32 %v13973_v4, %v1597_v29  ;;  %v2693_v4 = vsub.f32 %v16524_v56, %v16536_v6 }
 0x1ce   : > { %v16538_v22 = vpop.f32.mrf.mxu1  ;;  %v13980_v13 = vpop.f32.mrf.mxu0 }
 0x1cf   : > { %17956 = vst [vmem:[#allocation66_spill] sm:$0xff] %v16533_v28  ;;  %17957 = vst [vmem:[#allocation67_spill] sm:$0xff] %v16538_v22  ;;  %v2067_v25 = vadd.f32 %v13980_v13, %v16392_v30 }
 0x1d0   : > { %v2060_v11 = vpop.f32.mrf.mxu0  ;;  %v14044_v23 = vpop.f32.mrf.mxu1 }
 0x1d1   : > { %v2061_v63 = vadd.f32 %v2060_v11, %v1672_v18  ;;  %v2374_v59 = vadd.f32 %v14044_v23, %v2067_v25  ;;  %v16554_v25 = vand.u32 4294901760, %v2693_v4 }
 0x1d2   : > { %v13983_v29 = vpop.f32.mrf.mxu0  ;;  %v2367_v28 = vpop.f32.mrf.mxu1 }
 0x1d3   : > { %v16546_v33 = vand.u32 4294901760, %v2374_v59  ;;  %v2368_v22 = vadd.f32 %v2367_v28, %v2061_v63  ;;  %v2079_v57 = vadd.f32 %v13983_v29, %v16399_v44 }
 0x1d4   : > { %v2072_v30 = vpop.f32.mrf.mxu0  ;;  %v14047_v14 = vpop.f32.mrf.mxu1 }
 0x1d5   : > { %v2730_v36 = vsub.f32 %v2374_v59, %v16546_v33  ;;  %v16551_v9 = vand.u32 4294901760, %v2368_v22  ;;  %14102 = vmatprep.subr.mxu0 %v16546_v33  ;;  %v2073_v13 = vadd.f32 %v2072_v30, %v1688_v17  ;;  %v2386_v0 = vadd.f32 %v14047_v14, %v2079_v57 }
 0x1d6   : > { %14103 = vmatpush3.msra.mxu0 %v16546_v33  ;;  %v2379_v28 = vpop.f32.mrf.mxu1  ;;  %v13986_v57 = vpop.f32.mrf.mxu0  ;;  %v1352_v30 = vadd.f32 %v16404_v39, %v16239_v35 }
 0x1d7   : > { %v2737_v18 = vsub.f32 %v2368_v22, %v16551_v9  ;;  %14104 = vmatprep.subr.mxu0 %v16551_v9  ;;  %v2731_v44 = vand.u32 4294901760, %v2730_v36  ;;  %v2380_v59 = vadd.f32 %v2379_v28, %v2073_v13  ;;  %v16562_v11 = vand.u32 4294901760, %v2386_v0 }
 0x1d8   : > { %14105 = vmatpush3.msra.mxu0 %v16551_v9  ;;  %v2084_v13 = vpop.f32.mrf.mxu0  ;;  %v1704_v35 = vadd.f32 %v16408_v61, %v1352_v30  ;;  %v2091_v39 = vadd.f32 %v13986_v57, %v16406_v43 }
 0x1d9   : > { %14116 = vmatprep.subr.mxu0 %v2730_v36  ;;  %14107 = vmatmul.mubr.f32.vlgmr.msra.gmra.mxu0 %v16554_v25  ;;  %v2732_v19 = vsub.f32 %v2730_v36, %v2731_v44  ;;  %v2738_v17 = vand.u32 4294901760, %v2737_v18  ;;  %v16565_v63 = vand.u32 4294901760, %v2380_v59  ;;  %v3232_v29 = vsub.f32 %v2386_v0, %v16562_v11 }
 0x1da   : > { %14117 = vmatpush3.msra.mxu0 %v2730_v36  ;;  %14120 = vmatprep.mubr.f32.mxu0 %v16300_v8  ;;  %v2085_v0 = vadd.f32 %v2084_v13, %v1704_v35 }
 0x1db   : > { %14118 = vmatprep.subr.mxu0 %v2737_v18  ;;  %v2733_v22 = vand.u32 4294901760, %v2732_v19  ;;  %v2739_v23 = vsub.f32 %v2737_v18, %v2738_v17  ;;  %v3239_v14 = vsub.f32 %v2380_v59, %v16565_v63  ;;  %v3233_v36 = vand.u32 4294901760, %v3232_v29 }
 0x1dc   : > { %14119 = vmatpush3.msra.mxu0 %v2737_v18  ;;  %v14050_v18 = vpop.f32.mrf.mxu1 }
 0x1dd   : > { %14130 = vmatprep.subr.mxu0 %v2731_v44  ;;  %14121 = vmatmul.mubr.f32.vlgmr.msra.gmra.mxu0 %v16524_v56  ;;  %v2740_v4 = vand.u32 4294901760, %v2739_v23  ;;  %v3240_v28 = vand.u32 4294901760, %v3239_v14  ;;  %v2398_v61 = vadd.f32 %v14050_v18, %v2091_v39 }
 0x1de   : > { %14109 = vmatprep.subr.mxu1 %v2733_v22  ;;  %14131 = vmatpush3.msra.mxu0 %v2731_v44  ;;  %v3234_v44 = vsub.f32 %v3232_v29, %v3233_v36  ;;  %v2391_v59 = vpop.f32.mrf.mxu1 }
 0x1df   : > { %14110 = vmatpush3.msra.mxu1 %v2733_v22  ;;  %14132 = vmatprep.subr.mxu0 %v2738_v17  ;;  %v3241_v43 = vsub.f32 %v3239_v14, %v3240_v28  ;;  %v2392_v19 = vadd.f32 %v2391_v59, %v2085_v0  ;;  %v16594_v22 = vand.u32 4294901760, %v2398_v61 }
 0x1e0   : > { %14111 = vmatprep.subr.mxu1 %v2740_v4  ;;  %14133 = vmatpush3.msra.mxu0 %v2738_v17  ;;  %v3235_v17 = vand.u32 4294901760, %v3234_v44 }
 0x1e1   : > { %14112 = vmatpush3.msra.mxu1 %v2740_v4  ;;  %14134 = vmatprep.mubr.f32.mxu0 %v16291_v52  ;;  %v16597_v23 = vand.u32 4294901760, %v2392_v19  ;;  %v13989_v4 = vpop.f32.mrf.mxu0 }
 0x1e2   : > { %14114 = vmatmul.mubr.f32.vlgmr.msra.gmra.mxu1 %v16514_v21  ;;  %14123 = vmatprep.subr.mxu1 %v16546_v33 }
 0x1e3   : > { %14144 = vmatprep.subr.mxu0 %v16562_v11  ;;  %14124 = vmatpush3.msra.mxu1 %v16546_v33  ;;  %v3741_v57 = vsub.f32 %v2392_v19, %v16597_v23 }
 0x1e4   : > { %14135 = vmatmul.mubr.f32.vlgmr.msra.gmra.mxu0 %v16514_v21  ;;  %14125 = vmatprep.subr.mxu1 %v16551_v9 }
 0x1e5   : > { %14145 = vmatpush3.msra.mxu0 %v16562_v11  ;;  %14126 = vmatpush3.msra.mxu1 %v16551_v9  ;;  %v3742_v13 = vand.u32 4294901760, %v3741_v57 }
 0x1e6   : > { %14146 = vmatprep.subr.mxu0 %v16565_v63  ;;  %14127 = vmatprep.mubr.f32.mxu1 %v16307_v2 }
 0x1e7   : > { %14147 = vmatpush3.msra.mxu0 %v16565_v63  ;;  %14128 = vmatmul.mubr.f32.vlgmr.msra.gmra.mxu1 %v16536_v6 }
 0x1e8   : > { %14137 = vmatprep.subr.mxu1 %v16546_v33  ;;  %14148 = vmatprep.mubr.f32.mxu0 %v16321_v10 }
 0x1e9   : > { %14158 = vmatprep.subr.mxu0 %v3232_v29  ;;  %14138 = vmatpush3.msra.mxu1 %v16546_v33  ;;  %v3242_v33 = vand.u32 4294901760, %v3241_v43 }
 0x1ea   : > { %14149 = vmatmul.mubr.f32.vlgmr.msra.gmra.mxu0 %v16554_v25  ;;  %14139 = vmatprep.subr.mxu1 %v16551_v9 }
 0x1eb   : > { %14159 = vmatpush3.msra.mxu0 %v3232_v29  ;;  %14140 = vmatpush3.msra.mxu1 %v16551_v9  ;;  %v3734_v9 = vsub.f32 %v2398_v61, %v16594_v22  ;;  %v1366_v29 = vadd.f32 %v16411_v38, %v16247_v32  ;;  %v2103_v38 = vadd.f32 %v13989_v4, %v16413_v47 }
 0x1ec   : > { %14160 = vmatprep.subr.mxu0 %v3239_v14  ;;  %14141 = vmatprep.mubr.f32.mxu1 %v16291_v52  ;;  %v3743_v47 = vsub.f32 %v3741_v57, %v3742_v13 }
 0x1ed   : > { %14161 = vmatpush3.msra.mxu0 %v3239_v14  ;;  %14142 = vmatmul.mubr.f32.vlgmr.msra.gmra.mxu1 %v16514_v21  ;;  %v3735_v30 = vand.u32 4294901760, %v3734_v9  ;;  %v2096_v14 = vpop.f32.mrf.mxu0  ;;  %v1720_v32 = vadd.f32 %v16415_v46, %v1366_v29 }
 0x1ee   : > { %14151 = vmatprep.subr.mxu1 %v3235_v17  ;;  %14162 = vmatprep.mubr.f32.mxu0 %v16300_v8 }
 0x1ef   : > { %14172 = vmatprep.subr.mxu0 %v3233_v36  ;;  %14152 = vmatpush3.msra.mxu1 %v3235_v17  ;;  %v2097_v18 = vadd.f32 %v2096_v14, %v1720_v32  ;;  %v3736_v35 = vsub.f32 %v3734_v9, %v3735_v30  ;;  %v13992_v43 = vpop.f32.mrf.mxu0 }
 0x1f0   : > { %14163 = vmatmul.mubr.f32.vlgmr.msra.gmra.mxu0 %v16524_v56  ;;  %14153 = vmatprep.subr.mxu1 %v3242_v33 }
 0x1f1   : > { %14173 = vmatpush3.msra.mxu0 %v3233_v36  ;;  %14154 = vmatpush3.msra.mxu1 %v3242_v33  ;;  %v14053_v36 = vpop.f32.mrf.mxu1  ;;  %v3737_v0 = vand.u32 4294901760, %v3736_v35 }
 0x1f2   : > { %14174 = vmatprep.subr.mxu0 %v3240_v28  ;;  %14155 = vmatprep.mubr.f32.mxu1 %v16291_v52  ;;  %v2410_v46 = vadd.f32 %v14053_v36, %v2103_v38 }
 0x1f3   : > { %14175 = vmatpush3.msra.mxu0 %v3240_v28  ;;  %14156 = vmatmul.mubr.f32.vlgmr.msra.gmra.mxu1 %v16514_v21  ;;  %v2403_v39 = vpop.f32.mrf.mxu1 }
 0x1f4   : > { %14165 = vmatprep.subr.mxu1 %v16562_v11  ;;  %14176 = vmatprep.mubr.f32.mxu0 %v16291_v52  ;;  %v2404_v28 = vadd.f32 %v2403_v39, %v2097_v18  ;;  %v16628_v44 = vand.u32 4294901760, %v2410_v46 }
 0x1f5   : > { %14186 = vmatprep.subr.mxu0 %v16594_v22  ;;  %14166 = vmatpush3.msra.mxu1 %v16562_v11  ;;  %v14056_v33 = vpop.f32.mrf.mxu1 }
 0x1f6   : > { %14177 = vmatmul.mubr.f32.vlgmr.msra.gmra.mxu0 %v16514_v21  ;;  %14167 = vmatprep.subr.mxu1 %v16565_v63  ;;  %v16631_v59 = vand.u32 4294901760, %v2404_v28  ;;  %v4236_v61 = vsub.f32 %v2410_v46, %v16628_v44 }
 0x1f7   : > { %14187 = vmatpush3.msra.mxu0 %v16594_v22  ;;  %14168 = vmatpush3.msra.mxu1 %v16565_v63 }
 0x1f8   : > { %14188 = vmatprep.subr.mxu0 %v16597_v23  ;;  %14169 = vmatprep.mubr.f32.mxu1 %v16307_v2  ;;  %v4243_v17 = vsub.f32 %v2404_v28, %v16631_v59 }
 0x1f9   : > { %14189 = vmatpush3.msra.mxu0 %v16597_v23  ;;  %14170 = vmatmul.mubr.f32.vlgmr.msra.gmra.mxu1 %v16536_v6 }
 0x1fa   : > { %14179 = vmatprep.subr.mxu1 %v16562_v11  ;;  %14190 = vmatprep.mubr.f32.mxu0 %v16321_v10  ;;  %v4244_v4 = vand.u32 4294901760, %v4243_v17 }
 0x1fb   : > { %14200 = vmatprep.subr.mxu0 %v3734_v9  ;;  %14180 = vmatpush3.msra.mxu1 %v16562_v11  ;;  %v3744_v11 = vand.u32 4294901760, %v3743_v47 }
 0x1fc   : > { %14191 = vmatmul.mubr.f32.vlgmr.msra.gmra.mxu0 %v16554_v25  ;;  %14181 = vmatprep.subr.mxu1 %v16565_v63 }
 0x1fd   : > { %14201 = vmatpush3.msra.mxu0 %v3734_v9  ;;  %14182 = vmatpush3.msra.mxu1 %v16565_v63  ;;  %v1062_v63 = vadd.f32 %v16256_v51, %v16250_v20  ;;  %v4237_v20 = vand.u32 4294901760, %v4236_v61  ;;  %v2108_v51 = vpop.f32.mrf.mxu0  ;;  %v2115_v9 = vadd.f32 %v13992_v43, %v16420_v58  ;;  %v4245_v58 = vsub.f32 %v4243_v17, %v4244_v4 }
 0x1fe   : > { %14202 = vmatprep.subr.mxu0 %v3741_v57  ;;  %14183 = vmatprep.mubr.f32.mxu1 %v16291_v52 }
 0x1ff   : > { %14203 = vmatpush3.msra.mxu0 %v3741_v57  ;;  %14184 = vmatmul.mubr.f32.vlgmr.msra.gmra.mxu1 %v16514_v21  ;;  %v1380_v19 = vadd.f32 %v16418_v7, %v1062_v63  ;;  %v4238_v57 = vsub.f32 %v4236_v61, %v4237_v20  ;;  %v13995_v18 = vpop.f32.mrf.mxu0 }
 0x200   : > { %14193 = vmatprep.subr.mxu1 %v3737_v0  ;;  %14204 = vmatprep.mubr.f32.mxu0 %v16300_v8  ;;  %v2127_v47 = vadd.f32 %v13995_v18, %v16427_v62 }
 0x201   : > { %14214 = vmatprep.subr.mxu0 %v3735_v30  ;;  %14194 = vmatpush3.msra.mxu1 %v3737_v0  ;;  %v1736_v7 = vadd.f32 %v16422_v42, %v1380_v19  ;;  %v2422_v42 = vadd.f32 %v14056_v33, %v2115_v9  ;;  %v4239_v36 = vand.u32 4294901760, %v4238_v57 }
 0x202   : > { %14205 = vmatmul.mubr.f32.vlgmr.msra.gmra.mxu0 %v16524_v56  ;;  %14195 = vmatprep.subr.mxu1 %v3744_v11 }
 0x203   : > { %14215 = vmatpush3.msra.mxu0 %v3735_v30  ;;  %14196 = vmatpush3.msra.mxu1 %v3744_v11  ;;  %v2109_v29 = vadd.f32 %v2108_v51, %v1736_v7  ;;  %v2415_v30 = vpop.f32.mrf.mxu1  ;;  %v16663_v32 = vand.u32 4294901760, %v2422_v42 }
 0x204   : > { %14216 = vmatprep.subr.mxu0 %v3742_v13  ;;  %14197 = vmatprep.mubr.f32.mxu1 %v16291_v52 }
 0x205   : > { %14217 = vmatpush3.msra.mxu0 %v3742_v13  ;;  %14198 = vmatmul.mubr.f32.vlgmr.msra.gmra.mxu1 %v16514_v21  ;;  %v2416_v14 = vadd.f32 %v2415_v30, %v2109_v29  ;;  %v4738_v13 = vsub.f32 %v2422_v42, %v16663_v32  ;;  %v14059_v46 = vpop.f32.mrf.mxu1 }
 0x206   : > { %14207 = vmatprep.subr.mxu1 %v16594_v22  ;;  %14218 = vmatprep.mubr.f32.mxu0 %v16291_v52 }
 0x207   : > { %14228 = vmatprep.subr.mxu0 %v16628_v44  ;;  %14208 = vmatpush3.msra.mxu1 %v16594_v22  ;;  %v16666_v38 = vand.u32 4294901760, %v2416_v14  ;;  %v2427_v63 = vpop.f32.mrf.mxu1 }
 0x208   : > { %14219 = vmatmul.mubr.f32.vlgmr.msra.gmra.mxu0 %v16514_v21  ;;  %14209 = vmatprep.subr.mxu1 %v16597_v23 }
 0x209   : > { %14229 = vmatpush3.msra.mxu0 %v16628_v44  ;;  %14210 = vmatpush3.msra.mxu1 %v16597_v23  ;;  %v4745_v39 = vsub.f32 %v2416_v14, %v16666_v38  ;;  %v14062_v9 = vpop.f32.mrf.mxu1 }
 0x20a   : > { %14230 = vmatprep.subr.mxu0 %v16631_v59  ;;  %14211 = vmatprep.mubr.f32.mxu1 %v16307_v2 }
 0x20b   : > { %14231 = vmatpush3.msra.mxu0 %v16631_v59  ;;  %14212 = vmatmul.mubr.f32.vlgmr.msra.gmra.mxu1 %v16536_v6  ;;  %v4746_v28 = vand.u32 4294901760, %v4745_v39  ;;  %v2439_v42 = vpop.f32.mrf.mxu1 }
 0x20c   : > { %14221 = vmatprep.subr.mxu1 %v16594_v22  ;;  %14232 = vmatprep.mubr.f32.mxu0 %v16321_v10 }
 0x20d   : > { %14242 = vmatprep.subr.mxu0 %v4236_v61  ;;  %14222 = vmatpush3.msra.mxu1 %v16594_v22  ;;  %v4246_v22 = vand.u32 4294901760, %v4245_v58  ;;  %v4747_v62 = vsub.f32 %v4745_v39, %v4746_v28 }
 0x20e   : > { %14233 = vmatmul.mubr.f32.vlgmr.msra.gmra.mxu0 %v16554_v25  ;;  %14223 = vmatprep.subr.mxu1 %v16597_v23 }
 0x20f   : > { %14243 = vmatpush3.msra.mxu0 %v4236_v61  ;;  %14224 = vmatpush3.msra.mxu1 %v16597_v23  ;;  %v1074_v23 = vadd.f32 %v16266_v60, %v16260_v48  ;;  %v4739_v48 = vand.u32 4294901760, %v4738_v13  ;;  %v2120_v60 = vpop.f32.mrf.mxu0 }
 0x210   : > { %14244 = vmatprep.subr.mxu0 %v4243_v17  ;;  %14225 = vmatprep.mubr.f32.mxu1 %v16291_v52 }
 0x211   : > { %14245 = vmatpush3.msra.mxu0 %v4243_v17  ;;  %14226 = vmatmul.mubr.f32.vlgmr.msra.gmra.mxu1 %v16514_v21  ;;  %v1394_v35 = vadd.f32 %v16425_v26, %v1074_v23  ;;  %v4740_v11 = vsub.f32 %v4738_v13, %v4739_v48  ;;  %v13998_v51 = vpop.f32.mrf.mxu0 }
 0x212   : > { %14235 = vmatprep.subr.mxu1 %v4239_v36  ;;  %14246 = vmatprep.mubr.f32.mxu0 %v16300_v8 }
 0x213   : > { %14256 = vmatprep.subr.mxu0 %v4237_v20  ;;  %14236 = vmatpush3.msra.mxu1 %v4239_v36  ;;  %v1752_v26 = vadd.f32 %v16429_v37, %v1394_v35  ;;  %v2434_v37 = vadd.f32 %v14059_v46, %v2127_v47  ;;  %v4741_v43 = vand.u32 4294901760, %v4740_v11  ;;  %v17958_v46 = vld [vmem:[#allocation28_spill] sm:$0xff] }
 0x214   : > { %14247 = vmatmul.mubr.f32.vlgmr.msra.gmra.mxu0 %v16524_v56  ;;  %14237 = vmatprep.subr.mxu1 %v4246_v22 }
 0x215   : > { %14257 = vmatpush3.msra.mxu0 %v4237_v20  ;;  %14238 = vmatpush3.msra.mxu1 %v4246_v22  ;;  %v2121_v0 = vadd.f32 %v2120_v60, %v1752_v26  ;;  %v16698_v19 = vand.u32 4294901760, %v2434_v37  ;;  %v14065_v60 = vpop.f32.mrf.mxu1 }
 0x216   : > { %14258 = vmatprep.subr.mxu0 %v4244_v4  ;;  %14239 = vmatprep.mubr.f32.mxu1 %v16291_v52 }
 0x217   : > { %14259 = vmatpush3.msra.mxu0 %v4244_v4  ;;  %14240 = vmatmul.mubr.f32.vlgmr.msra.gmra.mxu1 %v16514_v21  ;;  %v2428_v61 = vadd.f32 %v2427_v63, %v2121_v0  ;;  %v5240_v20 = vsub.f32 %v2434_v37, %v16698_v19  ;;  %v2139_v4 = vadd.f32 %v13998_v51, %v16434_v34  ;;  %v2451_v47 = vpop.f32.mrf.mxu1 }
 0x218   : > { %14249 = vmatprep.subr.mxu1 %v16628_v44  ;;  %14260 = vmatprep.mubr.f32.mxu0 %v16291_v52 }
 0x219   : > { %14270 = vmatprep.subr.mxu0 %v16663_v32  ;;  %14250 = vmatpush3.msra.mxu1 %v16628_v44  ;;  %v16701_v17 = vand.u32 4294901760, %v2428_v61  ;;  %v14068_v37 = vpop.f32.mrf.mxu1 }
 0x21a   : > { %14261 = vmatmul.mubr.f32.vlgmr.msra.gmra.mxu0 %v16514_v21  ;;  %14251 = vmatprep.subr.mxu1 %v16631_v59 }
 0x21b   : > { %14271 = vmatpush3.msra.mxu0 %v16663_v32  ;;  %14252 = vmatpush3.msra.mxu1 %v16631_v59  ;;  %v5247_v7 = vsub.f32 %v2428_v61, %v16701_v17 }
 0x21c   : > { %14272 = vmatprep.subr.mxu0 %v16666_v38  ;;  %14253 = vmatprep.mubr.f32.mxu1 %v16307_v2 }
 0x21d   : > { %14273 = vmatpush3.msra.mxu0 %v16666_v38  ;;  %14254 = vmatmul.mubr.f32.vlgmr.msra.gmra.mxu1 %v16536_v6  ;;  %v5248_v29 = vand.u32 4294901760, %v5247_v7 }
 0x21e   : > { %14263 = vmatprep.subr.mxu1 %v16628_v44  ;;  %14274 = vmatprep.mubr.f32.mxu0 %v16321_v10 }
 0x21f   : > { %14284 = vmatprep.subr.mxu0 %v4738_v13  ;;  %14264 = vmatpush3.msra.mxu1 %v16628_v44  ;;  %v4748_v44 = vand.u32 4294901760, %v4747_v62  ;;  %v5249_v34 = vsub.f32 %v5247_v7, %v5248_v29 }
 0x220   : > { %14275 = vmatmul.mubr.f32.vlgmr.msra.gmra.mxu0 %v16554_v25  ;;  %14265 = vmatprep.subr.mxu1 %v16631_v59 }
 0x221   : > { %14285 = vmatpush3.msra.mxu0 %v4738_v13  ;;  %14266 = vmatpush3.msra.mxu1 %v16631_v59  ;;  %v1086_v59 = vadd.f32 %v16276_v50, %v16270_v49  ;;  %v5241_v49 = vand.u32 4294901760, %v5240_v20  ;;  %v2132_v50 = vpop.f32.mrf.mxu0 }
 0x222   : > { %14286 = vmatprep.subr.mxu0 %v4745_v39  ;;  %14267 = vmatprep.mubr.f32.mxu1 %v16291_v52 }
 0x223   : > { %14287 = vmatpush3.msra.mxu0 %v4745_v39  ;;  %14268 = vmatmul.mubr.f32.vlgmr.msra.gmra.mxu1 %v16514_v21  ;;  %v1408_v33 = vadd.f32 %v16432_v31, %v1086_v59  ;;  %v5242_v30 = vsub.f32 %v5240_v20, %v5241_v49  ;;  %v14001_v58 = vpop.f32.mrf.mxu0  ;;  %v2463_v59 = vpop.f32.mrf.mxu1 }
 0x224   : > { %14277 = vmatprep.subr.mxu1 %v4741_v43  ;;  %14288 = vmatprep.mubr.f32.mxu0 %v16300_v8  ;;  %v2151_v26 = vadd.f32 %v14001_v58, %v17958_v46  ;;  %v17963_v46 = vld [vmem:[#allocation35_spill] sm:$0xff] }
 0x225   : > { %14298 = vmatprep.subr.mxu0 %v4739_v48  ;;  %14278 = vmatpush3.msra.mxu1 %v4741_v43  ;;  %v1768_v31 = vadd.f32 %v16436_v24, %v1408_v33  ;;  %v2446_v24 = vadd.f32 %v14062_v9, %v2139_v4  ;;  %v5243_v36 = vand.u32 4294901760, %v5242_v30  ;;  %v2144_v23 = vpop.f32.mrf.mxu0  ;;  %v17959_v33 = vld [vmem:[#allocation30_spill] sm:$0xff]  ;;  %v16787_v9 = vpop.f32.mrf.mxu1 }
 0x226   : > { %14289 = vmatmul.mubr.f32.vlgmr.msra.gmra.mxu0 %v16524_v56  ;;  %14279 = vmatprep.subr.mxu1 %v4748_v44 }
 0x227   : > { %14299 = vmatpush3.msra.mxu0 %v4739_v48  ;;  %14280 = vmatpush3.msra.mxu1 %v4748_v44  ;;  %v2133_v57 = vadd.f32 %v2132_v50, %v1768_v31  ;;  %v16733_v22 = vand.u32 4294901760, %v2446_v24  ;;  %v16743_v35 = vpop.f32.mrf.mxu0  ;;  %v17961_v31 = vld [vmem:[#allocation29_spill] sm:$0xff]  ;;  %v16799_v30 = vpop.f32.mrf.mxu1 }
 0x228   : > { %14300 = vmatprep.subr.mxu0 %v4746_v28  ;;  %14281 = vmatprep.mubr.f32.mxu1 %v16291_v52 }
 0x229   : > { %14301 = vmatpush3.msra.mxu0 %v4746_v28  ;;  %14282 = vmatmul.mubr.f32.vlgmr.msra.gmra.mxu1 %v16514_v21  ;;  %v2440_v14 = vadd.f32 %v2439_v42, %v2133_v57  ;;  %v5742_v18 = vsub.f32 %v2446_v24, %v16733_v22 }
 0x22a   : > { %14291 = vmatprep.subr.mxu1 %v16663_v32  ;;  %14302 = vmatprep.mubr.f32.mxu0 %v16291_v52 }
 0x22b   : > { %14312 = vmatprep.subr.mxu0 %v16698_v19  ;;  %14292 = vmatpush3.msra.mxu1 %v16663_v32  ;;  %v16736_v13 = vand.u32 4294901760, %v2440_v14 }
 0x22c   : > { %14303 = vmatmul.mubr.f32.vlgmr.msra.gmra.mxu0 %v16514_v21  ;;  %14293 = vmatprep.subr.mxu1 %v16666_v38 }
 0x22d   : > { %14313 = vmatpush3.msra.mxu0 %v16698_v19  ;;  %14294 = vmatpush3.msra.mxu1 %v16666_v38  ;;  %v5749_v48 = vsub.f32 %v2440_v14, %v16736_v13 }
 0x22e   : > { %14314 = vmatprep.subr.mxu0 %v16701_v17  ;;  %14295 = vmatprep.mubr.f32.mxu1 %v16307_v2 }
 0x22f   : > { %14315 = vmatpush3.msra.mxu0 %v16701_v17  ;;  %14296 = vmatmul.mubr.f32.vlgmr.msra.gmra.mxu1 %v16536_v6  ;;  %v5750_v28 = vand.u32 4294901760, %v5749_v48 }
 0x230   : > { %14305 = vmatprep.subr.mxu1 %v16663_v32  ;;  %14316 = vmatprep.mubr.f32.mxu0 %v16321_v10 }
 0x231   : > { %14326 = vmatprep.subr.mxu0 %v5240_v20  ;;  %14306 = vmatpush3.msra.mxu1 %v16663_v32  ;;  %v5250_v32 = vand.u32 4294901760, %v5249_v34  ;;  %v5751_v62 = vsub.f32 %v5749_v48, %v5750_v28  ;;  %v17962_v34 = vld [vmem:[#allocation31_spill] sm:$0xff] }
 0x232   : > { %14317 = vmatmul.mubr.f32.vlgmr.msra.gmra.mxu0 %v16554_v25  ;;  %14307 = vmatprep.subr.mxu1 %v16666_v38  ;;  %v2163_v58 = vadd.f32 %v16743_v35, %v17962_v34 }
 0x233   : > { %14327 = vmatpush3.msra.mxu0 %v5240_v20  ;;  %14308 = vmatpush3.msra.mxu1 %v16666_v38  ;;  %v1098_v38 = vadd.f32 %v16286_v15, %v16280_v27  ;;  %v5743_v27 = vand.u32 4294901760, %v5742_v18  ;;  %v16754_v15 = vpop.f32.mrf.mxu0  ;;  %v5752_v20 = vand.u32 4294901760, %v5751_v62 }
 0x234   : > { %14328 = vmatprep.subr.mxu0 %v5247_v7  ;;  %14309 = vmatprep.mubr.f32.mxu1 %v16291_v52 }
 0x235   : > { %14329 = vmatpush3.msra.mxu0 %v5247_v7  ;;  %14310 = vmatmul.mubr.f32.vlgmr.msra.gmra.mxu1 %v16514_v21  ;;  %v1422_v39 = vadd.f32 %v16439_v40, %v1098_v38  ;;  %v5744_v11 = vsub.f32 %v5742_v18, %v5743_v27  ;;  %v16766_v63 = vpop.f32.mrf.mxu0  ;;  %v17960_v7 = vld [vmem:[#allocation32_spill] sm:$0xff]  ;;  %v2470_v38 = vadd.f32 %v14068_v37, %v2163_v58  ;;  %v17967_v58 = vld [vmem:[#allocation38_spill] sm:$0xff] }
 0x236   : > { %14319 = vmatprep.subr.mxu1 %v5243_v36  ;;  %14330 = vmatprep.mubr.f32.mxu0 %v16300_v8 }
 0x237   : > { %14340 = vmatprep.subr.mxu0 %v5241_v49  ;;  %14320 = vmatpush3.msra.mxu1 %v5243_v36  ;;  %v1784_v40 = vadd.f32 %v16443_v54, %v1422_v39  ;;  %v2458_v54 = vadd.f32 %v14065_v60, %v2151_v26  ;;  %v5745_v43 = vand.u32 4294901760, %v5744_v11  ;;  %v16773_v44 = vpop.f32.mrf.mxu0  ;;  %v17964_v26 = vld [vmem:[#allocation36_spill] sm:$0xff]  ;;  %v17965_v11 = vld [vmem:[#allocation33_spill] sm:$0xff] }
 0x238   : > { %14331 = vmatmul.mubr.f32.vlgmr.msra.gmra.mxu0 %v16524_v56  ;;  %14321 = vmatprep.subr.mxu1 %v5250_v32 }
 0x239   : > { %14341 = vmatpush3.msra.mxu0 %v5241_v49  ;;  %14322 = vmatpush3.msra.mxu1 %v5250_v32  ;;  %v2145_v0 = vadd.f32 %v2144_v23, %v1784_v40  ;;  %v16782_v51 = vpop.f32.mrf.mxu0  ;;  %v1110_v49 = vadd.f32 %v17960_v7, %v17959_v33  ;;  %v16815_v23 = vpop.f32.mrf.mxu1 }
 0x23a   : > { %14342 = vmatprep.subr.mxu0 %v5248_v29  ;;  %14323 = vmatprep.mubr.f32.mxu1 %v16291_v52 }
 0x23b   : > { %14343 = vmatpush3.msra.mxu0 %v5248_v29  ;;  %14324 = vmatmul.mubr.f32.vlgmr.msra.gmra.mxu1 %v16514_v21  ;;  %v2452_v61 = vadd.f32 %v2451_v47, %v2145_v0  ;;  %v1436_v4 = vadd.f32 %v17961_v31, %v1110_v49  ;;  %v16795_v57 = vpop.f32.mrf.mxu0  ;;  %v1122_v47 = vadd.f32 %v17964_v26, %v17963_v46 }
 0x23c   : > { %14333 = vmatprep.subr.mxu1 %v16698_v19  ;;  %14344 = vmatprep.mubr.f32.mxu0 %v16291_v52 }
 0x23d   : > { %14354 = vmatprep.subr.mxu0 %v16733_v22  ;;  %14334 = vmatpush3.msra.mxu1 %v16698_v19  ;;  %v1800_v24 = vadd.f32 %v16450_v41, %v1436_v4  ;;  %v16810_v36 = vpop.f32.mrf.mxu0 }
 0x23e   : > { %14345 = vmatmul.mubr.f32.vlgmr.msra.gmra.mxu0 %v16514_v21  ;;  %14335 = vmatprep.subr.mxu1 %v16701_v17 }
 0x23f   : > { %14355 = vmatpush3.msra.mxu0 %v16733_v22  ;;  %14336 = vmatpush3.msra.mxu1 %v16701_v17  ;;  %v2157_v32 = vadd.f32 %v16754_v15, %v1800_v24  ;;  %v16822_v35 = vpop.f32.mrf.mxu0 }
 0x240   : > { %14356 = vmatprep.subr.mxu0 %v16736_v13  ;;  %14337 = vmatprep.mubr.f32.mxu1 %v16307_v2 }
 0x241   : > { %14357 = vmatpush3.msra.mxu0 %v16736_v13  ;;  %14338 = vmatmul.mubr.f32.vlgmr.msra.gmra.mxu1 %v16536_v6  ;;  %v2464_v39 = vadd.f32 %v2463_v59, %v2157_v32  ;;  %v16832_v15 = vpop.f32.mrf.mxu0 }
 0x242   : > { %14347 = vmatprep.subr.mxu1 %v16698_v19  ;;  %14358 = vmatprep.mubr.f32.mxu0 %v16321_v10 }
 0x243   : > { %14368 = vmatprep.subr.mxu0 %v5742_v18  ;;  %14348 = vmatpush3.msra.mxu1 %v16698_v19  ;;  %v16776_v19 = vand.u32 4294901760, %v2458_v54  ;;  %v16843_v0 = vpop.f32.mrf.mxu0 }
 0x244   : > { %14359 = vmatmul.mubr.f32.vlgmr.msra.gmra.mxu0 %v16554_v25  ;;  %14349 = vmatprep.subr.mxu1 %v16701_v17 }
 0x245   : > { %14369 = vmatpush3.msra.mxu0 %v5742_v18  ;;  %14350 = vmatpush3.msra.mxu1 %v16701_v17  ;;  %v16779_v17 = vand.u32 4294901760, %v2452_v61  ;;  %v6244_v50 = vsub.f32 %v2458_v54, %v16776_v19  ;;  %v1450_v54 = vadd.f32 %v17965_v11, %v1122_v47 }
 0x246   : > { %14370 = vmatprep.subr.mxu0 %v5749_v48  ;;  %14351 = vmatprep.mubr.f32.mxu1 %v16291_v52 }
 0x247   : > { %14371 = vmatpush3.msra.mxu0 %v5749_v48  ;;  %14352 = vmatmul.mubr.f32.vlgmr.msra.gmra.mxu1 %v16514_v21  ;;  %v6251_v29 = vsub.f32 %v2452_v61, %v16779_v17  ;;  %v6245_v42 = vand.u32 4294901760, %v6244_v50  ;;  %v16825_v48 = vpop.f32.mrf.mxu1  ;;  %v1816_v59 = vadd.f32 %v16457_v1, %v1450_v54 }
 0x248   : > { %14361 = vmatprep.subr.mxu1 %v5745_v43  ;;  %14372 = vmatprep.mubr.f32.mxu0 %v16300_v8 }
 0x249   : > { %14382 = vmatprep.subr.mxu0 %v5743_v27  ;;  %14362 = vmatpush3.msra.mxu1 %v5745_v43  ;;  %v6252_v14 = vand.u32 4294901760, %v6251_v29  ;;  %v6246_v41 = vsub.f32 %v6244_v50, %v6245_v42  ;;  %v16836_v40 = vpop.f32.mrf.mxu1  ;;  %v16856_v43 = vpop.f32.mrf.mxu0 }
 0x24a   : > { %14373 = vmatmul.mubr.f32.vlgmr.msra.gmra.mxu0 %v16524_v56  ;;  %14363 = vmatprep.subr.mxu1 %v5752_v20 }
 0x24b   : > { %14383 = vmatpush3.msra.mxu0 %v5743_v27  ;;  %14364 = vmatpush3.msra.mxu1 %v5752_v20  ;;  %v6253_v18 = vsub.f32 %v6251_v29, %v6252_v14  ;;  %v6247_v60 = vand.u32 4294901760, %v6246_v41  ;;  %v16848_v62 = vpop.f32.mrf.mxu1  ;;  %v17966_v20 = vld [vmem:[#allocation34_spill] sm:$0xff]  ;;  %v16872_v31 = vpop.f32.mrf.mxu0 }
 0x24c   : > { %14384 = vmatprep.subr.mxu0 %v5750_v28  ;;  %14365 = vmatprep.mubr.f32.mxu1 %v16291_v52  ;;  %v2175_v33 = vadd.f32 %v16766_v63, %v17966_v20 }
 0x24d   : > { %14385 = vmatpush3.msra.mxu0 %v5750_v28  ;;  %14366 = vmatmul.mubr.f32.vlgmr.msra.gmra.mxu1 %v16514_v21  ;;  %v6254_v27 = vand.u32 4294901760, %v6253_v18  ;;  %v16863_v7 = vpop.f32.mrf.mxu1  ;;  %v16883_v24 = vpop.f32.mrf.mxu0  ;;  %v17969_v18 = vld [vmem:[#allocation37_spill] sm:$0xff] }
 0x24e   : > { %14375 = vmatprep.subr.mxu1 %v16733_v22  ;;  %14386 = vmatprep.mubr.f32.mxu0 %v16291_v52  ;;  %v2482_v63 = vadd.f32 %v16787_v9, %v2175_v33 }
 0x24f   : > { %14396 = vmatprep.subr.mxu0 %v16776_v19  ;;  %14376 = vmatpush3.msra.mxu1 %v16733_v22  ;;  %v16876_v4 = vpop.f32.mrf.mxu1 }
 0x250   : > { %14387 = vmatmul.mubr.f32.vlgmr.msra.gmra.mxu0 %v16514_v21  ;;  %14377 = vmatprep.subr.mxu1 %v16736_v13 }
 0x251   : > { %14397 = vmatpush3.msra.mxu0 %v16776_v19  ;;  %14378 = vmatpush3.msra.mxu1 %v16736_v13  ;;  %v16888_v9 = vpop.f32.mrf.mxu1 }
 0x252   : > { %14398 = vmatprep.subr.mxu0 %v16779_v17  ;;  %14379 = vmatprep.mubr.f32.mxu1 %v16307_v2 }
 0x253   : > { %14399 = vmatpush3.msra.mxu0 %v16779_v17  ;;  %14380 = vmatmul.mubr.f32.vlgmr.msra.gmra.mxu1 %v16536_v6 }
 0x254   : > { %14389 = vmatprep.subr.mxu1 %v16733_v22  ;;  %14400 = vmatprep.mubr.f32.mxu0 %v16321_v10 }
 0x255   : > { %14410 = vmatprep.subr.mxu0 %v6244_v50  ;;  %14390 = vmatpush3.msra.mxu1 %v16733_v22  ;;  %v16829_v22 = vand.u32 4294901760, %v2470_v38 }
 0x256   : > { %14401 = vmatmul.mubr.f32.vlgmr.msra.gmra.mxu0 %v16554_v25  ;;  %14391 = vmatprep.subr.mxu1 %v16736_v13 }
 0x257   : > { %14411 = vmatpush3.msra.mxu0 %v6244_v50  ;;  %14392 = vmatpush3.msra.mxu1 %v16736_v13  ;;  %v16834_v13 = vand.u32 4294901760, %v2464_v39  ;;  %v6746_v28 = vsub.f32 %v2470_v38, %v16829_v22  ;;  %v2169_v50 = vadd.f32 %v16773_v44, %v1816_v59  ;;  %v16899_v38 = vpop.f32.mrf.mxu1 }
 0x258   : > { %14412 = vmatprep.subr.mxu0 %v6251_v29  ;;  %14393 = vmatprep.mubr.f32.mxu1 %v16291_v52 }
 0x259   : > { %14413 = vmatpush3.msra.mxu0 %v6251_v29  ;;  %14394 = vmatmul.mubr.f32.vlgmr.msra.gmra.mxu1 %v16514_v21  ;;  %v6753_v37 = vsub.f32 %v2464_v39, %v16834_v13  ;;  %v6747_v61 = vand.u32 4294901760, %v6746_v28  ;;  %v2476_v44 = vadd.f32 %v16799_v30, %v2169_v50  ;;  %v16894_v30 = vpop.f32.mrf.mxu0  ;;  %v16911_v46 = vpop.f32.mrf.mxu1 }
 0x25a   : > { %14403 = vmatprep.subr.mxu1 %v6247_v60  ;;  %14414 = vmatprep.mubr.f32.mxu0 %v16300_v8 }
 0x25b   : > { %14424 = vmatprep.subr.mxu0 %v6245_v42  ;;  %14404 = vmatpush3.msra.mxu1 %v6247_v60  ;;  %v6754_v49 = vand.u32 4294901760, %v6753_v37  ;;  %v6748_v1 = vsub.f32 %v6746_v28, %v6747_v61  ;;  %v16927_v59 = vpop.f32.mrf.mxu1 }
 0x25c   : > { %14415 = vmatmul.mubr.f32.vlgmr.msra.gmra.mxu0 %v16524_v56  ;;  %14405 = vmatprep.subr.mxu1 %v6254_v27 }
 0x25d   : > { %14425 = vmatpush3.msra.mxu0 %v6245_v42  ;;  %14406 = vmatpush3.msra.mxu1 %v6254_v27  ;;  %v6755_v29 = vsub.f32 %v6753_v37, %v6754_v49  ;;  %v6749_v42 = vand.u32 4294901760, %v6748_v1  ;;  %v16907_v27 = vpop.f32.mrf.mxu0 }
 0x25e   : > { %14426 = vmatprep.subr.mxu0 %v6252_v14  ;;  %14407 = vmatprep.mubr.f32.mxu1 %v16291_v52 }
 0x25f   : > { %14427 = vmatpush3.msra.mxu0 %v6252_v14  ;;  %14408 = vmatmul.mubr.f32.vlgmr.msra.gmra.mxu1 %v16514_v21  ;;  %v6756_v34 = vand.u32 4294901760, %v6755_v29  ;;  %v17968_v14 = vld [vmem:[#allocation41_spill] sm:$0xff]  ;;  %v17972_v29 = vld [vmem:[#allocation44_spill] sm:$0xff] }
 0x260   : > { %14417 = vmatprep.subr.mxu1 %v16776_v19  ;;  %14428 = vmatprep.mubr.f32.mxu0 %v16291_v52  ;;  %v1134_v32 = vadd.f32 %v17968_v14, %v17967_v58  ;;  %v17973_v58 = vld [vmem:[#allocation40_spill] sm:$0xff] }
 0x261   : > { %14438 = vmatprep.subr.mxu0 %v16829_v22  ;;  %14418 = vmatpush3.msra.mxu1 %v16776_v19 }
 0x262   : > { %14429 = vmatmul.mubr.f32.vlgmr.msra.gmra.mxu0 %v16514_v21  ;;  %14419 = vmatprep.subr.mxu1 %v16779_v17  ;;  %v1464_v39 = vadd.f32 %v17969_v18, %v1134_v32 }
 0x263   : > { %14439 = vmatpush3.msra.mxu0 %v16829_v22  ;;  %14420 = vmatpush3.msra.mxu1 %v16779_v17 }
 0x264   : > { %14440 = vmatprep.subr.mxu0 %v16834_v13  ;;  %14421 = vmatprep.mubr.f32.mxu1 %v16307_v2  ;;  %v1832_v47 = vadd.f32 %v16464_v3, %v1464_v39 }
 0x265   : > { %14441 = vmatpush3.msra.mxu0 %v16834_v13  ;;  %14422 = vmatmul.mubr.f32.vlgmr.msra.gmra.mxu1 %v16536_v6 }
 0x266   : > { %14431 = vmatprep.subr.mxu1 %v16776_v19  ;;  %14442 = vmatprep.mubr.f32.mxu0 %v16321_v10 }
 0x267   : > { %14452 = vmatprep.subr.mxu0 %v6746_v28  ;;  %14432 = vmatpush3.msra.mxu1 %v16776_v19  ;;  %v16886_v19 = vand.u32 4294901760, %v2482_v63 }
 0x268   : > { %14443 = vmatmul.mubr.f32.vlgmr.msra.gmra.mxu0 %v16554_v25  ;;  %14433 = vmatprep.subr.mxu1 %v16779_v17 }
 0x269   : > { %14453 = vmatpush3.msra.mxu0 %v6746_v28  ;;  %14434 = vmatpush3.msra.mxu1 %v16779_v17  ;;  %v16891_v17 = vand.u32 4294901760, %v2476_v44  ;;  %v7248_v41 = vsub.f32 %v2482_v63, %v16886_v19  ;;  %v17970_v28 = vld [vmem:[#allocation39_spill] sm:$0xff] }
 0x26a   : > { %14454 = vmatprep.subr.mxu0 %v6753_v37  ;;  %14435 = vmatprep.mubr.f32.mxu1 %v16291_v52  ;;  %v2187_v11 = vadd.f32 %v16782_v51, %v17970_v28  ;;  %v17971_v63 = vld [vmem:[#allocation43_spill] sm:$0xff] }
 0x26b   : > { %14455 = vmatpush3.msra.mxu0 %v6753_v37  ;;  %14436 = vmatmul.mubr.f32.vlgmr.msra.gmra.mxu1 %v16514_v21  ;;  %v7255_v60 = vsub.f32 %v2476_v44, %v16891_v17  ;;  %v7249_v26 = vand.u32 4294901760, %v7248_v41  ;;  %v16922_v37 = vpop.f32.mrf.mxu0  ;;  %v1146_v44 = vadd.f32 %v17972_v29, %v17971_v63  ;;  %v17976_v63 = vld [vmem:[#allocation46_spill] sm:$0xff] }
 0x26c   : > { %14445 = vmatprep.subr.mxu1 %v6749_v42  ;;  %14456 = vmatprep.mubr.f32.mxu0 %v16300_v8  ;;  %v2494_v51 = vadd.f32 %v16815_v23, %v2187_v11 }
 0x26d   : > { %14466 = vmatprep.subr.mxu0 %v6747_v61  ;;  %14446 = vmatpush3.msra.mxu1 %v6749_v42  ;;  %v7256_v54 = vand.u32 4294901760, %v7255_v60  ;;  %v7250_v3 = vsub.f32 %v7248_v41, %v7249_v26  ;;  %v16935_v33 = vpop.f32.mrf.mxu0  ;;  %v1478_v14 = vadd.f32 %v17973_v58, %v1146_v44  ;;  %v17977_v58 = vld [vmem:[#allocation49_spill] sm:$0xff] }
 0x26e   : > { %14457 = vmatmul.mubr.f32.vlgmr.msra.gmra.mxu0 %v16524_v56  ;;  %14447 = vmatprep.subr.mxu1 %v6756_v34  ;;  %v16943_v23 = vand.u32 4294901760, %v2494_v51 }
 0x26f   : > { %14467 = vmatpush3.msra.mxu0 %v6747_v61  ;;  %14448 = vmatpush3.msra.mxu1 %v6756_v34  ;;  %v2181_v61 = vadd.f32 %v16795_v57, %v1832_v47  ;;  %v7257_v20 = vsub.f32 %v7255_v60, %v7256_v54  ;;  %v16946_v1 = vpop.f32.mrf.mxu0 }
 0x270   : > { %14468 = vmatprep.subr.mxu0 %v6754_v49  ;;  %14449 = vmatprep.mubr.f32.mxu1 %v16291_v52  ;;  %v7750_v42 = vsub.f32 %v2494_v51, %v16943_v23 }
 0x271   : > { %14469 = vmatpush3.msra.mxu0 %v6754_v49  ;;  %14450 = vmatmul.mubr.f32.vlgmr.msra.gmra.mxu1 %v16514_v21  ;;  %v2488_v57 = vadd.f32 %v16825_v48, %v2181_v61  ;;  %v16939_v49 = vpop.f32.mrf.mxu1  ;;  %v7258_v50 = vand.u32 4294901760, %v7257_v20  ;;  %v16957_v34 = vpop.f32.mrf.mxu0 }
 0x272   : > { %14459 = vmatprep.subr.mxu1 %v16829_v22  ;;  %14470 = vmatprep.mubr.f32.mxu0 %v16291_v52  ;;  %v7751_v18 = vand.u32 4294901760, %v7750_v42 }
 0x273   : > { %14480 = vmatprep.subr.mxu0 %v16886_v19  ;;  %14460 = vmatpush3.msra.mxu1 %v16829_v22  ;;  %v16948_v48 = vand.u32 4294901760, %v2488_v57  ;;  %v16970_v39 = vpop.f32.mrf.mxu0 }
 0x274   : > { %14471 = vmatmul.mubr.f32.vlgmr.msra.gmra.mxu0 %v16514_v21  ;;  %14461 = vmatprep.subr.mxu1 %v16834_v13 }
 0x275   : > { %14481 = vmatpush3.msra.mxu0 %v16886_v19  ;;  %14462 = vmatpush3.msra.mxu1 %v16834_v13  ;;  %v7757_v32 = vsub.f32 %v2488_v57, %v16948_v48  ;;  %v16986_v61 = vpop.f32.mrf.mxu0 }
 0x276   : > { %14482 = vmatprep.subr.mxu0 %v16891_v17  ;;  %14463 = vmatprep.mubr.f32.mxu1 %v16307_v2 }
 0x277   : > { %14483 = vmatpush3.msra.mxu0 %v16891_v17  ;;  %14464 = vmatmul.mubr.f32.vlgmr.msra.gmra.mxu1 %v16536_v6  ;;  %v7758_v11 = vand.u32 4294901760, %v7757_v32  ;;  %v16997_v57 = vpop.f32.mrf.mxu0 }
 0x278   : > { %14473 = vmatprep.subr.mxu1 %v16829_v22  ;;  %14484 = vmatprep.mubr.f32.mxu0 %v16321_v10 }
 0x279   : > { %14494 = vmatprep.subr.mxu0 %v7248_v41  ;;  %14474 = vmatpush3.msra.mxu1 %v16829_v22  ;;  %v7251_v22 = vand.u32 4294901760, %v7250_v3  ;;  %v7759_v51 = vsub.f32 %v7757_v32, %v7758_v11 }
 0x27a   : > { %14485 = vmatmul.mubr.f32.vlgmr.msra.gmra.mxu0 %v16554_v25  ;;  %14475 = vmatprep.subr.mxu1 %v16834_v13 }
 0x27b   : > { %14495 = vmatpush3.msra.mxu0 %v7248_v41  ;;  %14476 = vmatpush3.msra.mxu1 %v16834_v13  ;;  %v16950_v13 = vpop.f32.mrf.mxu1 }
 0x27c   : > { %14496 = vmatprep.subr.mxu0 %v7255_v60  ;;  %14477 = vmatprep.mubr.f32.mxu1 %v16291_v52 }
 0x27d   : > { %14497 = vmatpush3.msra.mxu0 %v7255_v60  ;;  %14478 = vmatmul.mubr.f32.vlgmr.msra.gmra.mxu1 %v16514_v21  ;;  %v16962_v41 = vpop.f32.mrf.mxu1  ;;  %v1848_v60 = vadd.f32 %v16471_v16, %v1478_v14  ;;  %v7752_v16 = vsub.f32 %v7750_v42, %v7751_v18 }
 0x27e   : > { %14487 = vmatprep.subr.mxu1 %v7251_v22  ;;  %14498 = vmatprep.mubr.f32.mxu0 %v16300_v8 }
 0x27f   : > { %14508 = vmatprep.subr.mxu0 %v7249_v26  ;;  %14488 = vmatpush3.msra.mxu1 %v7251_v22  ;;  %v16977_v28 = vpop.f32.mrf.mxu1  ;;  %v7753_v20 = vand.u32 4294901760, %v7752_v16  ;;  %v7760_v22 = vand.u32 4294901760, %v7759_v51 }
 0x280   : > { %14499 = vmatmul.mubr.f32.vlgmr.msra.gmra.mxu0 %v16524_v56  ;;  %14489 = vmatprep.subr.mxu1 %v7258_v50 }
 0x281   : > { %14509 = vmatpush3.msra.mxu0 %v7249_v26  ;;  %14490 = vmatpush3.msra.mxu1 %v7258_v50  ;;  %v17974_v26 = vld [vmem:[#allocation42_spill] sm:$0xff]  ;;  %v16990_v3 = vpop.f32.mrf.mxu1  ;;  %v17975_v50 = vld [vmem:[#allocation45_spill] sm:$0xff] }
 0x282   : > { %14510 = vmatprep.subr.mxu0 %v7256_v54  ;;  %14491 = vmatprep.mubr.f32.mxu1 %v16291_v52  ;;  %v2199_v47 = vadd.f32 %v16810_v36, %v17974_v26  ;;  %v1158_v29 = vadd.f32 %v17976_v63, %v17975_v50 }
 0x283   : > { %14511 = vmatpush3.msra.mxu0 %v7256_v54  ;;  %14492 = vmatmul.mubr.f32.vlgmr.msra.gmra.mxu1 %v16514_v21  ;;  %v2193_v54 = vadd.f32 %v16822_v35, %v1848_v60 }
 0x284   : > { %14501 = vmatprep.subr.mxu1 %v16886_v19  ;;  %14512 = vmatprep.mubr.f32.mxu0 %v16291_v52  ;;  %v2506_v36 = vadd.f32 %v16836_v40, %v2199_v47  ;;  %v1492_v14 = vadd.f32 %v17977_v58, %v1158_v29 }
 0x285   : > { %14522 = vmatprep.subr.mxu0 %v16943_v23  ;;  %14502 = vmatpush3.msra.mxu1 %v16886_v19  ;;  %v2500_v35 = vadd.f32 %v16848_v62, %v2193_v54  ;;  %v17978_v54 = vld [vmem:[#allocation50_spill] sm:$0xff] }
 0x286   : > { %14513 = vmatmul.mubr.f32.vlgmr.msra.gmra.mxu0 %v16514_v21  ;;  %14503 = vmatprep.subr.mxu1 %v16891_v17  ;;  %v17000_v40 = vand.u32 4294901760, %v2506_v36  ;;  %v2211_v16 = vadd.f32 %v16832_v15, %v17978_v54  ;;  %v17979_v54 = vld [vmem:[#allocation47_spill] sm:$0xff] }
 0x287   : > { %14523 = vmatpush3.msra.mxu0 %v16943_v23  ;;  %14504 = vmatpush3.msra.mxu1 %v16891_v17  ;;  %v17005_v62 = vand.u32 4294901760, %v2500_v35 }
 0x288   : > { %14524 = vmatprep.subr.mxu0 %v16948_v48  ;;  %14505 = vmatprep.mubr.f32.mxu1 %v16307_v2  ;;  %v8252_v44 = vsub.f32 %v2506_v36, %v17000_v40 }
 0x289   : > { %14525 = vmatpush3.msra.mxu0 %v16948_v48  ;;  %14506 = vmatmul.mubr.f32.vlgmr.msra.gmra.mxu1 %v16536_v6 }
 0x28a   : > { %14515 = vmatprep.subr.mxu1 %v16886_v19  ;;  %14526 = vmatprep.mubr.f32.mxu0 %v16321_v10  ;;  %v8253_v26 = vand.u32 4294901760, %v8252_v44 }
 0x28b   : > { %14536 = vmatprep.subr.mxu0 %v7750_v42  ;;  %14516 = vmatpush3.msra.mxu1 %v16886_v19  ;;  %v17002_v19 = vpop.f32.mrf.mxu1 }
 0x28c   : > { %14527 = vmatmul.mubr.f32.vlgmr.msra.gmra.mxu0 %v16554_v25  ;;  %14517 = vmatprep.subr.mxu1 %v16891_v17 }
 0x28d   : > { %14537 = vmatpush3.msra.mxu0 %v7750_v42  ;;  %14518 = vmatpush3.msra.mxu1 %v16891_v17  ;;  %v17008_v17 = vpop.f32.mrf.mxu0  ;;  %v17013_v42 = vpop.f32.mrf.mxu1 }
 0x28e   : > { %14538 = vmatprep.subr.mxu0 %v7757_v32  ;;  %14519 = vmatprep.mubr.f32.mxu1 %v16291_v52 }
 0x28f   : > { %14539 = vmatpush3.msra.mxu0 %v7757_v32  ;;  %14520 = vmatmul.mubr.f32.vlgmr.msra.gmra.mxu1 %v16514_v21  ;;  %v8259_v32 = vsub.f32 %v2500_v35, %v17005_v62  ;;  %v17025_v60 = vpop.f32.mrf.mxu1 }
 0x290   : > { %14529 = vmatprep.subr.mxu1 %v7753_v20  ;;  %14540 = vmatprep.mubr.f32.mxu0 %v16300_v8 }
 0x291   : > { %14550 = vmatprep.subr.mxu0 %v7751_v18  ;;  %14530 = vmatpush3.msra.mxu1 %v7753_v20  ;;  %v8260_v36 = vand.u32 4294901760, %v8259_v32  ;;  %v17041_v20 = vpop.f32.mrf.mxu1 }
 0x292   : > { %14541 = vmatmul.mubr.f32.vlgmr.msra.gmra.mxu0 %v16524_v56  ;;  %14531 = vmatprep.subr.mxu1 %v7760_v22 }
 0x293   : > { %14551 = vmatpush3.msra.mxu0 %v7751_v18  ;;  %14532 = vmatpush3.msra.mxu1 %v7760_v22  ;;  %v17021_v18 = vpop.f32.mrf.mxu0  ;;  %v2518_v22 = vadd.f32 %v16863_v7, %v2211_v16  ;;  %v8261_v50 = vsub.f32 %v8259_v32, %v8260_v36  ;;  %v17051_v63 = vpop.f32.mrf.mxu1  ;;  %v17980_v16 = vld [vmem:[#allocation48_spill] sm:$0xff] }
 0x294   : > { %14552 = vmatprep.subr.mxu0 %v7758_v11  ;;  %14533 = vmatprep.mubr.f32.mxu1 %v16291_v52 }
 0x295   : > { %14553 = vmatpush3.msra.mxu0 %v7758_v11  ;;  %14534 = vmatmul.mubr.f32.vlgmr.msra.gmra.mxu1 %v16514_v21  ;;  %v1864_v11 = vadd.f32 %v16478_v45, %v1492_v14  ;;  %v8254_v45 = vsub.f32 %v8252_v44, %v8253_v26  ;;  %v17057_v7 = vand.u32 4294901760, %v2518_v22 }
 0x296   : > { %14543 = vmatprep.subr.mxu1 %v16943_v23  ;;  %14554 = vmatprep.mubr.f32.mxu0 %v16291_v52 }
 0x297   : > { %14564 = vmatprep.subr.mxu0 %v17000_v40  ;;  %14544 = vmatpush3.msra.mxu1 %v16943_v23  ;;  %v2205_v35 = vadd.f32 %v16843_v0, %v1864_v11  ;;  %v8255_v29 = vand.u32 4294901760, %v8254_v45  ;;  %v8754_v45 = vsub.f32 %v2518_v22, %v17057_v7 }
 0x298   : > { %14555 = vmatmul.mubr.f32.vlgmr.msra.gmra.mxu0 %v16514_v21  ;;  %14545 = vmatprep.subr.mxu1 %v16948_v48 }
 0x299   : > { %14565 = vmatpush3.msra.mxu0 %v17000_v40  ;;  %14546 = vmatpush3.msra.mxu1 %v16948_v48  ;;  %v14108_v47 = vpop.f32.mrf.mxu0  ;;  %v2512_v0 = vadd.f32 %v16876_v4, %v2205_v35  ;;  %v1170_v35 = vadd.f32 %v17980_v16, %v17979_v54 }
 0x29a   : > { %14566 = vmatprep.subr.mxu0 %v17005_v62  ;;  %14547 = vmatprep.mubr.f32.mxu1 %v16307_v2 }
 0x29b   : > { %14567 = vmatpush3.msra.mxu0 %v17005_v62  ;;  %14548 = vmatmul.mubr.f32.vlgmr.msra.gmra.mxu1 %v16536_v6  ;;  %v17038_v51 = vpop.f32.mrf.mxu0  ;;  %v17060_v58 = vand.u32 4294901760, %v2512_v0 }
 0x29c   : > { %14557 = vmatprep.subr.mxu1 %v16943_v23  ;;  %14568 = vmatprep.mubr.f32.mxu0 %v16321_v10 }
 0x29d   : > { %14578 = vmatprep.subr.mxu0 %v8252_v44  ;;  %14558 = vmatpush3.msra.mxu1 %v16943_v23  ;;  %v14122_v15 = vpop.f32.mrf.mxu0 }
 0x29e   : > { %14569 = vmatmul.mubr.f32.vlgmr.msra.gmra.mxu0 %v16554_v25  ;;  %14559 = vmatprep.subr.mxu1 %v16948_v48 }
 0x29f   : > { %14579 = vmatpush3.msra.mxu0 %v8252_v44  ;;  %14560 = vmatpush3.msra.mxu1 %v16948_v48  ;;  %v17054_v23 = vpop.f32.mrf.mxu0  ;;  %v8262_v44 = vand.u32 4294901760, %v8261_v50 }
 0x2a0   : > { %14580 = vmatprep.subr.mxu0 %v8259_v32  ;;  %14561 = vmatprep.mubr.f32.mxu1 %v16291_v52 }
 0x2a1   : > { %14581 = vmatpush3.msra.mxu0 %v8259_v32  ;;  %14562 = vmatmul.mubr.f32.vlgmr.msra.gmra.mxu1 %v16514_v21 }
 0x2a2   : > { %14571 = vmatprep.subr.mxu1 %v8255_v29  ;;  %14582 = vmatprep.mubr.f32.mxu0 %v16300_v8  ;;  %v14115_v48 = vpop.f32.mrf.mxu1 }
 0x2a3   : > { %14592 = vmatprep.subr.mxu0 %v8253_v26  ;;  %14572 = vmatpush3.msra.mxu1 %v8255_v29  ;;  %v2784_v4 = vadd.f32 %v14115_v48, %v14108_v47  ;;  %v17982_v29 = vld [vmem:[#allocation51_spill] sm:$0xff] }
 0x2a4   : > { %14583 = vmatmul.mubr.f32.vlgmr.msra.gmra.mxu0 %v16524_v56  ;;  %14573 = vmatprep.subr.mxu1 %v8262_v44  ;;  %v17063_v14 = vpop.f32.mrf.mxu1  ;;  %v14136_v32 = vpop.f32.mrf.mxu0  ;;  %v1506_v48 = vadd.f32 %v17982_v29, %v1170_v35 }
 0x2a5   : > { %14593 = vmatpush3.msra.mxu0 %v8253_v26  ;;  %14574 = vmatpush3.msra.mxu1 %v8262_v44  ;;  %v2867_v11 = vadd.f32 %v14122_v15, %v2784_v4  ;;  %v8761_v26 = vsub.f32 %v2512_v0, %v17060_v58 }
 0x2a6   : > { %14594 = vmatprep.subr.mxu0 %v8260_v36  ;;  %14575 = vmatprep.mubr.f32.mxu1 %v16291_v52  ;;  %v17069_v47 = vpop.f32.mrf.mxu0  ;;  %v1880_v0 = vadd.f32 %v16485_v53, %v1506_v48 }
 0x2a7   : > { %17981 = vst [vmem:[#allocation28_spill] sm:$0xff] %v17069_v47  ;;  %14595 = vmatpush3.msra.mxu0 %v8260_v36  ;;  %14576 = vmatmul.mubr.f32.vlgmr.msra.gmra.mxu1 %v16514_v21  ;;  %v14129_v50 = vpop.f32.mrf.mxu1  ;;  %v8755_v36 = vand.u32 4294901760, %v8754_v45  ;;  %v8762_v16 = vand.u32 4294901760, %v8761_v26 }
 0x2a8   : > { %14585 = vmatprep.subr.mxu1 %v17000_v40  ;;  %14596 = vmatprep.mubr.f32.mxu0 %v16291_v52  ;;  %v2950_v15 = vadd.f32 %v14129_v50, %v2867_v11  ;;  %v17984_v11 = vld [vmem:[#allocation52_spill] sm:$0xff]  ;;  %v2217_v50 = vadd.f32 %v16872_v31, %v1880_v0 }
 0x2a9   : > { %14606 = vmatprep.subr.mxu0 %v17057_v7  ;;  %14586 = vmatpush3.msra.mxu1 %v17000_v40  ;;  %v17078_v22 = vpop.f32.mrf.mxu1  ;;  %v2223_v54 = vadd.f32 %v16856_v43, %v17984_v11  ;;  %v8756_v53 = vsub.f32 %v8754_v45, %v8755_v36 }
 0x2aa   : > { %17983 = vst [vmem:[#allocation30_spill] sm:$0xff] %v17078_v22  ;;  %14597 = vmatmul.mubr.f32.vlgmr.msra.gmra.mxu0 %v16514_v21  ;;  %14587 = vmatprep.subr.mxu1 %v17005_v62  ;;  %v3033_v44 = vadd.f32 %v14136_v32, %v2950_v15  ;;  %v14150_v4 = vpop.f32.mrf.mxu0  ;;  %v8763_v15 = vsub.f32 %v8761_v26, %v8762_v16 }
 0x2ab   : > { %14607 = vmatpush3.msra.mxu0 %v17057_v7  ;;  %14588 = vmatpush3.msra.mxu1 %v17005_v62  ;;  %v2530_v48 = vadd.f32 %v16888_v9, %v2223_v54  ;;  %v2524_v0 = vadd.f32 %v16899_v38, %v2217_v50 }
 0x2ac   : > { %14608 = vmatprep.subr.mxu0 %v17060_v58  ;;  %14589 = vmatprep.mubr.f32.mxu1 %v16307_v2  ;;  %v3188_v35 = vpop.f32.mrf.mxu0  ;;  %v8764_v54 = vand.u32 4294901760, %v8763_v15 }
 0x2ad   : > { %14609 = vmatpush3.msra.mxu0 %v17060_v58  ;;  %14590 = vmatmul.mubr.f32.vlgmr.msra.gmra.mxu1 %v16536_v6  ;;  %v14143_v32 = vpop.f32.mrf.mxu1  ;;  %v17106_v11 = vand.u32 4294901760, %v2530_v48  ;;  %v17109_v38 = vand.u32 4294901760, %v2524_v0 }
 0x2ae   : > { %14599 = vmatprep.subr.mxu1 %v17000_v40  ;;  %14610 = vmatprep.mubr.f32.mxu0 %v16321_v10  ;;  %v17094_v29 = vadd.f32 %v14143_v32, %v3033_v44  ;;  %v8757_v44 = vand.u32 4294901760, %v8756_v53  ;;  %v17986_v53 = vld [vmem:[#allocation16_spill] sm:$0xff] }
 0x2af   : > { %14620 = vmatprep.subr.mxu0 %v8754_v45  ;;  %14600 = vmatpush3.msra.mxu1 %v17000_v40  ;;  %v17097_v43 = vpop.f32.mrf.mxu1  ;;  %v9256_v22 = vsub.f32 %v2530_v48, %v17106_v11 }
 0x2b0   : > { %17985 = vst [vmem:[#allocation32_spill] sm:$0xff] %v17097_v43  ;;  %14611 = vmatmul.mubr.f32.vlgmr.msra.gmra.mxu0 %v16554_v25  ;;  %14601 = vmatprep.subr.mxu1 %v17005_v62  ;;  %v14164_v31 = vpop.f32.mrf.mxu0  ;;  %v17987_v43 = vld [vmem:[#allocation17_spill] sm:$0xff] }
 0x2b1   : > { %14621 = vmatpush3.msra.mxu0 %v8754_v45  ;;  %14602 = vmatpush3.msra.mxu1 %v17005_v62  ;;  %v1182_v47 = vadd.f32 %v17987_v43, %v17986_v53 }
 0x2b2   : > { %14622 = vmatprep.subr.mxu0 %v8761_v26  ;;  %14603 = vmatprep.mubr.f32.mxu1 %v16291_v52  ;;  %v3361_v40 = vpop.f32.mrf.mxu0 }
 0x2b3   : > { %14623 = vmatpush3.msra.mxu0 %v8761_v26  ;;  %14604 = vmatmul.mubr.f32.vlgmr.msra.gmra.mxu1 %v16514_v21  ;;  %v14157_v9 = vpop.f32.mrf.mxu1 }
 0x2b4   : > { %14613 = vmatprep.subr.mxu1 %v8757_v44  ;;  %14624 = vmatprep.mubr.f32.mxu0 %v16300_v8  ;;  %v3286_v45 = vadd.f32 %v14157_v9, %v14150_v4  ;;  %v17988_v9 = vld [vmem:[#allocation53_spill] sm:$0xff] }
 0x2b5   : > { %14634 = vmatprep.subr.mxu0 %v8755_v36  ;;  %14614 = vmatpush3.msra.mxu1 %v8757_v44  ;;  %v3279_v62 = vpop.f32.mrf.mxu1 }
 0x2b6   : > { %14625 = vmatmul.mubr.f32.vlgmr.msra.gmra.mxu0 %v16524_v56  ;;  %14615 = vmatprep.subr.mxu1 %v8764_v54  ;;  %v3280_v32 = vadd.f32 %v3279_v62, %v3188_v35  ;;  %v3369_v26 = vadd.f32 %v14164_v31, %v3286_v45  ;;  %v14178_v50 = vpop.f32.mrf.mxu0  ;;  %v1520_v35 = vadd.f32 %v17988_v9, %v1182_v47  ;;  %v17990_v45 = vld [vmem:[#allocation54_spill] sm:$0xff] }
 0x2b7   : > { %14635 = vmatpush3.msra.mxu0 %v8755_v36  ;;  %14616 = vmatpush3.msra.mxu1 %v8764_v54  ;;  %v9263_v31 = vsub.f32 %v2524_v0, %v17109_v38  ;;  %v17989_v0 = vld [vmem:[#allocation55_spill] sm:$0xff]  ;;  %v2235_v62 = vadd.f32 %v16883_v24, %v17990_v45 }
 0x2b8   : > { %14636 = vmatprep.subr.mxu0 %v8762_v16  ;;  %14617 = vmatprep.mubr.f32.mxu1 %v16291_v52  ;;  %v3362_v4 = vadd.f32 %v3361_v40, %v3280_v32  ;;  %v3528_v15 = vpop.f32.mrf.mxu0  ;;  %v1896_v54 = vadd.f32 %v17989_v0, %v1520_v35 }
 0x2b9   : > { %14637 = vmatpush3.msra.mxu0 %v8762_v16  ;;  %14618 = vmatmul.mubr.f32.vlgmr.msra.gmra.mxu1 %v16514_v21  ;;  %v14171_v44 = vpop.f32.mrf.mxu1  ;;  %v9257_v16 = vand.u32 4294901760, %v9256_v22  ;;  %v9264_v32 = vand.u32 4294901760, %v9263_v31 }
 0x2ba   : > { %14627 = vmatprep.subr.mxu1 %v17057_v7  ;;  %14638 = vmatprep.mubr.f32.mxu0 %v16291_v52  ;;  %v3452_v36 = vadd.f32 %v14171_v44, %v3369_v26 }
 0x2bb   : > { %14648 = vmatprep.subr.mxu0 %v17106_v11  ;;  %14628 = vmatpush3.msra.mxu1 %v17057_v7  ;;  %v3443_v43 = vpop.f32.mrf.mxu1  ;;  %v9258_v44 = vsub.f32 %v9256_v22, %v9257_v16  ;;  %v9265_v35 = vsub.f32 %v9263_v31, %v9264_v32 }
 0x2bc   : > { %14639 = vmatmul.mubr.f32.vlgmr.msra.gmra.mxu0 %v16514_v21  ;;  %14629 = vmatprep.subr.mxu1 %v17060_v58  ;;  %v3444_v48 = vadd.f32 %v3443_v43, %v3362_v4  ;;  %v3535_v40 = vadd.f32 %v14178_v50, %v3452_v36  ;;  %v14192_v47 = vpop.f32.mrf.mxu0  ;;  %v2229_v4 = vadd.f32 %v16894_v30, %v1896_v54 }
 0x2bd   : > { %14649 = vmatpush3.msra.mxu0 %v17106_v11  ;;  %14630 = vmatpush3.msra.mxu1 %v17060_v58  ;;  %v9266_v0 = vand.u32 4294901760, %v9265_v35 }
 0x2be   : > { %14650 = vmatprep.subr.mxu0 %v17109_v38  ;;  %14631 = vmatprep.mubr.f32.mxu1 %v16307_v2  ;;  %v3529_v26 = vadd.f32 %v3528_v15, %v3444_v48  ;;  %v3690_v53 = vpop.f32.mrf.mxu0  ;;  %v2542_v15 = vadd.f32 %v16911_v46, %v2235_v62  ;;  %v2536_v43 = vadd.f32 %v16927_v59, %v2229_v4  ;;  %v17991_v62 = vld [vmem:[#allocation18_spill] sm:$0xff] }
 0x2bf   : > { %14651 = vmatpush3.msra.mxu0 %v17109_v38  ;;  %14632 = vmatmul.mubr.f32.vlgmr.msra.gmra.mxu1 %v16536_v6  ;;  %v14185_v50 = vpop.f32.mrf.mxu1 }
 0x2c0   : > { %14641 = vmatprep.subr.mxu1 %v17057_v7  ;;  %14652 = vmatprep.mubr.f32.mxu0 %v16321_v10  ;;  %v17137_v24 = vadd.f32 %v14185_v50, %v3535_v40  ;;  %v17149_v40 = vand.u32 4294901760, %v2542_v15  ;;  %v17152_v59 = vand.u32 4294901760, %v2536_v43 }
 0x2c1   : > { %14662 = vmatprep.subr.mxu0 %v9256_v22  ;;  %14642 = vmatpush3.msra.mxu1 %v17057_v7  ;;  %v3607_v9 = vpop.f32.mrf.mxu1  ;;  %v9259_v7 = vand.u32 4294901760, %v9258_v44 }
 0x2c2   : > { %14653 = vmatmul.mubr.f32.vlgmr.msra.gmra.mxu0 %v16554_v25  ;;  %14643 = vmatprep.subr.mxu1 %v17060_v58  ;;  %v17143_v36 = vadd.f32 %v3607_v9, %v3529_v26  ;;  %v14206_v30 = vpop.f32.mrf.mxu0  ;;  %v17992_v26 = vld [vmem:[#allocation19_spill] sm:$0xff]  ;;  %v9758_v4 = vsub.f32 %v2542_v15, %v17149_v40  ;;  %v9765_v35 = vsub.f32 %v2536_v43, %v17152_v59  ;;  %v17993_v43 = vld [vmem:[#allocation57_spill] sm:$0xff] }
 0x2c3   : > { %14663 = vmatpush3.msra.mxu0 %v9256_v22  ;;  %14644 = vmatpush3.msra.mxu1 %v17060_v58  ;;  %v1194_v50 = vadd.f32 %v17992_v26, %v17991_v62 }
 0x2c4   : > { %14664 = vmatprep.subr.mxu0 %v9263_v31  ;;  %14645 = vmatprep.mubr.f32.mxu1 %v16291_v52  ;;  %v3863_v48 = vpop.f32.mrf.mxu0 }
 0x2c5   : > { %14665 = vmatpush3.msra.mxu0 %v9263_v31  ;;  %14646 = vmatmul.mubr.f32.vlgmr.msra.gmra.mxu1 %v16514_v21  ;;  %v14199_v46 = vpop.f32.mrf.mxu1 }
 0x2c6   : > { %14655 = vmatprep.subr.mxu1 %v9259_v7  ;;  %14666 = vmatprep.mubr.f32.mxu0 %v16300_v8  ;;  %v3788_v22 = vadd.f32 %v14199_v46, %v14192_v47  ;;  %v17994_v46 = vld [vmem:[#allocation56_spill] sm:$0xff] }
 0x2c7   : > { %14676 = vmatprep.subr.mxu0 %v9257_v16  ;;  %14656 = vmatpush3.msra.mxu1 %v9259_v7  ;;  %v3781_v58 = vpop.f32.mrf.mxu1 }
 0x2c8   : > { %14667 = vmatmul.mubr.f32.vlgmr.msra.gmra.mxu0 %v16524_v56  ;;  %14657 = vmatprep.subr.mxu1 %v9266_v0  ;;  %v3782_v54 = vadd.f32 %v3781_v58, %v3690_v53  ;;  %v3871_v31 = vadd.f32 %v14206_v30, %v3788_v22  ;;  %v14220_v45 = vpop.f32.mrf.mxu0  ;;  %v1534_v53 = vadd.f32 %v16495_v55, %v1194_v50  ;;  %v9766_v22 = vand.u32 4294901760, %v9765_v35 }
 0x2c9   : > { %14677 = vmatpush3.msra.mxu0 %v9257_v16  ;;  %14658 = vmatpush3.msra.mxu1 %v9266_v0  ;;  %v2247_v0 = vadd.f32 %v16907_v27, %v17994_v46 }
 0x2ca   : > { %14678 = vmatprep.subr.mxu0 %v9264_v32  ;;  %14659 = vmatprep.mubr.f32.mxu1 %v16291_v52  ;;  %v3864_v47 = vadd.f32 %v3863_v48, %v3782_v54  ;;  %v4030_v44 = vpop.f32.mrf.mxu0  ;;  %v1912_v48 = vadd.f32 %v17993_v43, %v1534_v53  ;;  %v17995_v43 = vld [vmem:[#allocation20_spill] sm:$0xff] }
 0x2cb   : > { %14679 = vmatpush3.msra.mxu0 %v9264_v32  ;;  %14660 = vmatmul.mubr.f32.vlgmr.msra.gmra.mxu1 %v16514_v21  ;;  %v14213_v9 = vpop.f32.mrf.mxu1  ;;  %v9759_v32 = vand.u32 4294901760, %v9758_v4  ;;  %v2554_v50 = vadd.f32 %v16939_v49, %v2247_v0 }
 0x2cc   : > { %14669 = vmatprep.subr.mxu1 %v17106_v11  ;;  %14680 = vmatprep.mubr.f32.mxu0 %v16291_v52  ;;  %v3954_v16 = vadd.f32 %v14213_v9, %v3871_v31 }
 0x2cd   : > { %14690 = vmatprep.subr.mxu0 %v17149_v40  ;;  %14670 = vmatpush3.msra.mxu1 %v17106_v11  ;;  %v3945_v15 = vpop.f32.mrf.mxu1  ;;  %v9760_v62 = vsub.f32 %v9758_v4, %v9759_v32 }
 0x2ce   : > { %14681 = vmatmul.mubr.f32.vlgmr.msra.gmra.mxu0 %v16514_v21  ;;  %14671 = vmatprep.subr.mxu1 %v17109_v38  ;;  %v3946_v30 = vadd.f32 %v3945_v15, %v3864_v47  ;;  %v4037_v7 = vadd.f32 %v14220_v45, %v3954_v16  ;;  %v14234_v55 = vpop.f32.mrf.mxu0  ;;  %v2241_v45 = vadd.f32 %v16922_v37, %v1912_v48  ;;  %v17192_v16 = vand.u32 4294901760, %v2554_v50  ;;  %v17996_v48 = vld [vmem:[#allocation21_spill] sm:$0xff] }
 0x2cf   : > { %14691 = vmatpush3.msra.mxu0 %v17149_v40  ;;  %14672 = vmatpush3.msra.mxu1 %v17109_v38  ;;  %v9767_v47 = vsub.f32 %v9765_v35, %v9766_v22  ;;  %v1206_v46 = vadd.f32 %v17996_v48, %v17995_v43 }
 0x2d0   : > { %14692 = vmatprep.subr.mxu0 %v17152_v59  ;;  %14673 = vmatprep.mubr.f32.mxu1 %v16307_v2  ;;  %v4031_v58 = vadd.f32 %v4030_v44, %v3946_v30  ;;  %v4192_v54 = vpop.f32.mrf.mxu0  ;;  %v2548_v9 = vadd.f32 %v16950_v13, %v2241_v45  ;;  %v10260_v0 = vsub.f32 %v2554_v50, %v17192_v16 }
 0x2d1   : > { %14693 = vmatpush3.msra.mxu0 %v17152_v59  ;;  %14674 = vmatmul.mubr.f32.vlgmr.msra.gmra.mxu1 %v16536_v6  ;;  %v14227_v31 = vpop.f32.mrf.mxu1  ;;  %v9768_v15 = vand.u32 4294901760, %v9767_v47  ;;  %v17997_v47 = vld [vmem:[#allocation59_spill] sm:$0xff] }
 0x2d2   : > { %14683 = vmatprep.subr.mxu1 %v17106_v11  ;;  %14694 = vmatprep.mubr.f32.mxu0 %v16321_v10  ;;  %v17180_v27 = vadd.f32 %v14227_v31, %v4037_v7  ;;  %v17195_v13 = vand.u32 4294901760, %v2548_v9  ;;  %v1548_v31 = vadd.f32 %v16502_v12, %v1206_v46  ;;  %v10261_v12 = vand.u32 4294901760, %v10260_v0 }
 0x2d3   : > { %14704 = vmatprep.subr.mxu0 %v9758_v4  ;;  %14684 = vmatpush3.msra.mxu1 %v17106_v11  ;;  %v4109_v26 = vpop.f32.mrf.mxu1  ;;  %v9761_v11 = vand.u32 4294901760, %v9760_v62 }
 0x2d4   : > { %14695 = vmatmul.mubr.f32.vlgmr.msra.gmra.mxu0 %v16554_v25  ;;  %14685 = vmatprep.subr.mxu1 %v17109_v38  ;;  %v17186_v44 = vadd.f32 %v4109_v26, %v4031_v58  ;;  %v14248_v37 = vpop.f32.mrf.mxu0  ;;  %v10267_v45 = vsub.f32 %v2548_v9, %v17195_v13  ;;  %v17998_v9 = vld [vmem:[#allocation58_spill] sm:$0xff] }
 0x2d5   : > { %14705 = vmatpush3.msra.mxu0 %v9758_v4  ;;  %14686 = vmatpush3.msra.mxu1 %v17109_v38 }
 0x2d6   : > { %14706 = vmatprep.subr.mxu0 %v9765_v35  ;;  %14687 = vmatprep.mubr.f32.mxu1 %v16291_v52  ;;  %v4365_v53 = vpop.f32.mrf.mxu0 }
 0x2d7   : > { %14707 = vmatpush3.msra.mxu0 %v9765_v35  ;;  %14688 = vmatmul.mubr.f32.vlgmr.msra.gmra.mxu1 %v16514_v21  ;;  %v14241_v49 = vpop.f32.mrf.mxu1 }
 0x2d8   : > { %14697 = vmatprep.subr.mxu1 %v9761_v11  ;;  %14708 = vmatprep.mubr.f32.mxu0 %v16300_v8  ;;  %v4290_v4 = vadd.f32 %v14241_v49, %v14234_v55 }
 0x2d9   : > { %14718 = vmatprep.subr.mxu0 %v9759_v32  ;;  %14698 = vmatpush3.msra.mxu1 %v9761_v11  ;;  %v4283_v38 = vpop.f32.mrf.mxu1  ;;  %v2259_v11 = vadd.f32 %v16935_v33, %v17998_v9 }
 0x2da   : > { %14709 = vmatmul.mubr.f32.vlgmr.msra.gmra.mxu0 %v16524_v56  ;;  %14699 = vmatprep.subr.mxu1 %v9768_v15  ;;  %v4284_v30 = vadd.f32 %v4283_v38, %v4192_v54  ;;  %v4373_v35 = vadd.f32 %v14248_v37, %v4290_v4  ;;  %v14262_v7 = vpop.f32.mrf.mxu0  ;;  %v1928_v37 = vadd.f32 %v17997_v47, %v1548_v31 }
 0x2db   : > { %14719 = vmatpush3.msra.mxu0 %v9759_v32  ;;  %14700 = vmatpush3.msra.mxu1 %v9768_v15 }
 0x2dc   : > { %14720 = vmatprep.subr.mxu0 %v9766_v22  ;;  %14701 = vmatprep.mubr.f32.mxu1 %v16291_v52  ;;  %v4366_v55 = vadd.f32 %v4365_v53, %v4284_v30  ;;  %v4532_v58 = vpop.f32.mrf.mxu0  ;;  %v10268_v53 = vand.u32 4294901760, %v10267_v45  ;;  %v2253_v4 = vadd.f32 %v16946_v1, %v1928_v37  ;;  %v10262_v30 = vsub.f32 %v10260_v0, %v10261_v12 }
 0x2dd   : > { %14721 = vmatpush3.msra.mxu0 %v9766_v22  ;;  %14702 = vmatmul.mubr.f32.vlgmr.msra.gmra.mxu1 %v16514_v21  ;;  %v14255_v54 = vpop.f32.mrf.mxu1 }
 0x2de   : > { %14711 = vmatprep.subr.mxu1 %v17149_v40  ;;  %14722 = vmatprep.mubr.f32.mxu0 %v16291_v52  ;;  %v4456_v32 = vadd.f32 %v14255_v54, %v4373_v35  ;;  %v10269_v1 = vsub.f32 %v10267_v45, %v10268_v53  ;;  %v2560_v46 = vadd.f32 %v16977_v28, %v2253_v4 }
 0x2df   : > { %14732 = vmatprep.subr.mxu0 %v17192_v16  ;;  %14712 = vmatpush3.msra.mxu1 %v17149_v40  ;;  %v4447_v62 = vpop.f32.mrf.mxu1 }
 0x2e0   : > { %14723 = vmatmul.mubr.f32.vlgmr.msra.gmra.mxu0 %v16514_v21  ;;  %14713 = vmatprep.subr.mxu1 %v17152_v59  ;;  %v4448_v22 = vadd.f32 %v4447_v62, %v4366_v55  ;;  %v4539_v26 = vadd.f32 %v14262_v7, %v4456_v32  ;;  %v14276_v50 = vpop.f32.mrf.mxu0  ;;  %v2566_v7 = vadd.f32 %v16962_v41, %v2259_v11  ;;  %v10270_v31 = vand.u32 4294901760, %v10269_v1  ;;  %v17999_v62 = vld [vmem:[#allocation22_spill] sm:$0xff] }
 0x2e1   : > { %14733 = vmatpush3.msra.mxu0 %v17192_v16  ;;  %14714 = vmatpush3.msra.mxu1 %v17152_v59  ;;  %v17238_v28 = vand.u32 4294901760, %v2560_v46 }
 0x2e2   : > { %14734 = vmatprep.subr.mxu0 %v17195_v13  ;;  %14715 = vmatprep.mubr.f32.mxu1 %v16307_v2  ;;  %v4533_v49 = vadd.f32 %v4532_v58, %v4448_v22  ;;  %v4694_v15 = vpop.f32.mrf.mxu0  ;;  %v17235_v58 = vand.u32 4294901760, %v2566_v7  ;;  %v18000_v22 = vld [vmem:[#allocation23_spill] sm:$0xff] }
 0x2e3   : > { %14735 = vmatpush3.msra.mxu0 %v17195_v13  ;;  %14716 = vmatmul.mubr.f32.vlgmr.msra.gmra.mxu1 %v16536_v6  ;;  %v14269_v38 = vpop.f32.mrf.mxu1  ;;  %v10769_v11 = vsub.f32 %v2560_v46, %v17238_v28 }
 0x2e4   : > { %14725 = vmatprep.subr.mxu1 %v17149_v40  ;;  %14736 = vmatprep.mubr.f32.mxu0 %v16321_v10  ;;  %v17223_v33 = vadd.f32 %v14269_v38, %v4539_v26  ;;  %v1218_v26 = vadd.f32 %v18000_v22, %v17999_v62  ;;  %v10762_v47 = vsub.f32 %v2566_v7, %v17235_v58  ;;  %v18002_v7 = vld [vmem:[#allocation60_spill] sm:$0xff] }
 0x2e5   : > { %14746 = vmatprep.subr.mxu0 %v10260_v0  ;;  %14726 = vmatpush3.msra.mxu1 %v17149_v40  ;;  %v4611_v35 = vpop.f32.mrf.mxu1  ;;  %v10263_v40 = vand.u32 4294901760, %v10262_v30  ;;  %v18001_v30 = vld [vmem:[#allocation61_spill] sm:$0xff]  ;;  %v2271_v1 = vadd.f32 %v16957_v34, %v18002_v7 }
 0x2e6   : > { %14737 = vmatmul.mubr.f32.vlgmr.msra.gmra.mxu0 %v16554_v25  ;;  %14727 = vmatprep.subr.mxu1 %v17152_v59  ;;  %v17229_v43 = vadd.f32 %v4611_v35, %v4533_v49  ;;  %v14290_v48 = vpop.f32.mrf.mxu0  ;;  %v1562_v9 = vadd.f32 %v16510_v5, %v1218_v26  ;;  %v10763_v5 = vand.u32 4294901760, %v10762_v47 }
 0x2e7   : > { %14747 = vmatpush3.msra.mxu0 %v10260_v0  ;;  %14728 = vmatpush3.msra.mxu1 %v17152_v59 }
 0x2e8   : > { %14748 = vmatprep.subr.mxu0 %v10267_v45  ;;  %14729 = vmatprep.mubr.f32.mxu1 %v16291_v52  ;;  %v4867_v55 = vpop.f32.mrf.mxu0  ;;  %v1944_v35 = vadd.f32 %v18001_v30, %v1562_v9  ;;  %v10764_v34 = vsub.f32 %v10762_v47, %v10763_v5 }
 0x2e9   : > { %14749 = vmatpush3.msra.mxu0 %v10267_v45  ;;  %14730 = vmatmul.mubr.f32.vlgmr.msra.gmra.mxu1 %v16514_v21  ;;  %v14283_v41 = vpop.f32.mrf.mxu1 }
 0x2ea   : > { %14739 = vmatprep.subr.mxu1 %v10263_v40  ;;  %14750 = vmatprep.mubr.f32.mxu0 %v16300_v8  ;;  %v4792_v54 = vadd.f32 %v14283_v41, %v14276_v50  ;;  %v10765_v22 = vand.u32 4294901760, %v10764_v34 }
 0x2eb   : > { %14760 = vmatprep.subr.mxu0 %v10261_v12  ;;  %14740 = vmatpush3.msra.mxu1 %v10263_v40  ;;  %v4785_v59 = vpop.f32.mrf.mxu1 }
 0x2ec   : > { %14751 = vmatmul.mubr.f32.vlgmr.msra.gmra.mxu0 %v16524_v56  ;;  %14741 = vmatprep.subr.mxu1 %v10270_v31  ;;  %v4786_v0 = vadd.f32 %v4785_v59, %v4694_v15  ;;  %v4875_v45 = vadd.f32 %v14290_v48, %v4792_v54  ;;  %v14304_v32 = vpop.f32.mrf.mxu0  ;;  %v10770_v48 = vand.u32 4294901760, %v10769_v11  ;;  %v2578_v54 = vadd.f32 %v16990_v3, %v2271_v1 }
 0x2ed   : > { %14761 = vmatpush3.msra.mxu0 %v10261_v12  ;;  %14742 = vmatpush3.msra.mxu1 %v10270_v31 }
 0x2ee   : > { %14762 = vmatprep.subr.mxu0 %v10268_v53  ;;  %14743 = vmatprep.mubr.f32.mxu1 %v16291_v52  ;;  %v4868_v50 = vadd.f32 %v4867_v55, %v4786_v0  ;;  %v5034_v37 = vpop.f32.mrf.mxu0  ;;  %v2265_v55 = vadd.f32 %v16970_v39, %v1944_v35  ;;  %v10771_v59 = vsub.f32 %v10769_v11, %v10770_v48 }
 0x2ef   : > { %14763 = vmatpush3.msra.mxu0 %v10268_v53  ;;  %14744 = vmatmul.mubr.f32.vlgmr.msra.gmra.mxu1 %v16514_v21  ;;  %v14297_v49 = vpop.f32.mrf.mxu1  ;;  %v17270_v39 = vmul.f32 %v17094_v29, %v17094_v29 }
 0x2f0   : > { %14753 = vmatprep.subr.mxu1 %v17192_v16  ;;  %14764 = vmatprep.mubr.f32.mxu0 %v16291_v52  ;;  %v4958_v12 = vadd.f32 %v14297_v49, %v4875_v45 }
 0x2f1   : > { %14774 = vmatprep.subr.mxu0 %v17235_v58  ;;  %14754 = vmatpush3.msra.mxu1 %v17192_v16  ;;  %v4949_v15 = vpop.f32.mrf.mxu1 }
 0x2f2   : > { %14765 = vmatmul.mubr.f32.vlgmr.msra.gmra.mxu0 %v16514_v21  ;;  %14755 = vmatprep.subr.mxu1 %v17195_v13  ;;  %v4950_v4 = vadd.f32 %v4949_v15, %v4868_v50  ;;  %v5041_v53 = vadd.f32 %v14304_v32, %v4958_v12  ;;  %v14318_v38 = vpop.f32.mrf.mxu0  ;;  %v18003_v12 = vld [vmem:[#allocation24_spill] sm:$0xff]  ;;  %v18004_v15 = vld [vmem:[#allocation25_spill] sm:$0xff] }
 0x2f3   : > { %14775 = vmatpush3.msra.mxu0 %v17235_v58  ;;  %14756 = vmatpush3.msra.mxu1 %v17195_v13 }
 0x2f4   : > { %14776 = vmatprep.subr.mxu0 %v17238_v28  ;;  %14757 = vmatprep.mubr.f32.mxu1 %v16307_v2  ;;  %v5035_v46 = vadd.f32 %v5034_v37, %v4950_v4  ;;  %v5196_v40 = vpop.f32.mrf.mxu0  ;;  %v17289_v37 = vand.u32 4294901760, %v2578_v54  ;;  %v1230_v4 = vadd.f32 %v18004_v15, %v18003_v12 }
 0x2f5   : > { %14777 = vmatpush3.msra.mxu0 %v17238_v28  ;;  %14758 = vmatmul.mubr.f32.vlgmr.msra.gmra.mxu1 %v16536_v6  ;;  %v14311_v41 = vpop.f32.mrf.mxu1 }
 0x2f6   : > { %14767 = vmatprep.subr.mxu1 %v17192_v16  ;;  %14778 = vmatprep.mubr.f32.mxu0 %v16321_v10  ;;  %v5120_v31 = vadd.f32 %v14311_v41, %v5041_v53  ;;  %v11264_v30 = vsub.f32 %v2578_v54, %v17289_v37  ;;  %v18006_v54 = vld [vmem:[#allocation64_spill] sm:$0xff] }
 0x2f7   : > { %14788 = vmatprep.subr.mxu0 %v10762_v47  ;;  %14768 = vmatpush3.msra.mxu1 %v17192_v16  ;;  %v5113_v0 = vpop.f32.mrf.mxu1  ;;  %v2572_v16 = vadd.f32 %v17002_v19, %v2265_v55  ;;  %v10772_v19 = vand.u32 4294901760, %v10771_v59 }
 0x2f8   : > { %14779 = vmatmul.mubr.f32.vlgmr.msra.gmra.mxu0 %v16554_v25  ;;  %14769 = vmatprep.subr.mxu1 %v17195_v13  ;;  %v17274_v45 = vmul.f32 %v5120_v31, %v5120_v31  ;;  %v17277_v32 = vmul.f32 %v5120_v31, %v17094_v29  ;;  %v17279_v62 = vadd.f32 %v5113_v0, %v5035_v46  ;;  %v14332_v3 = vpop.f32.mrf.mxu0  ;;  %v11265_v41 = vand.u32 4294901760, %v11264_v30  ;;  %v18007_v0 = vld [vmem:[#allocation63_spill] sm:$0xff] }
 0x2f9   : > { %14789 = vmatpush3.msra.mxu0 %v10762_v47  ;;  %14770 = vmatpush3.msra.mxu1 %v17195_v13  ;;  %v17292_v13 = vand.u32 4294901760, %v2572_v16 }
 0x2fa   : > { %14790 = vmatprep.subr.mxu0 %v10769_v11  ;;  %14771 = vmatprep.mubr.f32.mxu1 %v16291_v52  ;;  %v17286_v26 = vadd.f32 %v17274_v45, %v17270_v39  ;;  %v5369_v50 = vpop.f32.mrf.mxu0 }
 0x2fb   : > { %14791 = vmatpush3.msra.mxu0 %v10769_v11  ;;  %14772 = vmatmul.mubr.f32.vlgmr.msra.gmra.mxu1 %v16514_v21  ;;  %v14325_v29 = vpop.f32.mrf.mxu1  ;;  %v11271_v46 = vsub.f32 %v2572_v16, %v17292_v13 }
 0x2fc   : > { %14781 = vmatprep.subr.mxu1 %v10765_v22  ;;  %14792 = vmatprep.mubr.f32.mxu0 %v16300_v8  ;;  %v5294_v47 = vadd.f32 %v14325_v29, %v14318_v38  ;;  %v18005_v38 = vld [vmem:[#allocation62_spill] sm:$0xff] }
 0x2fd   : > { %14802 = vmatprep.subr.mxu0 %v10763_v5  ;;  %14782 = vmatpush3.msra.mxu1 %v10765_v22  ;;  %v5287_v9 = vpop.f32.mrf.mxu1  ;;  %v1576_v1 = vadd.f32 %v18005_v38, %v1230_v4  ;;  %v17313_v16 = vand.u32 4294901760, %v11271_v46 }
 0x2fe   : > { %14793 = vmatmul.mubr.f32.vlgmr.msra.gmra.mxu0 %v16524_v56  ;;  %14783 = vmatprep.subr.mxu1 %v10772_v19  ;;  %v5288_v49 = vadd.f32 %v5287_v9, %v5196_v40  ;;  %v14346_v11 = vpop.f32.mrf.mxu0  ;;  %v5377_v53 = vadd.f32 %v14332_v3, %v5294_v47  ;;  %v2283_v3 = vadd.f32 %v16986_v61, %v18007_v0 }
 0x2ff   : > { %14803 = vmatpush3.msra.mxu0 %v10763_v5  ;;  %14784 = vmatpush3.msra.mxu1 %v10772_v19  ;;  %v1960_v59 = vadd.f32 %v18006_v54, %v1576_v1  ;;  %v11266_v61 = vsub.f32 %v11264_v30, %v11265_v41  ;;  %v18009_v54 = vld [vmem:[#allocation27_spill] sm:$0xff] }
 0x300   : > { %14804 = vmatprep.subr.mxu0 %v10770_v48  ;;  %14785 = vmatprep.mubr.f32.mxu1 %v16291_v52  ;;  %v5370_v35 = vadd.f32 %v5369_v50, %v5288_v49  ;;  %v5536_v7 = vpop.f32.mrf.mxu0  ;;  %v2590_v9 = vadd.f32 %v17013_v42, %v2283_v3  ;;  %v11273_v49 = vsub.f32 %v11271_v46, %v17313_v16 }
 0x301   : > { %14805 = vmatpush3.msra.mxu0 %v10770_v48  ;;  %14786 = vmatmul.mubr.f32.vlgmr.msra.gmra.mxu1 %v16514_v21  ;;  %v14339_v40 = vpop.f32.mrf.mxu1  ;;  %v2277_v29 = vadd.f32 %v16997_v57, %v1960_v59  ;;  %v17327_v57 = vmul.f32 %v17137_v24, %v17137_v24 }
 0x302   : > { %14795 = vmatprep.subr.mxu1 %v17235_v58  ;;  %14806 = vmatprep.mubr.f32.mxu0 %v16291_v52  ;;  %v5460_v5 = vadd.f32 %v14339_v40, %v5377_v53  ;;  %v17340_v53 = vmul.f32 %v17143_v36, %v17143_v36  ;;  %v11274_v1 = vand.u32 4294901760, %v11273_v49 }
 0x303   : > { %14816 = vmatprep.subr.mxu0 %v17289_v37  ;;  %14796 = vmatpush3.msra.mxu1 %v17235_v58  ;;  %v5451_v55 = vpop.f32.mrf.mxu1 }
 0x304   : > { %14807 = vmatmul.mubr.f32.vlgmr.msra.gmra.mxu0 %v16514_v21  ;;  %14797 = vmatprep.subr.mxu1 %v17238_v28  ;;  %v5452_v34 = vadd.f32 %v5451_v55, %v5370_v35  ;;  %v5543_v48 = vadd.f32 %v14346_v11, %v5460_v5  ;;  %v14360_v31 = vpop.f32.mrf.mxu0  ;;  %v11267_v35 = vand.u32 4294901760, %v11266_v61 }
 0x305   : > { %14817 = vmatpush3.msra.mxu0 %v17289_v37  ;;  %14798 = vmatpush3.msra.mxu1 %v17238_v28 }
 0x306   : > { %14818 = vmatprep.subr.mxu0 %v17292_v13  ;;  %14799 = vmatprep.mubr.f32.mxu1 %v16307_v2  ;;  %v5537_v22 = vadd.f32 %v5536_v7, %v5452_v34  ;;  %v5698_v50 = vpop.f32.mrf.mxu0 }
 0x307   : > { %14819 = vmatpush3.msra.mxu0 %v17292_v13  ;;  %14800 = vmatmul.mubr.f32.vlgmr.msra.gmra.mxu1 %v16536_v6  ;;  %v14353_v19 = vpop.f32.mrf.mxu1 }
 0x308   : > { %14809 = vmatprep.subr.mxu1 %v17235_v58  ;;  %14820 = vmatprep.mubr.f32.mxu0 %v16321_v10  ;;  %v5622_v47 = vadd.f32 %v14353_v19, %v5543_v48  ;;  %v18008_v48 = vld [vmem:[#allocation26_spill] sm:$0xff] }
 0x309   : > { %14830 = vmatprep.subr.mxu0 %v11264_v30  ;;  %14810 = vmatpush3.msra.mxu1 %v17235_v58  ;;  %v5615_v11 = vpop.f32.mrf.mxu1  ;;  %v2584_v58 = vadd.f32 %v17025_v60, %v2277_v29  ;;  %v1242_v59 = vadd.f32 %v18009_v54, %v18008_v48  ;;  %v18010_v29 = vld [vmem:[#allocation65_spill] sm:$0xff] }
 0x30a   : > { %14821 = vmatmul.mubr.f32.vlgmr.msra.gmra.mxu0 %v16554_v25  ;;  %14811 = vmatprep.subr.mxu1 %v17238_v28  ;;  %v17331_v12 = vmul.f32 %v5622_v47, %v5622_v47  ;;  %v17334_v15 = vmul.f32 %v5622_v47, %v17137_v24  ;;  %v5616_v42 = vadd.f32 %v5615_v11, %v5537_v22  ;;  %v14374_v4 = vpop.f32.mrf.mxu0 }
 0x30b   : > { %14831 = vmatpush3.msra.mxu0 %v11264_v30  ;;  %14812 = vmatpush3.msra.mxu1 %v17238_v28  ;;  %v17353_v30 = vand.u32 4294901760, %v2590_v9  ;;  %v17360_v5 = vand.u32 4294901760, %v2584_v58  ;;  %v1590_v19 = vadd.f32 %v18010_v29, %v1242_v59 }
 0x30c   : > { %14832 = vmatprep.subr.mxu0 %v11271_v46  ;;  %14813 = vmatprep.mubr.f32.mxu1 %v16291_v52  ;;  %v17345_v7 = vadd.f32 %v17331_v12, %v17327_v57  ;;  %v17347_v24 = vmul.f32 %v5616_v42, %v5616_v42  ;;  %v17350_v38 = vmul.f32 %v5616_v42, %v17143_v36  ;;  %v5871_v60 = vpop.f32.mrf.mxu0  ;;  %v18011_v42 = vld [vmem:[#allocation67_spill] sm:$0xff] }
 0x30d   : > { %14833 = vmatpush3.msra.mxu0 %v11271_v46  ;;  %14814 = vmatmul.mubr.f32.vlgmr.msra.gmra.mxu1 %v16514_v21  ;;  %v14367_v28 = vpop.f32.mrf.mxu1  ;;  %v11766_v3 = vsub.f32 %v2590_v9, %v17353_v30  ;;  %v11773_v61 = vsub.f32 %v2584_v58, %v17360_v5  ;;  %v18012_v58 = vld [vmem:[#allocation66_spill] sm:$0xff] }
 0x30e   : > { %14823 = vmatprep.subr.mxu1 %v11267_v35  ;;  %14834 = vmatprep.mubr.f32.mxu0 %v16300_v8  ;;  %v17358_v40 = vadd.f32 %v17347_v24, %v17340_v53  ;;  %v5796_v36 = vadd.f32 %v14367_v28, %v14360_v31 }
 0x30f   : > { %14844 = vmatprep.subr.mxu0 %v11265_v41  ;;  %14824 = vmatpush3.msra.mxu1 %v11267_v35  ;;  %v5789_v55 = vpop.f32.mrf.mxu1  ;;  %v11767_v9 = vand.u32 4294901760, %v11766_v3  ;;  %v2295_v35 = vadd.f32 %v17008_v17, %v18012_v58 }
 0x310   : > { %14835 = vmatmul.mubr.f32.vlgmr.msra.gmra.mxu0 %v16524_v56  ;;  %14825 = vmatprep.subr.mxu1 %v11274_v1  ;;  %v5790_v46 = vadd.f32 %v5789_v55, %v5698_v50  ;;  %v14388_v34 = vpop.f32.mrf.mxu0  ;;  %v5879_v0 = vadd.f32 %v14374_v4, %v5796_v36  ;;  %v1976_v4 = vadd.f32 %v18011_v42, %v1590_v19 }
 0x311   : > { %14845 = vmatpush3.msra.mxu0 %v11265_v41  ;;  %14826 = vmatpush3.msra.mxu1 %v11274_v1  ;;  %v11768_v17 = vsub.f32 %v11766_v3, %v11767_v9 }
 0x312   : > { %14846 = vmatprep.subr.mxu0 %v17313_v16  ;;  %14827 = vmatprep.mubr.f32.mxu1 %v16291_v52  ;;  %v5872_v22 = vadd.f32 %v5871_v60, %v5790_v46  ;;  %v6038_v31 = vpop.f32.mrf.mxu0  ;;  %v11774_v60 = vand.u32 4294901760, %v11773_v61  ;;  %v2289_v36 = vadd.f32 %v17021_v18, %v1976_v4  ;;  %v17394_v18 = vmul.f32 %v17180_v27, %v17180_v27 }
 0x313   : > { %14847 = vmatpush3.msra.mxu0 %v17313_v16  ;;  %14828 = vmatmul.mubr.f32.vlgmr.msra.gmra.mxu1 %v16514_v21  ;;  %v14381_v50 = vpop.f32.mrf.mxu1  ;;  %v11769_v29 = vand.u32 4294901760, %v11768_v17 }
 0x314   : > { %14837 = vmatprep.subr.mxu1 %v17289_v37  ;;  %14848 = vmatprep.mubr.f32.mxu0 %v16291_v52  ;;  %v5962_v41 = vadd.f32 %v14381_v50, %v5879_v0  ;;  %v11775_v48 = vsub.f32 %v11773_v61, %v11774_v60 }
 0x315   : > { %14858 = vmatprep.subr.mxu0 %v17353_v30  ;;  %14838 = vmatpush3.msra.mxu1 %v17289_v37  ;;  %v5953_v47 = vpop.f32.mrf.mxu1 }
 0x316   : > { %14849 = vmatmul.mubr.f32.vlgmr.msra.gmra.mxu0 %v16514_v21  ;;  %14839 = vmatprep.subr.mxu1 %v17292_v13  ;;  %v5954_v49 = vadd.f32 %v5953_v47, %v5872_v22  ;;  %v6045_v16 = vadd.f32 %v14388_v34, %v5962_v41  ;;  %v14402_v11 = vpop.f32.mrf.mxu0  ;;  %v2602_v34 = vadd.f32 %v17041_v20, %v2295_v35  ;;  %v11776_v41 = vand.u32 4294901760, %v11775_v48 }
 0x317   : > { %14859 = vmatpush3.msra.mxu0 %v17353_v30  ;;  %14840 = vmatpush3.msra.mxu1 %v17292_v13 }
 0x318   : > { %14860 = vmatprep.subr.mxu0 %v17360_v5  ;;  %14841 = vmatprep.mubr.f32.mxu1 %v16307_v2  ;;  %v6039_v28 = vadd.f32 %v6038_v31, %v5954_v49  ;;  %v6200_v1 = vpop.f32.mrf.mxu0  ;;  %v2596_v31 = vadd.f32 %v17051_v63, %v2289_v36 }
 0x319   : > { %14861 = vmatpush3.msra.mxu0 %v17360_v5  ;;  %14842 = vmatmul.mubr.f32.vlgmr.msra.gmra.mxu1 %v16536_v6  ;;  %v14395_v55 = vpop.f32.mrf.mxu1 }
 0x31a   : > { %14851 = vmatprep.subr.mxu1 %v17289_v37  ;;  %14862 = vmatprep.mubr.f32.mxu0 %v16321_v10  ;;  %v6124_v46 = vadd.f32 %v14395_v55, %v6045_v16  ;;  %v17427_v49 = vand.u32 4294901760, %v2596_v31 }
 0x31b   : > { %14872 = vmatprep.subr.mxu0 %v11766_v3  ;;  %14852 = vmatpush3.msra.mxu1 %v17289_v37  ;;  %v6117_v54 = vpop.f32.mrf.mxu1  ;;  %v17407_v37 = vmul.f32 %v17186_v44, %v17186_v44 }
 0x31c   : > { %14863 = vmatmul.mubr.f32.vlgmr.msra.gmra.mxu0 %v16554_v25  ;;  %14853 = vmatprep.subr.mxu1 %v17292_v13  ;;  %v17398_v59 = vmul.f32 %v6124_v46, %v6124_v46  ;;  %v17401_v0 = vmul.f32 %v6124_v46, %v17180_v27  ;;  %v6118_v22 = vadd.f32 %v6117_v54, %v6039_v28  ;;  %v14416_v20 = vpop.f32.mrf.mxu0 }
 0x31d   : > { %14873 = vmatpush3.msra.mxu0 %v11766_v3  ;;  %14854 = vmatpush3.msra.mxu1 %v17292_v13  ;;  %v17420_v3 = vand.u32 4294901760, %v2602_v34  ;;  %v12275_v36 = vsub.f32 %v2596_v31, %v17427_v49 }
 0x31e   : > { %14874 = vmatprep.subr.mxu0 %v11773_v61  ;;  %14855 = vmatprep.mubr.f32.mxu1 %v16291_v52  ;;  %v17412_v19 = vadd.f32 %v17398_v59, %v17394_v18  ;;  %v17414_v27 = vmul.f32 %v6118_v22, %v6118_v22  ;;  %v17417_v50 = vmul.f32 %v6118_v22, %v17186_v44  ;;  %v6373_v63 = vpop.f32.mrf.mxu0 }
 0x31f   : > { %14875 = vmatpush3.msra.mxu0 %v11773_v61  ;;  %14856 = vmatmul.mubr.f32.vlgmr.msra.gmra.mxu1 %v16514_v21  ;;  %v14409_v13 = vpop.f32.mrf.mxu1  ;;  %v12268_v58 = vsub.f32 %v2602_v34, %v17420_v3  ;;  %v12276_v34 = vand.u32 4294901760, %v12275_v36 }
 0x320   : > { %14865 = vmatprep.subr.mxu1 %v11769_v29  ;;  %14876 = vmatprep.mubr.f32.mxu0 %v16300_v8  ;;  %v17425_v47 = vadd.f32 %v17414_v27, %v17407_v37  ;;  %v6298_v44 = vadd.f32 %v14409_v13, %v14402_v11 }
 0x321   : > { %14886 = vmatprep.subr.mxu0 %v11767_v9  ;;  %14866 = vmatpush3.msra.mxu1 %v11769_v29  ;;  %v6291_v16 = vpop.f32.mrf.mxu1  ;;  %v12269_v55 = vand.u32 4294901760, %v12268_v58  ;;  %v12277_v29 = vsub.f32 %v12275_v36, %v12276_v34 }
 0x322   : > { %14877 = vmatmul.mubr.f32.vlgmr.msra.gmra.mxu0 %v16524_v56  ;;  %14867 = vmatprep.subr.mxu1 %v11776_v41  ;;  %v6292_v61 = vadd.f32 %v6291_v16, %v6200_v1  ;;  %v14430_v42 = vpop.f32.mrf.mxu0  ;;  %v6381_v4 = vadd.f32 %v14416_v20, %v6298_v44 }
 0x323   : > { %14887 = vmatpush3.msra.mxu0 %v11767_v9  ;;  %14868 = vmatpush3.msra.mxu1 %v11776_v41  ;;  %v12270_v20 = vsub.f32 %v12268_v58, %v12269_v55 }
 0x324   : > { %14888 = vmatprep.subr.mxu0 %v11774_v60  ;;  %14869 = vmatprep.mubr.f32.mxu1 %v16291_v52  ;;  %v6374_v35 = vadd.f32 %v6373_v63, %v6292_v61  ;;  %v6540_v28 = vpop.f32.mrf.mxu0  ;;  %v17451_v63 = vmul.f32 %v17223_v33, %v17223_v33 }
 0x325   : > { %14889 = vmatpush3.msra.mxu0 %v11774_v60  ;;  %14870 = vmatmul.mubr.f32.vlgmr.msra.gmra.mxu1 %v16514_v21  ;;  %v14423_v11 = vpop.f32.mrf.mxu1 }
 0x326   : > { %14879 = vmatprep.subr.mxu1 %v17353_v30  ;;  %14890 = vmatprep.mubr.f32.mxu0 %v16291_v52  ;;  %v6464_v9 = vadd.f32 %v14423_v11, %v6381_v4 }
 0x327   : > { %14900 = vmatprep.subr.mxu0 %v17420_v3  ;;  %14880 = vmatpush3.msra.mxu1 %v17353_v30  ;;  %v6455_v1 = vpop.f32.mrf.mxu1 }
 0x328   : > { %14891 = vmatmul.mubr.f32.vlgmr.msra.gmra.mxu0 %v16514_v21  ;;  %14881 = vmatprep.subr.mxu1 %v17360_v5  ;;  %v6456_v17 = vadd.f32 %v6455_v1, %v6374_v35  ;;  %v6547_v60 = vadd.f32 %v14430_v42, %v6464_v9  ;;  %v14444_v46 = vpop.f32.mrf.mxu0 }
 0x329   : > { %14901 = vmatpush3.msra.mxu0 %v17420_v3  ;;  %14882 = vmatpush3.msra.mxu1 %v17360_v5 }
 0x32a   : > { %14902 = vmatprep.subr.mxu0 %v17427_v49  ;;  %14883 = vmatprep.mubr.f32.mxu1 %v16307_v2  ;;  %v6541_v48 = vadd.f32 %v6540_v28, %v6456_v17  ;;  %v6702_v54 = vpop.f32.mrf.mxu0 }
 0x32b   : > { %14903 = vmatpush3.msra.mxu0 %v17427_v49  ;;  %14884 = vmatmul.mubr.f32.vlgmr.msra.gmra.mxu1 %v16536_v6  ;;  %v14437_v22 = vpop.f32.mrf.mxu1 }
 0x32c   : > { %14893 = vmatprep.subr.mxu1 %v17353_v30  ;;  %14904 = vmatprep.mubr.f32.mxu0 %v16321_v10  ;;  %v6626_v31 = vadd.f32 %v14437_v22, %v6547_v60 }
 0x32d   : > { %14914 = vmatprep.subr.mxu0 %v12268_v58  ;;  %14894 = vmatpush3.msra.mxu1 %v17353_v30  ;;  %v6619_v13 = vpop.f32.mrf.mxu1  ;;  %v17463_v30 = vmul.f32 %v17229_v43, %v17229_v43 }
 0x32e   : > { %14905 = vmatmul.mubr.f32.vlgmr.msra.gmra.mxu0 %v16554_v25  ;;  %14895 = vmatprep.subr.mxu1 %v17360_v5  ;;  %v17455_v41 = vmul.f32 %v6626_v31, %v6626_v31  ;;  %v17458_v44 = vmul.f32 %v6626_v31, %v17223_v33  ;;  %v6620_v10 = vadd.f32 %v6619_v13, %v6541_v48  ;;  %v14458_v16 = vpop.f32.mrf.mxu0  ;;  %v12271_v25 = vand.u32 4294901760, %v12270_v20 }
 0x32f   : > { %14915 = vmatpush3.msra.mxu0 %v12268_v58  ;;  %14896 = vmatpush3.msra.mxu1 %v17360_v5  ;;  %v12278_v58 = vand.u32 4294901760, %v12277_v29 }
 0x330   : > { %14916 = vmatprep.subr.mxu0 %v12275_v36  ;;  %14897 = vmatprep.mubr.f32.mxu1 %v16291_v52  ;;  %v17468_v61 = vadd.f32 %v17455_v41, %v17451_v63  ;;  %v17470_v42 = vmul.f32 %v6620_v10, %v6620_v10  ;;  %v17473_v33 = vmul.f32 %v6620_v10, %v17229_v43  ;;  %v6875_v4 = vpop.f32.mrf.mxu0 }
 0x331   : > { %14917 = vmatpush3.msra.mxu0 %v12275_v36  ;;  %14898 = vmatmul.mubr.f32.vlgmr.msra.gmra.mxu1 %v16514_v21  ;;  %v14451_v5 = vpop.f32.mrf.mxu1 }
 0x332   : > { %14907 = vmatprep.subr.mxu1 %v12271_v25  ;;  %14918 = vmatprep.mubr.f32.mxu0 %v16300_v8  ;;  %v17479_v35 = vadd.f32 %v17470_v42, %v17463_v30  ;;  %v6800_v28 = vadd.f32 %v14451_v5, %v14444_v46 }
 0x333   : > { %14928 = vmatprep.subr.mxu0 %v12269_v55  ;;  %14908 = vmatpush3.msra.mxu1 %v12271_v25  ;;  %v6793_v11 = vpop.f32.mrf.mxu1 }
 0x334   : > { %14919 = vmatmul.mubr.f32.vlgmr.msra.gmra.mxu0 %v16524_v56  ;;  %14909 = vmatprep.subr.mxu1 %v12278_v58  ;;  %v6794_v43 = vadd.f32 %v6793_v11, %v6702_v54  ;;  %v14472_v36 = vpop.f32.mrf.mxu0  ;;  %v6883_v9 = vadd.f32 %v14458_v16, %v6800_v28 }
 0x335   : > { %14929 = vmatpush3.msra.mxu0 %v12269_v55  ;;  %14910 = vmatpush3.msra.mxu1 %v12278_v58 }
 0x336   : > { %14930 = vmatprep.subr.mxu0 %v12276_v34  ;;  %14911 = vmatprep.mubr.f32.mxu1 %v16291_v52  ;;  %v6876_v8 = vadd.f32 %v6875_v4, %v6794_v43  ;;  %v7042_v1 = vpop.f32.mrf.mxu0 }
 0x337   : > { %14931 = vmatpush3.msra.mxu0 %v12276_v34  ;;  %14912 = vmatmul.mubr.f32.vlgmr.msra.gmra.mxu1 %v16514_v21  ;;  %v14465_v17 = vpop.f32.mrf.mxu1 }
 0x338   : > { %14921 = vmatprep.subr.mxu1 %v17420_v3  ;;  %14925 = vmatprep.mubr.f32.mxu1 %v16307_v2  ;;  %v6966_v56 = vadd.f32 %v14465_v17, %v6883_v9 }
 0x339   : > { %14922 = vmatpush3.msra.mxu1 %v17420_v3  ;;  %14932 = vmatprep.mubr.f32.mxu0 %v16291_v52  ;;  %v6957_v55 = vpop.f32.mrf.mxu1 }
 0x33a   : > { %14923 = vmatprep.subr.mxu1 %v17427_v49  ;;  %14933 = vmatmul.mubr.f32.vlgmr.msra.gmra.mxu0 %v16514_v21  ;;  %v6958_v60 = vadd.f32 %v6957_v55, %v6876_v8  ;;  %v7049_v46 = vadd.f32 %v14472_v36, %v6966_v56  ;;  %v14486_v34 = vpop.f32.mrf.mxu0 }
 0x33b   : > { %14924 = vmatpush3.msra.mxu1 %v17427_v49 }
 0x33c   : > { %14926 = vmatmul.mubr.f32.vlgmr.msra.gmra.mxu1 %v16536_v6  ;;  %14935 = vmatprep.subr.mxu1 %v17420_v3  ;;  %v7043_v2 = vadd.f32 %v7042_v1, %v6958_v60  ;;  %v7204_v48 = vpop.f32.mrf.mxu0 }
 0x33d   : > { %14936 = vmatpush3.msra.mxu1 %v17420_v3  ;;  %14939 = vmatprep.mubr.f32.mxu1 %v16291_v52  ;;  %v14479_v54 = vpop.f32.mrf.mxu1 }
 0x33e   : > { %14937 = vmatprep.subr.mxu1 %v17427_v49  ;;  %v17496_v22 = vadd.f32 %v14479_v54, %v7049_v46 }
 0x33f   : > { %14938 = vmatpush3.msra.mxu1 %v17427_v49  ;;  %v7121_v20 = vpop.f32.mrf.mxu1 }
 0x340   : > { %14940 = vmatmul.mubr.f32.vlgmr.msra.gmra.mxu1 %v16514_v21  ;;  %v12678_v6 = vsub.f32 %v17496_v22, %v17270_v39  ;;  %v17502_v31 = vadd.f32 %v7121_v20, %v7043_v2  ;;  %v14500_v29 = vpop.f32.mrf.mxu0 }
 0x342   : > { %v7377_v13 = vpop.f32.mrf.mxu0 }
 0x343   : > { %v14493_v3 = vpop.f32.mrf.mxu1 }
 0x344   : > { %v7302_v10 = vadd.f32 %v14493_v3, %v14486_v34 }
 0x345   : > { %v7295_v52 = vpop.f32.mrf.mxu1 }
 0x346   : > { %v7296_v16 = vadd.f32 %v7295_v52, %v7204_v48  ;;  %v7385_v25 = vadd.f32 %v14500_v29, %v7302_v10  ;;  %v14514_v4 = vpop.f32.mrf.mxu0 }
 0x348   : > { %v7378_v5 = vadd.f32 %v7377_v13, %v7296_v16  ;;  %v7544_v58 = vpop.f32.mrf.mxu0 }
 0x349   : > { %v14507_v28 = vpop.f32.mrf.mxu1 }
 0x34a   : > { %v7468_v49 = vadd.f32 %v14507_v28, %v7385_v25 }
 0x34b   : > { %v7459_v11 = vpop.f32.mrf.mxu1 }
 0x34c   : > { %v7460_v43 = vadd.f32 %v7459_v11, %v7378_v5  ;;  %v7551_v21 = vadd.f32 %v14514_v4, %v7468_v49  ;;  %v14528_v36 = vpop.f32.mrf.mxu0 }
 0x34e   : > { %v7545_v9 = vadd.f32 %v7544_v58, %v7460_v43  ;;  %v7706_v8 = vpop.f32.mrf.mxu0 }
 0x34f   : > { %v14521_v1 = vpop.f32.mrf.mxu1 }
 0x350   : > { %v17504_v17 = vadd.f32 %v14521_v1, %v7551_v21 }
 0x351   : > { %v7623_v56 = vpop.f32.mrf.mxu1 }
 0x352   : > { %v12680_v55 = vsub.f32 %v17504_v17, %v17327_v57  ;;  %v17508_v60 = vadd.f32 %v7623_v56, %v7545_v9  ;;  %v14542_v46 = vpop.f32.mrf.mxu0 }
 0x354   : > { %v7879_v2 = vpop.f32.mrf.mxu0 }
 0x355   : > { %v14535_v48 = vpop.f32.mrf.mxu1 }
 0x356   : > { %v7804_v54 = vadd.f32 %v14535_v48, %v14528_v36 }
 0x357   : > { %v7797_v20 = vpop.f32.mrf.mxu1 }
 0x358   : > { %v7798_v29 = vadd.f32 %v7797_v20, %v7706_v8  ;;  %v7887_v13 = vadd.f32 %v14542_v46, %v7804_v54  ;;  %v14556_v3 = vpop.f32.mrf.mxu0 }
 0x35a   : > { %v7880_v10 = vadd.f32 %v7879_v2, %v7798_v29  ;;  %v8046_v52 = vpop.f32.mrf.mxu0 }
 0x35b   : > { %v14549_v16 = vpop.f32.mrf.mxu1 }
 0x35c   : > { %v7970_v25 = vadd.f32 %v14549_v16, %v7887_v13 }
 0x35d   : > { %v7961_v4 = vpop.f32.mrf.mxu1 }
 0x35e   : > { %v7962_v5 = vadd.f32 %v7961_v4, %v7880_v10  ;;  %v8053_v58 = vadd.f32 %v14556_v3, %v7970_v25  ;;  %v14570_v28 = vpop.f32.mrf.mxu0 }
 0x360   : > { %v8047_v49 = vadd.f32 %v8046_v52, %v7962_v5  ;;  %v8208_v11 = vpop.f32.mrf.mxu0 }
 0x361   : > { %v14563_v43 = vpop.f32.mrf.mxu1 }
 0x362   : > { %v17512_v21 = vadd.f32 %v14563_v43, %v8053_v58 }
 0x363   : > { %v8125_v9 = vpop.f32.mrf.mxu1 }
 0x364   : > { %v17516_v8 = vadd.f32 %v8125_v9, %v8047_v49  ;;  %v14584_v1 = vpop.f32.mrf.mxu0  ;;  %v2778_v9 = vadd.f32 %v17063_v14, %v17038_v51 }
 0x366   : > { %v8381_v46 = vpop.f32.mrf.mxu0 }
 0x367   : > { %v14577_v2 = vpop.f32.mrf.mxu1 }
 0x368   : > { %v8306_v48 = vadd.f32 %v14577_v2, %v14570_v28  ;;  %v2860_v2 = vadd.f32 %v17054_v23, %v2778_v9 }
 0x369   : > { %v8299_v54 = vpop.f32.mrf.mxu1 }
 0x36a   : > { %v8300_v20 = vadd.f32 %v8299_v54, %v8208_v11  ;;  %v8389_v29 = vadd.f32 %v14584_v1, %v8306_v48  ;;  %v14598_v13 = vpop.f32.mrf.mxu0  ;;  %v18015_v48 = vld [vmem:[#allocation32_spill] sm:$0xff] }
 0x36c   : > { %v8382_v3 = vadd.f32 %v8381_v46, %v8300_v20  ;;  %v8548_v10 = vpop.f32.mrf.mxu0 }
 0x36d   : > { %v14591_v52 = vpop.f32.mrf.mxu1 }
 0x36e   : > { %v8472_v16 = vadd.f32 %v14591_v52, %v8389_v29 }
 0x36f   : > { %v8463_v25 = vpop.f32.mrf.mxu1 }
 0x370   : > { %v8464_v4 = vadd.f32 %v8463_v25, %v8382_v3  ;;  %v8555_v5 = vadd.f32 %v14598_v13, %v8472_v16  ;;  %v14612_v58 = vpop.f32.mrf.mxu0  ;;  %v18013_v13 = vld [vmem:[#allocation30_spill] sm:$0xff]  ;;  %v18014_v25 = vld [vmem:[#allocation28_spill] sm:$0xff] }
 0x371   : > { %v2942_v51 = vadd.f32 %v18013_v13, %v2860_v2 }
 0x372   : > { %v8549_v49 = vadd.f32 %v8548_v10, %v8464_v4  ;;  %v8710_v43 = vpop.f32.mrf.mxu0 }
 0x373   : > { %v14605_v56 = vpop.f32.mrf.mxu1  ;;  %v3027_v4 = vadd.f32 %v18014_v25, %v2942_v51  ;;  %v12750_v25 = vadd.f32 0.0001, %v17286_v26 }
 0x374   : > { %v17522_v36 = vadd.f32 %v14605_v56, %v8555_v5 }
 0x375   : > { %v8627_v28 = vpop.f32.mrf.mxu1  ;;  %v17534_v34 = vadd.f32 %v18015_v48, %v3027_v4 }
 0x376   : > { %v17526_v1 = vadd.f32 %v8627_v28, %v8549_v49  ;;  %v14626_v46 = vpop.f32.mrf.mxu0 }
 0x378   : > { %v8883_v54 = vpop.f32.mrf.mxu0 }
 0x379   : > { %v14619_v20 = vpop.f32.mrf.mxu1 }
 0x37a   : > { %v8808_v29 = vadd.f32 %v14619_v20, %v14612_v58 }
 0x37b   : > { %v8801_v14 = vpop.f32.mrf.mxu1 }
 0x37c   : > { %v8802_v56 = vadd.f32 %v8801_v14, %v8710_v43  ;;  %v8891_v3 = vadd.f32 %v14626_v46, %v8808_v29  ;;  %v14640_v10 = vpop.f32.mrf.mxu0  ;;  %v12661_v43 = vmul.f32 %v17279_v62, %v17279_v62 }
 0x37e   : > { %v8884_v52 = vadd.f32 %v8883_v54, %v8802_v56  ;;  %v9050_v16 = vpop.f32.mrf.mxu0  ;;  %v12653_v54 = vmul.f32 %v17534_v34, %v17534_v34 }
 0x37f   : > { %v14633_v5 = vpop.f32.mrf.mxu1 }
 0x380   : > { %v8974_v49 = vadd.f32 %v14633_v5, %v8891_v3  ;;  %v12741_v56 = vadd.f32 %v12661_v43, %v12653_v54  ;;  %v12677_v3 = vsub.f32 %v17502_v31, %v12653_v54 }
 0x381   : > { %v8965_v28 = vpop.f32.mrf.mxu1 }
 0x382   : > { %v8966_v23 = vadd.f32 %v8965_v28, %v8884_v52  ;;  %v9057_v9 = vadd.f32 %v14640_v10, %v8974_v49  ;;  %v14654_v11 = vpop.f32.mrf.mxu0  ;;  %v12749_v28 = vadd.f32 0.0001, %v12741_v56 }
 0x384   : > { %v9051_v58 = vadd.f32 %v9050_v16, %v8966_v23  ;;  %v9212_v20 = vpop.f32.mrf.mxu0 }
 0x385   : > { %v14647_v46 = vpop.f32.mrf.mxu1 }
 0x386   : > { %v9136_v2 = vadd.f32 %v14647_v46, %v9057_v9 }
 0x387   : > { %v9129_v29 = vpop.f32.mrf.mxu1 }
 0x388   : > { %v12686_v13 = vsub.f32 %v9136_v2, %v17274_v45  ;;  %v9130_v51 = vadd.f32 %v9129_v29, %v9051_v58  ;;  %v14668_v14 = vpop.f32.mrf.mxu0 }
 0x38a   : > { %v12758_v48 = vadd.f32 %v12686_v13, %v12678_v6  ;;  %v12685_v10 = vsub.f32 %v9130_v51, %v12661_v43  ;;  %v9385_v52 = vpop.f32.mrf.mxu0 }
 0x38b   : > { %v14661_v16 = vpop.f32.mrf.mxu1 }
 0x38c   : > { %v12766_v4 = vadd.f32 0.0009, %v12758_v48  ;;  %v12757_v5 = vadd.f32 %v12685_v10, %v12677_v3  ;;  %v9310_v49 = vadd.f32 %v14661_v16, %v14654_v11 }
 0x38d   : > { %v9303_v23 = vpop.f32.mrf.mxu1 }
 0x38e   : > { %v17546_v45 = vmul.f32 %v12766_v4, %v12750_v25  ;;  %v12765_v9 = vadd.f32 0.0009, %v12757_v5  ;;  %v9304_v58 = vadd.f32 %v9303_v23, %v9212_v20  ;;  %v9393_v46 = vadd.f32 %v14668_v14, %v9310_v49  ;;  %v14682_v31 = vpop.f32.mrf.mxu0 }
 0x38f   : > { %v12752_v5 = vadd.f32 0.0001, %v17345_v7 }
 0x390   : > { %v17548_v2 = vmul.f32 %v12765_v9, %v12749_v28  ;;  %v9386_v39 = vadd.f32 %v9385_v52, %v9304_v58  ;;  %v9552_v22 = vpop.f32.mrf.mxu0  ;;  %v18016_v28 = vsub.f32 %v17508_v60, %v17340_v53  ;;  %15034 = vrcp.f32 %v17546_v45 }
 0x391   : > { %v14675_v6 = vpop.f32.mrf.mxu1 }
 0x392   : > { %v9476_v43 = vadd.f32 %v14675_v6, %v9393_v46  ;;  %15036 = vrcp.f32 %v17548_v2 }
 0x393   : > { %v9467_v54 = vpop.f32.mrf.mxu1 }
 0x394   : > { %v9468_v29 = vadd.f32 %v9467_v54, %v9386_v39  ;;  %v9559_v26 = vadd.f32 %v14682_v31, %v9476_v43  ;;  %v14696_v13 = vpop.f32.mrf.mxu0 }
 0x396   : > { %v9553_v51 = vadd.f32 %v9552_v22, %v9468_v29  ;;  %v9714_v11 = vpop.f32.mrf.mxu0 }
 0x397   : > { %v14689_v56 = vpop.f32.mrf.mxu1 }
 0x398   : > { %v9638_v3 = vadd.f32 %v14689_v56, %v9559_v26 }
 0x399   : > { %v9631_v48 = vpop.f32.mrf.mxu1 }
 0x39a   : > { %v12688_v10 = vsub.f32 %v9638_v3, %v17331_v12  ;;  %v9632_v20 = vadd.f32 %v9631_v48, %v9553_v51  ;;  %v14710_v14 = vpop.f32.mrf.mxu0  ;;  %v12751_v12 = vadd.f32 0.0001, %v17358_v40  ;;  %v18017_v48 = vsub.f32 %v17512_v21, %v17394_v18 }
 0x39c   : > { %v12760_v52 = vadd.f32 %v12688_v10, %v12680_v55  ;;  %v12687_v16 = vsub.f32 %v9632_v20, %v17347_v24  ;;  %v9887_v25 = vpop.f32.mrf.mxu0 }
 0x39d   : > { %v14703_v4 = vpop.f32.mrf.mxu1 }
 0x39e   : > { %v12768_v49 = vadd.f32 0.0009, %v12760_v52  ;;  %v12759_v23 = vadd.f32 %v12687_v16, %v18016_v28  ;;  %v9812_v9 = vadd.f32 %v14703_v4, %v14696_v13  ;;  %v12754_v16 = vadd.f32 0.0001, %v17412_v19 }
 0x39f   : > { %v9805_v58 = vpop.f32.mrf.mxu1  ;;  %v18018_v4 = vsub.f32 %v17516_v8, %v17407_v37 }
 0x3a0   : > { %v17560_v46 = vmul.f32 %v12768_v49, %v12752_v5  ;;  %v12767_v31 = vadd.f32 0.0009, %v12759_v23  ;;  %v9806_v57 = vadd.f32 %v9805_v58, %v9714_v11  ;;  %v9895_v17 = vadd.f32 %v14710_v14, %v9812_v9  ;;  %v14724_v55 = vpop.f32.mrf.mxu0 }
 0x3a2   : > { %v17562_v24 = vmul.f32 %v12767_v31, %v12751_v12  ;;  %v9888_v39 = vadd.f32 %v9887_v25, %v9806_v57  ;;  %v10054_v22 = vpop.f32.mrf.mxu0  ;;  %15038 = vrcp.f32 %v17560_v46 }
 0x3a3   : > { %v14717_v7 = vpop.f32.mrf.mxu1 }
 0x3a4   : > { %v9978_v6 = vadd.f32 %v14717_v7, %v9895_v17  ;;  %15040 = vrcp.f32 %v17562_v24 }
 0x3a5   : > { %v9969_v43 = vpop.f32.mrf.mxu1 }
 0x3a6   : > { %v9970_v54 = vadd.f32 %v9969_v43, %v9888_v39  ;;  %v10061_v53 = vadd.f32 %v14724_v55, %v9978_v6  ;;  %v14738_v60 = vpop.f32.mrf.mxu0 }
 0x3a8   : > { %v10055_v29 = vadd.f32 %v10054_v22, %v9970_v54  ;;  %v10216_v26 = vpop.f32.mrf.mxu0 }
 0x3a9   : > { %v14731_v40 = vpop.f32.mrf.mxu1 }
 0x3aa   : > { %v10140_v13 = vadd.f32 %v14731_v40, %v10061_v53 }
 0x3ab   : > { %v10133_v51 = vpop.f32.mrf.mxu1 }
 0x3ac   : > { %v12690_v56 = vsub.f32 %v10140_v13, %v17398_v59  ;;  %v10134_v11 = vadd.f32 %v10133_v51, %v10055_v29  ;;  %v14752_v3 = vpop.f32.mrf.mxu0  ;;  %v12753_v59 = vadd.f32 0.0001, %v17425_v47  ;;  %v12756_v51 = vadd.f32 0.0001, %v17468_v61 }
 0x3ae   : > { %v12762_v10 = vadd.f32 %v12690_v56, %v18017_v48  ;;  %v12689_v20 = vsub.f32 %v10134_v11, %v17414_v27  ;;  %v10389_v14 = vpop.f32.mrf.mxu0  ;;  %v18020_v11 = vsub.f32 %v17526_v1, %v17463_v30 }
 0x3af   : > { %v14745_v52 = vpop.f32.mrf.mxu1 }
 0x3b0   : > { %v12770_v25 = vadd.f32 0.0009, %v12762_v10  ;;  %v12761_v5 = vadd.f32 %v12689_v20, %v18018_v4  ;;  %v10314_v49 = vadd.f32 %v14745_v52, %v14738_v60  ;;  %v18019_v60 = vsub.f32 %v17522_v36, %v17451_v63 }
 0x3b1   : > { %v10307_v28 = vpop.f32.mrf.mxu1 }
 0x3b2   : > { %v17574_v23 = vmul.f32 %v12770_v25, %v12754_v16  ;;  %v12769_v9 = vadd.f32 0.0009, %v12761_v5  ;;  %v10308_v18 = vadd.f32 %v10307_v28, %v10216_v26  ;;  %v10397_v21 = vadd.f32 %v14752_v3, %v10314_v49  ;;  %v14766_v12 = vpop.f32.mrf.mxu0 }
 0x3b3   : > { %v12669_v28 = vmul.f32 %v17279_v62, %v17534_v34 }
 0x3b4   : > { %v17576_v27 = vmul.f32 %v12769_v9, %v12753_v59  ;;  %v10390_v58 = vadd.f32 %v10389_v14, %v10308_v18  ;;  %v10556_v31 = vpop.f32.mrf.mxu0  ;;  %15042 = vrcp.f32 %v17574_v23 }
 0x3b5   : > { %v14759_v19 = vpop.f32.mrf.mxu1  ;;  %v12701_v45 = vmul.f32 2.0, %v12669_v28 }
 0x3b6   : > { %v10480_v57 = vadd.f32 %v14759_v19, %v10397_v21  ;;  %15044 = vrcp.f32 %v17576_v27 }
 0x3b7   : > { %v10471_v17 = vpop.f32.mrf.mxu1 }
 0x3b8   : > { %v10472_v55 = vadd.f32 %v10471_v17, %v10390_v58  ;;  %v10563_v37 = vadd.f32 %v14766_v12, %v10480_v57  ;;  %v14780_v8 = vpop.f32.mrf.mxu0  ;;  %v12702_v12 = vmul.f32 2.0, %v17277_v32 }
 0x3ba   : > { %v10557_v39 = vadd.f32 %v10556_v31, %v10472_v55  ;;  %v10718_v22 = vpop.f32.mrf.mxu0  ;;  %v12710_v2 = vadd.f32 0.0001, %v12702_v12 }
 0x3bb   : > { %v14773_v47 = vpop.f32.mrf.mxu1 }
 0x3bc   : > { %v10642_v7 = vadd.f32 %v14773_v47, %v10563_v37  ;;  %v12709_v47 = vadd.f32 0.0001, %v12701_v45 }
 0x3bd   : > { %v10635_v6 = vpop.f32.mrf.mxu1 }
 0x3be   : > { %v12692_v43 = vsub.f32 %v10642_v7, %v17455_v41  ;;  %v10636_v54 = vadd.f32 %v10635_v6, %v10557_v39  ;;  %v14794_v53 = vpop.f32.mrf.mxu0  ;;  %v12755_v41 = vadd.f32 0.0001, %v17479_v35 }
 0x3c0   : > { %v12764_v29 = vadd.f32 %v12692_v43, %v18019_v60  ;;  %v12691_v26 = vsub.f32 %v10636_v54, %v17470_v42  ;;  %v10891_v40 = vpop.f32.mrf.mxu0 }
 0x3c1   : > { %v14787_v13 = vpop.f32.mrf.mxu1 }
 0x3c2   : > { %v12772_v56 = vadd.f32 0.0009, %v12764_v29  ;;  %v12763_v3 = vadd.f32 %v12691_v26, %v18020_v11  ;;  %v10816_v48 = vadd.f32 %v14787_v13, %v14780_v8 }
 0x3c3   : > { %v10809_v10 = vpop.f32.mrf.mxu1 }
 0x3c4   : > { %v17588_v20 = vmul.f32 %v12772_v56, %v12756_v51  ;;  %v12771_v14 = vadd.f32 0.0009, %v12763_v3  ;;  %v10810_v63 = vadd.f32 %v10809_v10, %v10718_v22  ;;  %v10899_v36 = vadd.f32 %v14794_v53, %v10816_v48  ;;  %v14808_v52 = vpop.f32.mrf.mxu0  ;;  %v15035_v53 = vpop.eup %15034 }
 0x3c6   : > { %v17590_v42 = vmul.f32 %v12771_v14, %v12755_v41  ;;  %v10892_v16 = vadd.f32 %v10891_v40, %v10810_v63  ;;  %v11058_v25 = vpop.f32.mrf.mxu0  ;;  %v15037_v40 = vpop.eup %15036  ;;  %15046 = vrcp.f32 %v17588_v20 }
 0x3c7   : > { %v14801_v61 = vpop.f32.mrf.mxu1 }
 0x3c8   : > { %v10982_v4 = vadd.f32 %v14801_v61, %v10899_v36  ;;  %15048 = vrcp.f32 %v17590_v42  ;;  %v12707_v42 = vmul.f32 2.0, %v17473_v33 }
 0x3c9   : > { %v10973_v5 = vpop.f32.mrf.mxu1 }
 0x3ca   : > { %v10974_v30 = vadd.f32 %v10973_v5, %v10892_v16  ;;  %v11065_v1 = vadd.f32 %v14808_v52, %v10982_v4  ;;  %v14822_v49 = vpop.f32.mrf.mxu0  ;;  %v12704_v4 = vmul.f32 2.0, %v17334_v15 }
 0x3cc   : > { %v11059_v35 = vadd.f32 %v11058_v25, %v10974_v30  ;;  %v11220_v59 = vpop.f32.mrf.mxu0 }
 0x3cd   : > { %v14815_v9 = vpop.f32.mrf.mxu1 }
 0x3ce   : > { %v11144_v18 = vadd.f32 %v14815_v9, %v11065_v1  ;;  %v12703_v1 = vmul.f32 2.0, %v17350_v38  ;;  %v12712_v9 = vadd.f32 0.0001, %v12704_v4 }
 0x3cf   : > { %v11137_v21 = vpop.f32.mrf.mxu1 }
 0x3d0   : > { %v12694_v58 = vsub.f32 %v11144_v18, %v17277_v32  ;;  %v11138_v31 = vadd.f32 %v11137_v21, %v11059_v35  ;;  %v14836_v19 = vpop.f32.mrf.mxu0  ;;  %v12711_v12 = vadd.f32 0.0001, %v12703_v1 }
 0x3d2   : > { %v12718_v57 = vmul.f32 2.0, %v12694_v58  ;;  %v12693_v17 = vsub.f32 %v11138_v31, %v12669_v28  ;;  %v11393_v55 = vpop.f32.mrf.mxu0  ;;  %v15039_v31 = vpop.eup %15038 }
 0x3d3   : > { %v14829_v37 = vpop.f32.mrf.mxu1 }
 0x3d4   : > { %v12726_v8 = vadd.f32 0.0009, %v12718_v57  ;;  %v12717_v39 = vmul.f32 2.0, %v12693_v17  ;;  %v11318_v22 = vadd.f32 %v14829_v37, %v14822_v49 }
 0x3d5   : > { %v11311_v62 = vpop.f32.mrf.mxu1 }
 0x3d6   : > { %v12734_v34 = vmul.f32 %v12726_v8, %v12710_v2  ;;  %v12725_v7 = vadd.f32 0.0009, %v12717_v39  ;;  %v11312_v6 = vadd.f32 %v11311_v62, %v11220_v59  ;;  %v11401_v43 = vadd.f32 %v14836_v19, %v11318_v22  ;;  %v14850_v54 = vpop.f32.mrf.mxu0  ;;  %v15041_v39 = vpop.eup %15040 }
 0x3d8   : > { %v12784_v32 = vmul.f32 %v15035_v53, %v12734_v34  ;;  %v12733_v60 = vmul.f32 %v12725_v7, %v12709_v47  ;;  %v11394_v29 = vadd.f32 %v11393_v55, %v11312_v6  ;;  %v11560_v26 = vpop.f32.mrf.mxu0 }
 0x3d9   : > { %v14843_v13 = vpop.f32.mrf.mxu1 }
 0x3da   : > { %v12782_v51 = vmul.f32 %v15037_v40, %v12733_v60  ;;  %v11484_v56 = vadd.f32 %v14843_v13, %v11401_v43  ;;  %v12798_v3 = vsel %vm348_vm0, %v12784_v32, 0.0 }
 0x3db   : > { %v11475_v11 = vpop.f32.mrf.mxu1 }
 0x3dc   : > { %v12797_v48 = vsel %vm348_vm0, %v12782_v51, 0.0  ;;  %v11476_v41 = vadd.f32 %v11475_v11, %v11394_v29  ;;  %v11567_v10 = vadd.f32 %v14850_v54, %v11484_v56  ;;  %v14864_v14 = vpop.f32.mrf.mxu0  ;;  %v12706_v51 = vmul.f32 2.0, %v17401_v0 }
 0x3dd   : > { %v12799_v63 = vadd.f32 %v12798_v3, %v12797_v48  ;;  %v12705_v3 = vmul.f32 2.0, %v17417_v50 }
 0x3de   : > { %v11561_v36 = vadd.f32 %v11560_v26, %v11476_v41  ;;  %v11722_v52 = vpop.f32.mrf.mxu0 }
 0x3df   : > { %v14857_v16 = vpop.f32.mrf.mxu1 }
 0x3e0   : > { %v11646_v25 = vadd.f32 %v14857_v16, %v11567_v10  ;;  %v12714_v10 = vadd.f32 0.0001, %v12706_v51  ;;  %v12713_v16 = vadd.f32 0.0001, %v12705_v3 }
 0x3e1   : > { %v11639_v61 = vpop.f32.mrf.mxu1 }
 0x3e2   : > { %v12696_v46 = vsub.f32 %v11646_v25, %v17334_v15  ;;  %v11640_v5 = vadd.f32 %v11639_v61, %v11561_v36  ;;  %v14878_v30 = vpop.f32.mrf.mxu0 }
 0x3e4   : > { %v12720_v49 = vmul.f32 2.0, %v12696_v46  ;;  %v12695_v35 = vsub.f32 %v11640_v5, %v17350_v38  ;;  %v11895_v59 = vpop.f32.mrf.mxu0 }
 0x3e5   : > { %v14871_v28 = vpop.f32.mrf.mxu1 }
 0x3e6   : > { %v12728_v24 = vadd.f32 0.0009, %v12720_v49  ;;  %v12719_v18 = vmul.f32 2.0, %v12695_v35  ;;  %v11820_v21 = vadd.f32 %v14871_v28, %v14864_v14 }
 0x3e7   : > { %v11813_v58 = vpop.f32.mrf.mxu1 }
 0x3e8   : > { %v12736_v19 = vmul.f32 %v12728_v24, %v12712_v9  ;;  %v12727_v45 = vadd.f32 0.0009, %v12719_v18  ;;  %v11814_v57 = vadd.f32 %v11813_v58, %v11722_v52  ;;  %v11903_v15 = vadd.f32 %v14878_v30, %v11820_v21  ;;  %v14892_v17 = vpop.f32.mrf.mxu0 }
 0x3ea   : > { %v12788_v55 = vmul.f32 %v15039_v31, %v12736_v19  ;;  %v12735_v37 = vmul.f32 %v12727_v45, %v12711_v12  ;;  %v11896_v2 = vadd.f32 %v11895_v59, %v11814_v57  ;;  %v12062_v8 = vpop.f32.mrf.mxu0 }
 0x3eb   : > { %v14885_v38 = vpop.f32.mrf.mxu1 }
 0x3ec   : > { %v12786_v22 = vmul.f32 %v15041_v39, %v12735_v37  ;;  %v11986_v47 = vadd.f32 %v14885_v38, %v11903_v15  ;;  %v12802_v60 = vsel %vm348_vm0, %v12788_v55, 0.0  ;;  %v12708_v55 = vmul.f32 2.0, %v17458_v44 }
 0x3ed   : > { %v11977_v62 = vpop.f32.mrf.mxu1 }
 0x3ee   : > { %v12800_v34 = vsel %vm348_vm0, %v12786_v22, 0.0  ;;  %v11978_v7 = vadd.f32 %v11977_v62, %v11896_v2  ;;  %v12069_v6 = vadd.f32 %v14892_v17, %v11986_v47  ;;  %v14906_v43 = vpop.f32.mrf.mxu0  ;;  %v12716_v38 = vadd.f32 0.0001, %v12708_v55 }
 0x3ef   : > { %v12801_v54 = vadd.f32 %v12800_v34, %v12799_v63  ;;  %v12715_v62 = vadd.f32 0.0001, %v12707_v42 }
 0x3f0   : > { %v12063_v53 = vadd.f32 %v12062_v8, %v11978_v7  ;;  %v12224_v32 = vpop.f32.mrf.mxu0 }
 0x3f1   : > { %v14899_v29 = vpop.f32.mrf.mxu1  ;;  %v12803_v26 = vadd.f32 %v12802_v60, %v12801_v54 }
 0x3f2   : > { %v12148_v40 = vadd.f32 %v14899_v29, %v12069_v6 }
 0x3f3   : > { %v12141_v13 = vpop.f32.mrf.mxu1 }
 0x3f4   : > { %v12698_v23 = vsub.f32 %v12148_v40, %v17401_v0  ;;  %v12142_v56 = vadd.f32 %v12141_v13, %v12063_v53  ;;  %v14920_v11 = vpop.f32.mrf.mxu0  ;;  %v15043_v0 = vpop.eup %15042 }
 0x3f5   : > { %v15045_v28 = vpop.eup %15044 }
 0x3f6   : > { %v12722_v48 = vmul.f32 2.0, %v12698_v23  ;;  %v12697_v41 = vsub.f32 %v12142_v56, %v17417_v50  ;;  %v12397_v52 = vpop.f32.mrf.mxu0  ;;  %v15047_v6 = vpop.eup %15046 }
 0x3f7   : > { %v14913_v27 = vpop.f32.mrf.mxu1  ;;  %v15049_v53 = vpop.eup %15048 }
 0x3f8   : > { %v12730_v14 = vadd.f32 0.0009, %v12722_v48  ;;  %v12721_v63 = vmul.f32 2.0, %v12697_v41  ;;  %v12322_v36 = vadd.f32 %v14913_v27, %v14906_v43 }
 0x3f9   : > { %v12315_v25 = vpop.f32.mrf.mxu1 }
 0x3fa   : > { %v12738_v61 = vmul.f32 %v12730_v14, %v12714_v10  ;;  %v12729_v4 = vadd.f32 0.0009, %v12721_v63  ;;  %v12316_v46 = vadd.f32 %v12315_v25, %v12224_v32  ;;  %v12405_v5 = vadd.f32 %v14920_v11, %v12322_v36  ;;  %v14934_v35 = vpop.f32.mrf.mxu0 }
 0x3fc   : > { %v12737_v30 = vmul.f32 %v12729_v4, %v12713_v16  ;;  %v12398_v1 = vadd.f32 %v12397_v52, %v12316_v46  ;;  %v14927_v49 = vpop.f32.mrf.mxu1  ;;  %v12792_v59 = vmul.f32 %v15043_v0, %v12738_v61  ;;  %v12564_v12 = vpop.f32.mrf.mxu0 }
 0x3fd   : > { %v12488_v50 = vadd.f32 %v14927_v49, %v12405_v5 }
 0x3fe   : > { %v12790_v9 = vmul.f32 %v15045_v28, %v12737_v30  ;;  %v12479_v24 = vpop.f32.mrf.mxu1  ;;  %v12806_v17 = vsel %vm348_vm0, %v12792_v59, 0.0 }
 0x3ff   : > { %v12480_v18 = vadd.f32 %v12479_v24, %v12398_v1  ;;  %v12571_v21 = vadd.f32 %v14934_v35, %v12488_v50 }
 0x400   : > { %v14941_v58 = vpop.f32.mrf.mxu1  ;;  %v12804_v31 = vsel %vm348_vm0, %v12790_v9, 0.0 }
 0x401   : > { %v12565_v19 = vadd.f32 %v12564_v12, %v12480_v18  ;;  %v12650_v45 = vadd.f32 %v14941_v58, %v12571_v21  ;;  %v12805_v57 = vadd.f32 %v12804_v31, %v12803_v26 }
 0x402   : > { %v12643_v15 = vpop.f32.mrf.mxu1 }
 0x403   : > { %v12700_v20 = vsub.f32 %v12650_v45, %v17458_v44  ;;  %v12644_v37 = vadd.f32 %v12643_v15, %v12565_v19  ;;  %v12807_v2 = vadd.f32 %v12806_v17, %v12805_v57 }
 0x405   : > { %v12724_v8 = vmul.f32 2.0, %v12700_v20  ;;  %v12699_v39 = vsub.f32 %v12644_v37, %v17473_v33 }
 0x407   : > { %v12732_v22 = vadd.f32 0.0009, %v12724_v8  ;;  %v12723_v47 = vmul.f32 2.0, %v12699_v39 }
 0x409   : > { %v12731_v34 = vadd.f32 0.0009, %v12723_v47  ;;  %v12740_v7 = vmul.f32 %v12732_v22, %v12716_v38 }
 0x40b   : > { %v12739_v43 = vmul.f32 %v12731_v34, %v12715_v62  ;;  %v12796_v54 = vmul.f32 %v15047_v6, %v12740_v7 }
 0x40d   : > { %v12794_v32 = vmul.f32 %v15049_v53, %v12739_v43  ;;  %v12810_v29 = vsel %vm348_vm0, %v12796_v54, 0.0 }
 0x40f   : > { %v12808_v44 = vsel %vm348_vm0, %v12794_v32, 0.0 }
 0x410   : > { %v12809_v60 = vadd.f32 %v12808_v44, %v12807_v2 }
 0x412   : > { %v12811_v26 = vadd.f32 %v12810_v29, %v12809_v60 }
 0x414   : > { %12812 = vadd.xlane.f32.xlu0 %v12811_v26 }
 0x49d   : > { %v12813_v33 = vpop.xlane.xlu0 %12812 }
 0x49e   : > { %v12814_v40 = vrot.slane %v12813_v33, 4 }
 0x4a0   : > { %v12815_v13 = vadd.f32 %v12814_v40, %v12813_v33 }
 0x4a2   : > { %v12816_v51 = vrot.slane %v12815_v13, 2 }
 0x4a4   : > { %v12817_v23 = vadd.f32 %v12816_v51, %v12815_v13 }
 0x4a6   : > { %v12818_v56 = vrot.slane %v12817_v23, 1 }
 0x4a8   : > { %v12819_v11 = vadd.f32 %v12818_v56, %v12817_v23 }
 0x4aa   : > { %14942 = vpush %v12819_v11 }
 0x4db   : > { %s14943_s22 = spop %14942 }
 0x4dc   : > { %v12821_v3 = vstv %s14943_s22 }
 0x4dd   : > { %12822 = vst [vmem:[%s303_s13] sm:$0xff] %v12821_v3 }
 0x4de   : > { %15171 = shalt.err (!%p15168_p0)
}
 0x4df   : > { %s15172_s5 = scalar_lea.hbm %s12836_s9, 128  ;;  %s15176_s6 = scalar_lea.hbm %s18022_s27, 256 }
 0x4e0   : > { %p15173_p1 = scmp.ne.s32.totalorder %s12836_s9, %s15172_s5  ;;  %p15177_p8 = scmp.lt.s32.totalorder %s12836_s9, %s18022_s27 }
 0x4e1   : > { %p15178_p11 = scmp.lt.s32.totalorder %s15176_s6, %s15172_s5 }
 0x4e2   : > { %p15174_p6 = pnand %p15173_p1, %p18023_p12 }
 0x4e3   : > { %p15179_p13 = por %p15178_p11, %p15177_p8 }
 0x4e4   : > { %p15175_p4 = pneg %p15174_p6 }
 0x4e6   : > { %p15180_p7 = pnand %p15179_p13, %p15175_p4 }
 0x4e8   : > { %15183 = shalt.err (!%p15180_p7)
}
 0x4e9   : > { %14956 = dma.vmem_to_hbm [thread:$0]  (%p18023_p12), %s17626_s14, 128, %s12836_s9, %s12824_s29  }
 0x4ea PF: > { %s18024_s25 = sld [smem:[#allocation14_spill]]  ;;  %p18027_p5 = scmp.ge.s32.totalorder %s15246_s20, 2 }
 0x4eb   : > { %s18025_s13 = sld [smem:[#allocation15_spill]] }
 0x4f0   : > { %s12850_s12 = sand.u32 1, %s18024_s25  }
 0x4f1   : > { %p18026_p2 = scmp.ne.s32.totalorder %s18025_s13, 0  ;;  %s12851_s22 = scalar_lea.sflag [#allocation4], %s12850_s12 }
 0x4f3   : > { %p14973_p10 = pnand %p18027_p5, %p18026_p2 }
 0x4f5   : > { %p14974_p3 = pneg %p14973_p10 }
 0x4f7   : > { %15221 = dma.done.wait (%p14974_p3), %s12851_s22, 128  }
 0x4f8   : > { %15223 = vsyncadd (%p14974_p3), %s12851_s22, 4294967168  ;;  %s19_s20 = sadd.s32 1, %s15246_s20   ;;  %s18028_s15 = smov %s15230_s16 }
 0x4f9   : > { %p16_p9 = scmp.ge.s32.totalorder %s19_s20, 4   ;;  %s18029_s16 = smov %s15234_s17 }
 0x4fa   : > { %s18030_s17 = smov %s15395_s4  ;;  %s18031_s18 = smov %s15242_s19 }
 0x4fb   : > { %s18032_s19 = smov %s18034_s7  ;;  %18 = sbr.rel (!%p16_p9) target bundleno = 9 (0x9), region = 99 }
 0x500   :  { %12856 = vsyncpa [#allocation3], 1 }
 0x501   :  { %12858 = vsyncpa [#allocation3 + $0x1], 1 }
 0x502   :  { %12859 = vsyncpa [#allocation6], 1 }
 0x503   :  { %12860 = vsyncpa [#allocation4], 1 }
 0x504   :  { %12862 = vsyncpa [#allocation4 + $0x1], 1 }

</bundles_post_ra>
